<compile_context>
chip_gen: v5e
topology: v5e:2x2
jax: 0.10.0
libtpu: 0.0.40
codegen_flags: <defaults>
</compile_context>

<pallas_src>
import math
from functools import partial

import jax
import jax.numpy as jnp
from jax.experimental import pallas as pl
from jax.experimental.pallas import tpu as pltpu


# ----------------------------- Pallas kernel ------------------------------- #

def _gru_chunk_kernel(gi_r_ref, gi_z_ref, gi_n_ref,
                      whr_ref, whz_ref, whn_ref, bhn_ref,
                      out_ref, h_ref, *, chunk, last_only):
    """One chunk of `chunk` GRU timesteps.

    gi_*_ref : (B, Tc, H)  precomputed x-side gate pre-activations (+ folded biases)
    wh*_ref  : (H, H)      per-gate recurrent weights (resident, W_h*^T)
    bhn_ref  : (1, H)      recurrent bias of the n gate (must stay inside r*(...))
    out_ref  : (B, Tc, H)  hidden states for the chunk      (intermediate layers)
               (B, H)      final hidden state, resident     (last layer)
    h_ref    : (B, H)      VMEM scratch carrying h across chunks
    """
    c = pl.program_id(0)

    @pl.when(c == 0)
    def _():
        h_ref[...] = jnp.zeros_like(h_ref)

    h = h_ref[...]
    w_hr = whr_ref[...]
    w_hz = whz_ref[...]
    w_hn = whn_ref[...]
    b_hn = bhn_ref[...]

    # Fully unrolled over the chunk: static slice indices, and the LLO scheduler can
    # overlap step j+1's MXU pushes with step j's VPU/EUP gate math.
    for j in range(chunk):
        g_r = gi_r_ref[:, j, :]
        g_z = gi_z_ref[:, j, :]
        g_n = gi_n_ref[:, j, :]

        h_r = jnp.dot(h, w_hr, preferred_element_type=jnp.float32)
        h_z = jnp.dot(h, w_hz, preferred_element_type=jnp.float32)
        h_n = jnp.dot(h, w_hn, preferred_element_type=jnp.float32) + b_hn

        r = jax.nn.sigmoid(g_r + h_r)
        z = jax.nn.sigmoid(g_z + h_z)
        n = jnp.tanh(g_n + r * h_n)
        h = (1.0 - z) * n + z * h

        if not last_only:
            out_ref[:, j, :] = h.astype(out_ref.dtype)

    h_ref[...] = h
    if last_only:
        # Constant output block index -> resident in VMEM, one HBM writeback at end.
        out_ref[...] = h.astype(out_ref.dtype)


# ------------------------------ Layer wrapper ------------------------------- #

def _pick_chunk(T, max_chunk):
    """Largest legal chunk: divides T and is a multiple of 8 (or the full T)."""
    if T <= max_chunk:
        return T
    for c in range(max_chunk, 0, -1):
        if T % c == 0 and (c % 8 == 0 or c == T):
            return c
    return T


def gru_layer_pallas(x_bth, layer, *, chunk, last_only):
    """One GRU layer over the whole sequence.

    x_bth : (B, T, D_in) float32, batch-major (no transposes anywhere).
    returns (B, T, H) hidden sequence, or (B, H) final state if last_only.
    """
    B, T, D = x_bth.shape
    H = layer["whr_t"].shape[0]
    assert T % chunk == 0, (T, chunk)
    n_chunks = T // chunk

    # ---- hoisted input projection (one big matmul, handled by XLA) ----
    gi = jnp.einsum("btd,dg->btg", x_bth, layer["wih_t"],
                    preferred_element_type=jnp.float32)           # (B, T, 3H)
    gi_r = gi[..., 0 * H:1 * H] + layer["b_r"]    # b_ir + b_hr folded
    gi_z = gi[..., 1 * H:2 * H] + layer["b_z"]    # b_iz + b_hz folded
    gi_n = gi[..., 2 * H:3 * H] + layer["b_in"]   # b_in only (b_hn stays per-step)

    gi_spec = pl.BlockSpec((B, chunk, H), lambda c: (0, c, 0))
    w_spec = pl.BlockSpec((H, H), lambda c: (0, 0))      # resident across the grid
    b_spec = pl.BlockSpec((1, H), lambda c: (0, 0))

    if last_only:
        out_shape = jax.ShapeDtypeStruct((B, H), x_bth.dtype)
        out_spec = pl.BlockSpec((B, H), lambda c: (0, 0))
    else:
        out_shape = jax.ShapeDtypeStruct((B, T, H), x_bth.dtype)
        out_spec = pl.BlockSpec((B, chunk, H), lambda c: (0, c, 0))

    kernel = partial(_gru_chunk_kernel, chunk=chunk, last_only=last_only)

    return pl.pallas_call(
        kernel,
        out_shape=out_shape,
        grid_spec=pltpu.PrefetchScalarGridSpec(
            num_scalar_prefetch=0,
            grid=(n_chunks,),
            in_specs=[gi_spec, gi_spec, gi_spec, w_spec, w_spec, w_spec, b_spec],
            out_specs=out_spec,
            scratch_shapes=[pltpu.VMEM((B, H), jnp.float32)],
        ),
        # The time-chunk axis carries the recurrence through VMEM scratch.
        compiler_params=pltpu.CompilerParams(dimension_semantics=("arbitrary",)),
    )(gi_r, gi_z, gi_n, layer["whr_t"], layer["whz_t"], layer["whn_t"], layer["b_hn"])


# --------------------------- Module-level wrapper --------------------------- #

def custom_rnn_forward(x_btd, params, *, max_chunk=8):
    """CustomRNN.forward: stacked GRUs, return last timestep of final layer.

    x_btd  : (B, T, input_size)  -- PyTorch batch_first layout
    returns (B, hidden_sizes[-1])
    """
    h = x_btd.astype(jnp.float32)
    T = h.shape[1]
    chunk = _pick_chunk(T, max_chunk)
    n_layers = len(params)
    for i, layer in enumerate(params):
        h = gru_layer_pallas(h, layer, chunk=chunk, last_only=(i == n_layers - 1))
    return h  # (B, H_last) == x[:, -1, :] of the stacked GRU


def init_gru_params(key, input_size, hidden_sizes):
    """PyTorch GRU default init U(-1/sqrt(H), 1/sqrt(H)); pre-packed for the kernel."""
    params = []
    for i, H in enumerate(hidden_sizes):
        D = input_size if i == 0 else hidden_sizes[i - 1]
        k = 1.0 / math.sqrt(H)
        key, k1, k2, k3, k4 = jax.random.split(key, 5)
        w_ih = jax.random.uniform(k1, (3 * H, D), jnp.float32, -k, k)   # rows: r,z,n
        w_hh = jax.random.uniform(k2, (3 * H, H), jnp.float32, -k, k)
        b_ih = jax.random.uniform(k3, (3 * H,), jnp.float32, -k, k)
        b_hh = jax.random.uniform(k4, (3 * H,), jnp.float32, -k, k)
        params.append(dict(
            # raw (used by the pure-JAX reference only)
            w_ih=w_ih, w_hh=w_hh, b_ih=b_ih, b_hh=b_hh,
            # packed for the Pallas path
            wih_t=w_ih.T,                                   # (D, 3H) for the precompute
            whr_t=w_hh[0 * H:1 * H, :].T,                   # (H, H) per-gate recurrent
            whz_t=w_hh[1 * H:2 * H, :].T,
            whn_t=w_hh[2 * H:3 * H, :].T,
            b_r=(b_ih[0 * H:1 * H] + b_hh[0 * H:1 * H]).reshape(1, 1, H),
            b_z=(b_ih[1 * H:2 * H] + b_hh[1 * H:2 * H]).reshape(1, 1, H),
            b_in=b_ih[2 * H:3 * H].reshape(1, 1, H),
            b_hn=b_hh[2 * H:3 * H].reshape(1, H),
        ))
    return params


# ------------------------------ JAX reference ------------------------------- #

def gru_layer_ref(x_bth, layer):
    """Direct translation of PyTorch nn.GRU (gate order r, z, n) from raw weights."""
    w_ih, w_hh, b_ih, b_hh = layer["w_ih"], layer["w_hh"], layer["b_ih"], layer["b_hh"]
    H = w_hh.shape[1]
    x_tbd = jnp.swapaxes(x_bth, 0, 1)

    def step(h, x_t):
        gi = x_t @ w_ih.T + b_ih
        gh = h @ w_hh.T + b_hh
        r = jax.nn.sigmoid(gi[:, :H] + gh[:, :H])
        z = jax.nn.sigmoid(gi[:, H:2 * H] + gh[:, H:2 * H])
        n = jnp.tanh(gi[:, 2 * H:] + r * gh[:, 2 * H:])
        h_new = (1.0 - z) * n + z * h
        return h_new, h_new

    h0 = jnp.zeros((x_bth.shape[0], H), jnp.float32)
    _, hs = jax.lax.scan(step, h0, x_tbd)
    return jnp.swapaxes(hs, 0, 1)   # (B, T, H)


def custom_rnn_ref(x_btd, params):
    h = x_btd.astype(jnp.float32)
    for layer in params:
        h = gru_layer_ref(h, layer)
    return h[:, -1, :]


# ----------------------------------- main ----------------------------------- #

if __name__ == "__main__":
    B, T, input_size = 2, 16, 16
    hidden_sizes = [32, 32]

    key = jax.random.PRNGKey(0)
    key, kx = jax.random.split(key)
    x = jax.random.normal(kx, (B, T, input_size), jnp.float32)
    params = init_gru_params(key, input_size, hidden_sizes)

    fwd = jax.jit(partial(custom_rnn_forward, max_chunk=8))
    out = jax.block_until_ready(fwd(x, params))

    ref = custom_rnn_ref(x, params)
    assert out.shape == (B, hidden_sizes[-1]), out.shape
    assert jnp.allclose(out, ref, atol=1e-4, rtol=1e-4), (
        "Pallas GRU output mismatch vs JAX reference")

    print("KERNEL_OK")
</pallas_src>

<mosaic_0001>
module attributes {stable_mosaic.version = 11 : i64} {
  func.func @_gru_chunk_kernel(%arg0: i32, %arg1: memref<2x8x32xf32, #tpu.memory_space<vmem>>, %arg2: memref<2x8x32xf32, #tpu.memory_space<vmem>>, %arg3: memref<2x8x32xf32, #tpu.memory_space<vmem>>, %arg4: memref<32x32xf32, #tpu.memory_space<vmem>>, %arg5: memref<32x32xf32, #tpu.memory_space<vmem>>, %arg6: memref<32x32xf32, #tpu.memory_space<vmem>>, %arg7: memref<1x32xf32, #tpu.memory_space<vmem>>, %arg8: memref<2x8x32xf32, #tpu.memory_space<vmem>>, %arg9: memref<2x32xf32, #tpu.memory_space<vmem>>) attributes {dimension_semantics = [#tpu.dimension_semantics<arbitrary>], iteration_bounds = array<i64: 2>, scalar_prefetch = 0 : i64, scratch_operands = 1 : i64, tpu.core_type = #tpu.core_type<tc>, window_params = [{transform_indices = @transform_0, window_bounds = array<i64: 2, 8, 32>}, {transform_indices = @transform_1, window_bounds = array<i64: 2, 8, 32>}, {transform_indices = @transform_2, window_bounds = array<i64: 2, 8, 32>}, {pipeline_mode = #tpu.pipeline_mode<synchronous>, transform_indices = @transform_3, window_bounds = array<i64: 32, 32>}, {pipeline_mode = #tpu.pipeline_mode<synchronous>, transform_indices = @transform_4, window_bounds = array<i64: 32, 32>}, {pipeline_mode = #tpu.pipeline_mode<synchronous>, transform_indices = @transform_5, window_bounds = array<i64: 32, 32>}, {pipeline_mode = #tpu.pipeline_mode<synchronous>, transform_indices = @transform_6, window_bounds = array<i64: 1, 32>}, {transform_indices = @transform_7, window_bounds = array<i64: 2, 8, 32>}]} {
    %c0_i32 = arith.constant 0 : i32
    %0 = arith.cmpi eq, %arg0, %c0_i32 : i32
    %1 = arith.extui %0 : i1 to i32
    %c0_i32_0 = arith.constant 0 : i32
    %2 = arith.cmpi ne, %1, %c0_i32_0 : i32
    scf.if %2 {
      %cst_148 = arith.constant 0.000000e+00 : f32
      %281 = vector.broadcast %cst_148 : f32 to vector<2x32xf32>
      %c0_149 = arith.constant 0 : index
      %c0_150 = arith.constant 0 : index
      %282 = vector.load %arg9[%c0_149, %c0_150] : memref<2x32xf32, #tpu.memory_space<vmem>>, vector<2x32xf32>
      tpu.vector_store %arg9[%c0_149, %c0_150], %281 {strides = array<i32>} : memref<2x32xf32, #tpu.memory_space<vmem>>, vector<2x32xf32>,
    } else {
    }
    %c0 = arith.constant 0 : index
    %c0_1 = arith.constant 0 : index
    %3 = vector.load %arg9[%c0, %c0_1] : memref<2x32xf32, #tpu.memory_space<vmem>>, vector<2x32xf32>
    %c0_2 = arith.constant 0 : index
    %c0_3 = arith.constant 0 : index
    %4 = vector.load %arg4[%c0_2, %c0_3] : memref<32x32xf32, #tpu.memory_space<vmem>>, vector<32x32xf32>
    %c0_4 = arith.constant 0 : index
    %c0_5 = arith.constant 0 : index
    %5 = vector.load %arg5[%c0_4, %c0_5] : memref<32x32xf32, #tpu.memory_space<vmem>>, vector<32x32xf32>
    %c0_6 = arith.constant 0 : index
    %c0_7 = arith.constant 0 : index
    %6 = vector.load %arg6[%c0_6, %c0_7] : memref<32x32xf32, #tpu.memory_space<vmem>>, vector<32x32xf32>
    %c0_8 = arith.constant 0 : index
    %c0_9 = arith.constant 0 : index
    %7 = vector.load %arg7[%c0_8, %c0_9] : memref<1x32xf32, #tpu.memory_space<vmem>>, vector<1x32xf32>
    %c0_10 = arith.constant 0 : index
    %c0_11 = arith.constant 0 : index
    %c0_12 = arith.constant 0 : index
    %8 = vector.load %arg1[%c0_10, %c0_11, %c0_12] : memref<2x8x32xf32, #tpu.memory_space<vmem>>, vector<2x1x32xf32>
    %9 = vector.shape_cast %8 : vector<2x1x32xf32> to vector<2x32xf32>
    %c0_13 = arith.constant 0 : index
    %c0_14 = arith.constant 0 : index
    %c0_15 = arith.constant 0 : index
    %10 = vector.load %arg2[%c0_13, %c0_14, %c0_15] : memref<2x8x32xf32, #tpu.memory_space<vmem>>, vector<2x1x32xf32>
    %11 = vector.shape_cast %10 : vector<2x1x32xf32> to vector<2x32xf32>
    %c0_16 = arith.constant 0 : index
    %c0_17 = arith.constant 0 : index
    %c0_18 = arith.constant 0 : index
    %12 = vector.load %arg3[%c0_16, %c0_17, %c0_18] : memref<2x8x32xf32, #tpu.memory_space<vmem>>, vector<2x1x32xf32>
    %13 = vector.shape_cast %12 : vector<2x1x32xf32> to vector<2x32xf32>
    %cst = arith.constant dense<0.000000e+00> : vector<2x32xf32>
    %14 = tpu.matmul %3, %4, %cst {dimension_numbers = #tpu.dot_dimension_numbers<[1], [0], [0], [1], [0, 0, 1, 1], [], []>} : vector<2x32xf32>, vector<32x32xf32>, vector<2x32xf32> -> vector<2x32xf32>
    %cst_19 = arith.constant dense<0.000000e+00> : vector<2x32xf32>
    %15 = tpu.matmul %3, %5, %cst_19 {dimension_numbers = #tpu.dot_dimension_numbers<[1], [0], [0], [1], [0, 0, 1, 1], [], []>} : vector<2x32xf32>, vector<32x32xf32>, vector<2x32xf32> -> vector<2x32xf32>
    %cst_20 = arith.constant dense<0.000000e+00> : vector<2x32xf32>
    %16 = tpu.matmul %3, %6, %cst_20 {dimension_numbers = #tpu.dot_dimension_numbers<[1], [0], [0], [1], [0, 0, 1, 1], [], []>} : vector<2x32xf32>, vector<32x32xf32>, vector<2x32xf32> -> vector<2x32xf32>
    %17 = vector.broadcast %7 : vector<1x32xf32> to vector<2x32xf32>
    %18 = arith.addf %16, %17 : vector<2x32xf32>
    %19 = arith.addf %9, %14 : vector<2x32xf32>
    %20 = arith.negf %19 : vector<2x32xf32>
    %21 = math.exp %20 : vector<2x32xf32>
    %cst_21 = arith.constant 1.000000e+00 : f32
    %22 = vector.broadcast %cst_21 : f32 to vector<2x32xf32>
    %23 = arith.addf %22, %21 : vector<2x32xf32>
    %24 = arith.divf %22, %23 : vector<2x32xf32>
    %25 = arith.addf %11, %15 : vector<2x32xf32>
    %26 = arith.negf %25 : vector<2x32xf32>
    %27 = math.exp %26 : vector<2x32xf32>
    %cst_22 = arith.constant 1.000000e+00 : f32
    %28 = vector.broadcast %cst_22 : f32 to vector<2x32xf32>
    %29 = arith.addf %28, %27 : vector<2x32xf32>
    %30 = arith.divf %28, %29 : vector<2x32xf32>
    %31 = arith.mulf %24, %18 : vector<2x32xf32>
    %32 = arith.addf %13, %31 : vector<2x32xf32>
    %33 = math.tanh %32 : vector<2x32xf32>
    %cst_23 = arith.constant 1.000000e+00 : f32
    %34 = vector.broadcast %cst_23 : f32 to vector<2x32xf32>
    %35 = arith.subf %34, %30 : vector<2x32xf32>
    %36 = arith.mulf %35, %33 : vector<2x32xf32>
    %37 = arith.mulf %30, %3 : vector<2x32xf32>
    %38 = arith.addf %36, %37 : vector<2x32xf32>
    %c0_24 = arith.constant 0 : index
    %c0_25 = arith.constant 0 : index
    %c0_26 = arith.constant 0 : index
    %39 = vector.load %arg8[%c0_24, %c0_25, %c0_26] : memref<2x8x32xf32, #tpu.memory_space<vmem>>, vector<2x1x32xf32>
    %40 = vector.shape_cast %39 : vector<2x1x32xf32> to vector<2x32xf32>
    %41 = vector.shape_cast %38 : vector<2x32xf32> to vector<2x1x32xf32>
    tpu.vector_store %arg8[%c0_24, %c0_25, %c0_26], %41 {strides = array<i32>} : memref<2x8x32xf32, #tpu.memory_space<vmem>>, vector<2x1x32xf32>,
    %c0_27 = arith.constant 0 : index
    %c1 = arith.constant 1 : index
    %c0_28 = arith.constant 0 : index
    %42 = vector.load %arg1[%c0_27, %c1, %c0_28] : memref<2x8x32xf32, #tpu.memory_space<vmem>>, vector<2x1x32xf32>
    %43 = vector.shape_cast %42 : vector<2x1x32xf32> to vector<2x32xf32>
    %c0_29 = arith.constant 0 : index
    %c1_30 = arith.constant 1 : index
    %c0_31 = arith.constant 0 : index
    %44 = vector.load %arg2[%c0_29, %c1_30, %c0_31] : memref<2x8x32xf32, #tpu.memory_space<vmem>>, vector<2x1x32xf32>
    %45 = vector.shape_cast %44 : vector<2x1x32xf32> to vector<2x32xf32>
    %c0_32 = arith.constant 0 : index
    %c1_33 = arith.constant 1 : index
    %c0_34 = arith.constant 0 : index
    %46 = vector.load %arg3[%c0_32, %c1_33, %c0_34] : memref<2x8x32xf32, #tpu.memory_space<vmem>>, vector<2x1x32xf32>
    %47 = vector.shape_cast %46 : vector<2x1x32xf32> to vector<2x32xf32>
    %cst_35 = arith.constant dense<0.000000e+00> : vector<2x32xf32>
    %48 = tpu.matmul %38, %4, %cst_35 {dimension_numbers = #tpu.dot_dimension_numbers<[1], [0], [0], [1], [0, 0, 1, 1], [], []>} : vector<2x32xf32>, vector<32x32xf32>, vector<2x32xf32> -> vector<2x32xf32>
    %cst_36 = arith.constant dense<0.000000e+00> : vector<2x32xf32>
    %49 = tpu.matmul %38, %5, %cst_36 {dimension_numbers = #tpu.dot_dimension_numbers<[1], [0], [0], [1], [0, 0, 1, 1], [], []>} : vector<2x32xf32>, vector<32x32xf32>, vector<2x32xf32> -> vector<2x32xf32>
    %cst_37 = arith.constant dense<0.000000e+00> : vector<2x32xf32>
    %50 = tpu.matmul %38, %6, %cst_37 {dimension_numbers = #tpu.dot_dimension_numbers<[1], [0], [0], [1], [0, 0, 1, 1], [], []>} : vector<2x32xf32>, vector<32x32xf32>, vector<2x32xf32> -> vector<2x32xf32>
    %51 = vector.broadcast %7 : vector<1x32xf32> to vector<2x32xf32>
    %52 = arith.addf %50, %51 : vector<2x32xf32>
    %53 = arith.addf %43, %48 : vector<2x32xf32>
    %54 = arith.negf %53 : vector<2x32xf32>
    %55 = math.exp %54 : vector<2x32xf32>
    %cst_38 = arith.constant 1.000000e+00 : f32
    %56 = vector.broadcast %cst_38 : f32 to vector<2x32xf32>
    %57 = arith.addf %56, %55 : vector<2x32xf32>
    %58 = arith.divf %56, %57 : vector<2x32xf32>
    %59 = arith.addf %45, %49 : vector<2x32xf32>
    %60 = arith.negf %59 : vector<2x32xf32>
    %61 = math.exp %60 : vector<2x32xf32>
    %cst_39 = arith.constant 1.000000e+00 : f32
    %62 = vector.broadcast %cst_39 : f32 to vector<2x32xf32>
    %63 = arith.addf %62, %61 : vector<2x32xf32>
    %64 = arith.divf %62, %63 : vector<2x32xf32>
    %65 = arith.mulf %58, %52 : vector<2x32xf32>
    %66 = arith.addf %47, %65 : vector<2x32xf32>
    %67 = math.tanh %66 : vector<2x32xf32>
    %cst_40 = arith.constant 1.000000e+00 : f32
    %68 = vector.broadcast %cst_40 : f32 to vector<2x32xf32>
    %69 = arith.subf %68, %64 : vector<2x32xf32>
    %70 = arith.mulf %69, %67 : vector<2x32xf32>
    %71 = arith.mulf %64, %38 : vector<2x32xf32>
    %72 = arith.addf %70, %71 : vector<2x32xf32>
    %c0_41 = arith.constant 0 : index
    %c1_42 = arith.constant 1 : index
    %c0_43 = arith.constant 0 : index
    %73 = vector.load %arg8[%c0_41, %c1_42, %c0_43] : memref<2x8x32xf32, #tpu.memory_space<vmem>>, vector<2x1x32xf32>
    %74 = vector.shape_cast %73 : vector<2x1x32xf32> to vector<2x32xf32>
    %75 = vector.shape_cast %72 : vector<2x32xf32> to vector<2x1x32xf32>
    tpu.vector_store %arg8[%c0_41, %c1_42, %c0_43], %75 {strides = array<i32>} : memref<2x8x32xf32, #tpu.memory_space<vmem>>, vector<2x1x32xf32>,
    %c0_44 = arith.constant 0 : index
    %c2 = arith.constant 2 : index
    %c0_45 = arith.constant 0 : index
    %76 = vector.load %arg1[%c0_44, %c2, %c0_45] : memref<2x8x32xf32, #tpu.memory_space<vmem>>, vector<2x1x32xf32>
    %77 = vector.shape_cast %76 : vector<2x1x32xf32> to vector<2x32xf32>
    %c0_46 = arith.constant 0 : index
    %c2_47 = arith.constant 2 : index
    %c0_48 = arith.constant 0 : index
    %78 = vector.load %arg2[%c0_46, %c2_47, %c0_48] : memref<2x8x32xf32, #tpu.memory_space<vmem>>, vector<2x1x32xf32>
    %79 = vector.shape_cast %78 : vector<2x1x32xf32> to vector<2x32xf32>
    %c0_49 = arith.constant 0 : index
    %c2_50 = arith.constant 2 : index
    %c0_51 = arith.constant 0 : index
    %80 = vector.load %arg3[%c0_49, %c2_50, %c0_51] : memref<2x8x32xf32, #tpu.memory_space<vmem>>, vector<2x1x32xf32>
    %81 = vector.shape_cast %80 : vector<2x1x32xf32> to vector<2x32xf32>
    %cst_52 = arith.constant dense<0.000000e+00> : vector<2x32xf32>
    %82 = tpu.matmul %72, %4, %cst_52 {dimension_numbers = #tpu.dot_dimension_numbers<[1], [0], [0], [1], [0, 0, 1, 1], [], []>} : vector<2x32xf32>, vector<32x32xf32>, vector<2x32xf32> -> vector<2x32xf32>
    %cst_53 = arith.constant dense<0.000000e+00> : vector<2x32xf32>
    %83 = tpu.matmul %72, %5, %cst_53 {dimension_numbers = #tpu.dot_dimension_numbers<[1], [0], [0], [1], [0, 0, 1, 1], [], []>} : vector<2x32xf32>, vector<32x32xf32>, vector<2x32xf32> -> vector<2x32xf32>
    %cst_54 = arith.constant dense<0.000000e+00> : vector<2x32xf32>
    %84 = tpu.matmul %72, %6, %cst_54 {dimension_numbers = #tpu.dot_dimension_numbers<[1], [0], [0], [1], [0, 0, 1, 1], [], []>} : vector<2x32xf32>, vector<32x32xf32>, vector<2x32xf32> -> vector<2x32xf32>
    %85 = vector.broadcast %7 : vector<1x32xf32> to vector<2x32xf32>
    %86 = arith.addf %84, %85 : vector<2x32xf32>
    %87 = arith.addf %77, %82 : vector<2x32xf32>
    %88 = arith.negf %87 : vector<2x32xf32>
    %89 = math.exp %88 : vector<2x32xf32>
    %cst_55 = arith.constant 1.000000e+00 : f32
    %90 = vector.broadcast %cst_55 : f32 to vector<2x32xf32>
    %91 = arith.addf %90, %89 : vector<2x32xf32>
    %92 = arith.divf %90, %91 : vector<2x32xf32>
    %93 = arith.addf %79, %83 : vector<2x32xf32>
    %94 = arith.negf %93 : vector<2x32xf32>
    %95 = math.exp %94 : vector<2x32xf32>
    %cst_56 = arith.constant 1.000000e+00 : f32
    %96 = vector.broadcast %cst_56 : f32 to vector<2x32xf32>
    %97 = arith.addf %96, %95 : vector<2x32xf32>
    %98 = arith.divf %96, %97 : vector<2x32xf32>
    %99 = arith.mulf %92, %86 : vector<2x32xf32>
    %100 = arith.addf %81, %99 : vector<2x32xf32>
    %101 = math.tanh %100 : vector<2x32xf32>
    %cst_57 = arith.constant 1.000000e+00 : f32
    %102 = vector.broadcast %cst_57 : f32 to vector<2x32xf32>
    %103 = arith.subf %102, %98 : vector<2x32xf32>
    %104 = arith.mulf %103, %101 : vector<2x32xf32>
    %105 = arith.mulf %98, %72 : vector<2x32xf32>
    %106 = arith.addf %104, %105 : vector<2x32xf32>
    %c0_58 = arith.constant 0 : index
    %c2_59 = arith.constant 2 : index
    %c0_60 = arith.constant 0 : index
    %107 = vector.load %arg8[%c0_58, %c2_59, %c0_60] : memref<2x8x32xf32, #tpu.memory_space<vmem>>, vector<2x1x32xf32>
    %108 = vector.shape_cast %107 : vector<2x1x32xf32> to vector<2x32xf32>
    %109 = vector.shape_cast %106 : vector<2x32xf32> to vector<2x1x32xf32>
    tpu.vector_store %arg8[%c0_58, %c2_59, %c0_60], %109 {strides = array<i32>} : memref<2x8x32xf32, #tpu.memory_space<vmem>>, vector<2x1x32xf32>,
    %c0_61 = arith.constant 0 : index
    %c3 = arith.constant 3 : index
    %c0_62 = arith.constant 0 : index
    %110 = vector.load %arg1[%c0_61, %c3, %c0_62] : memref<2x8x32xf32, #tpu.memory_space<vmem>>, vector<2x1x32xf32>
    %111 = vector.shape_cast %110 : vector<2x1x32xf32> to vector<2x32xf32>
    %c0_63 = arith.constant 0 : index
    %c3_64 = arith.constant 3 : index
    %c0_65 = arith.constant 0 : index
    %112 = vector.load %arg2[%c0_63, %c3_64, %c0_65] : memref<2x8x32xf32, #tpu.memory_space<vmem>>, vector<2x1x32xf32>
    %113 = vector.shape_cast %112 : vector<2x1x32xf32> to vector<2x32xf32>
    %c0_66 = arith.constant 0 : index
    %c3_67 = arith.constant 3 : index
    %c0_68 = arith.constant 0 : index
    %114 = vector.load %arg3[%c0_66, %c3_67, %c0_68] : memref<2x8x32xf32, #tpu.memory_space<vmem>>, vector<2x1x32xf32>
    %115 = vector.shape_cast %114 : vector<2x1x32xf32> to vector<2x32xf32>
    %cst_69 = arith.constant dense<0.000000e+00> : vector<2x32xf32>
    %116 = tpu.matmul %106, %4, %cst_69 {dimension_numbers = #tpu.dot_dimension_numbers<[1], [0], [0], [1], [0, 0, 1, 1], [], []>} : vector<2x32xf32>, vector<32x32xf32>, vector<2x32xf32> -> vector<2x32xf32>
    %cst_70 = arith.constant dense<0.000000e+00> : vector<2x32xf32>
    %117 = tpu.matmul %106, %5, %cst_70 {dimension_numbers = #tpu.dot_dimension_numbers<[1], [0], [0], [1], [0, 0, 1, 1], [], []>} : vector<2x32xf32>, vector<32x32xf32>, vector<2x32xf32> -> vector<2x32xf32>
    %cst_71 = arith.constant dense<0.000000e+00> : vector<2x32xf32>
    %118 = tpu.matmul %106, %6, %cst_71 {dimension_numbers = #tpu.dot_dimension_numbers<[1], [0], [0], [1], [0, 0, 1, 1], [], []>} : vector<2x32xf32>, vector<32x32xf32>, vector<2x32xf32> -> vector<2x32xf32>
    %119 = vector.broadcast %7 : vector<1x32xf32> to vector<2x32xf32>
    %120 = arith.addf %118, %119 : vector<2x32xf32>
    %121 = arith.addf %111, %116 : vector<2x32xf32>
    %122 = arith.negf %121 : vector<2x32xf32>
    %123 = math.exp %122 : vector<2x32xf32>
    %cst_72 = arith.constant 1.000000e+00 : f32
    %124 = vector.broadcast %cst_72 : f32 to vector<2x32xf32>
    %125 = arith.addf %124, %123 : vector<2x32xf32>
    %126 = arith.divf %124, %125 : vector<2x32xf32>
    %127 = arith.addf %113, %117 : vector<2x32xf32>
    %128 = arith.negf %127 : vector<2x32xf32>
    %129 = math.exp %128 : vector<2x32xf32>
    %cst_73 = arith.constant 1.000000e+00 : f32
    %130 = vector.broadcast %cst_73 : f32 to vector<2x32xf32>
    %131 = arith.addf %130, %129 : vector<2x32xf32>
    %132 = arith.divf %130, %131 : vector<2x32xf32>
    %133 = arith.mulf %126, %120 : vector<2x32xf32>
    %134 = arith.addf %115, %133 : vector<2x32xf32>
    %135 = math.tanh %134 : vector<2x32xf32>
    %cst_74 = arith.constant 1.000000e+00 : f32
    %136 = vector.broadcast %cst_74 : f32 to vector<2x32xf32>
    %137 = arith.subf %136, %132 : vector<2x32xf32>
    %138 = arith.mulf %137, %135 : vector<2x32xf32>
    %139 = arith.mulf %132, %106 : vector<2x32xf32>
    %140 = arith.addf %138, %139 : vector<2x32xf32>
    %c0_75 = arith.constant 0 : index
    %c3_76 = arith.constant 3 : index
    %c0_77 = arith.constant 0 : index
    %141 = vector.load %arg8[%c0_75, %c3_76, %c0_77] : memref<2x8x32xf32, #tpu.memory_space<vmem>>, vector<2x1x32xf32>
    %142 = vector.shape_cast %141 : vector<2x1x32xf32> to vector<2x32xf32>
    %143 = vector.shape_cast %140 : vector<2x32xf32> to vector<2x1x32xf32>
    tpu.vector_store %arg8[%c0_75, %c3_76, %c0_77], %143 {strides = array<i32>} : memref<2x8x32xf32, #tpu.memory_space<vmem>>, vector<2x1x32xf32>,
    %c0_78 = arith.constant 0 : index
    %c4 = arith.constant 4 : index
    %c0_79 = arith.constant 0 : index
    %144 = vector.load %arg1[%c0_78, %c4, %c0_79] : memref<2x8x32xf32, #tpu.memory_space<vmem>>, vector<2x1x32xf32>
    %145 = vector.shape_cast %144 : vector<2x1x32xf32> to vector<2x32xf32>
    %c0_80 = arith.constant 0 : index
    %c4_81 = arith.constant 4 : index
    %c0_82 = arith.constant 0 : index
    %146 = vector.load %arg2[%c0_80, %c4_81, %c0_82] : memref<2x8x32xf32, #tpu.memory_space<vmem>>, vector<2x1x32xf32>
    %147 = vector.shape_cast %146 : vector<2x1x32xf32> to vector<2x32xf32>
    %c0_83 = arith.constant 0 : index
    %c4_84 = arith.constant 4 : index
    %c0_85 = arith.constant 0 : index
    %148 = vector.load %arg3[%c0_83, %c4_84, %c0_85] : memref<2x8x32xf32, #tpu.memory_space<vmem>>, vector<2x1x32xf32>
    %149 = vector.shape_cast %148 : vector<2x1x32xf32> to vector<2x32xf32>
    %cst_86 = arith.constant dense<0.000000e+00> : vector<2x32xf32>
    %150 = tpu.matmul %140, %4, %cst_86 {dimension_numbers = #tpu.dot_dimension_numbers<[1], [0], [0], [1], [0, 0, 1, 1], [], []>} : vector<2x32xf32>, vector<32x32xf32>, vector<2x32xf32> -> vector<2x32xf32>
    %cst_87 = arith.constant dense<0.000000e+00> : vector<2x32xf32>
    %151 = tpu.matmul %140, %5, %cst_87 {dimension_numbers = #tpu.dot_dimension_numbers<[1], [0], [0], [1], [0, 0, 1, 1], [], []>} : vector<2x32xf32>, vector<32x32xf32>, vector<2x32xf32> -> vector<2x32xf32>
    %cst_88 = arith.constant dense<0.000000e+00> : vector<2x32xf32>
    %152 = tpu.matmul %140, %6, %cst_88 {dimension_numbers = #tpu.dot_dimension_numbers<[1], [0], [0], [1], [0, 0, 1, 1], [], []>} : vector<2x32xf32>, vector<32x32xf32>, vector<2x32xf32> -> vector<2x32xf32>
    %153 = vector.broadcast %7 : vector<1x32xf32> to vector<2x32xf32>
    %154 = arith.addf %152, %153 : vector<2x32xf32>
    %155 = arith.addf %145, %150 : vector<2x32xf32>
    %156 = arith.negf %155 : vector<2x32xf32>
    %157 = math.exp %156 : vector<2x32xf32>
    %cst_89 = arith.constant 1.000000e+00 : f32
    %158 = vector.broadcast %cst_89 : f32 to vector<2x32xf32>
    %159 = arith.addf %158, %157 : vector<2x32xf32>
    %160 = arith.divf %158, %159 : vector<2x32xf32>
    %161 = arith.addf %147, %151 : vector<2x32xf32>
    %162 = arith.negf %161 : vector<2x32xf32>
    %163 = math.exp %162 : vector<2x32xf32>
    %cst_90 = arith.constant 1.000000e+00 : f32
    %164 = vector.broadcast %cst_90 : f32 to vector<2x32xf32>
    %165 = arith.addf %164, %163 : vector<2x32xf32>
    %166 = arith.divf %164, %165 : vector<2x32xf32>
    %167 = arith.mulf %160, %154 : vector<2x32xf32>
    %168 = arith.addf %149, %167 : vector<2x32xf32>
    %169 = math.tanh %168 : vector<2x32xf32>
    %cst_91 = arith.constant 1.000000e+00 : f32
    %170 = vector.broadcast %cst_91 : f32 to vector<2x32xf32>
    %171 = arith.subf %170, %166 : vector<2x32xf32>
    %172 = arith.mulf %171, %169 : vector<2x32xf32>
    %173 = arith.mulf %166, %140 : vector<2x32xf32>
    %174 = arith.addf %172, %173 : vector<2x32xf32>
    %c0_92 = arith.constant 0 : index
    %c4_93 = arith.constant 4 : index
    %c0_94 = arith.constant 0 : index
    %175 = vector.load %arg8[%c0_92, %c4_93, %c0_94] : memref<2x8x32xf32, #tpu.memory_space<vmem>>, vector<2x1x32xf32>
    %176 = vector.shape_cast %175 : vector<2x1x32xf32> to vector<2x32xf32>
    %177 = vector.shape_cast %174 : vector<2x32xf32> to vector<2x1x32xf32>
    tpu.vector_store %arg8[%c0_92, %c4_93, %c0_94], %177 {strides = array<i32>} : memref<2x8x32xf32, #tpu.memory_space<vmem>>, vector<2x1x32xf32>,
    %c0_95 = arith.constant 0 : index
    %c5 = arith.constant 5 : index
    %c0_96 = arith.constant 0 : index
    %178 = vector.load %arg1[%c0_95, %c5, %c0_96] : memref<2x8x32xf32, #tpu.memory_space<vmem>>, vector<2x1x32xf32>
    %179 = vector.shape_cast %178 : vector<2x1x32xf32> to vector<2x32xf32>
    %c0_97 = arith.constant 0 : index
    %c5_98 = arith.constant 5 : index
    %c0_99 = arith.constant 0 : index
    %180 = vector.load %arg2[%c0_97, %c5_98, %c0_99] : memref<2x8x32xf32, #tpu.memory_space<vmem>>, vector<2x1x32xf32>
    %181 = vector.shape_cast %180 : vector<2x1x32xf32> to vector<2x32xf32>
    %c0_100 = arith.constant 0 : index
    %c5_101 = arith.constant 5 : index
    %c0_102 = arith.constant 0 : index
    %182 = vector.load %arg3[%c0_100, %c5_101, %c0_102] : memref<2x8x32xf32, #tpu.memory_space<vmem>>, vector<2x1x32xf32>
    %183 = vector.shape_cast %182 : vector<2x1x32xf32> to vector<2x32xf32>
    %cst_103 = arith.constant dense<0.000000e+00> : vector<2x32xf32>
    %184 = tpu.matmul %174, %4, %cst_103 {dimension_numbers = #tpu.dot_dimension_numbers<[1], [0], [0], [1], [0, 0, 1, 1], [], []>} : vector<2x32xf32>, vector<32x32xf32>, vector<2x32xf32> -> vector<2x32xf32>
    %cst_104 = arith.constant dense<0.000000e+00> : vector<2x32xf32>
    %185 = tpu.matmul %174, %5, %cst_104 {dimension_numbers = #tpu.dot_dimension_numbers<[1], [0], [0], [1], [0, 0, 1, 1], [], []>} : vector<2x32xf32>, vector<32x32xf32>, vector<2x32xf32> -> vector<2x32xf32>
    %cst_105 = arith.constant dense<0.000000e+00> : vector<2x32xf32>
    %186 = tpu.matmul %174, %6, %cst_105 {dimension_numbers = #tpu.dot_dimension_numbers<[1], [0], [0], [1], [0, 0, 1, 1], [], []>} : vector<2x32xf32>, vector<32x32xf32>, vector<2x32xf32> -> vector<2x32xf32>
    %187 = vector.broadcast %7 : vector<1x32xf32> to vector<2x32xf32>
    %188 = arith.addf %186, %187 : vector<2x32xf32>
    %189 = arith.addf %179, %184 : vector<2x32xf32>
    %190 = arith.negf %189 : vector<2x32xf32>
    %191 = math.exp %190 : vector<2x32xf32>
    %cst_106 = arith.constant 1.000000e+00 : f32
    %192 = vector.broadcast %cst_106 : f32 to vector<2x32xf32>
    %193 = arith.addf %192, %191 : vector<2x32xf32>
    %194 = arith.divf %192, %193 : vector<2x32xf32>
    %195 = arith.addf %181, %185 : vector<2x32xf32>
    %196 = arith.negf %195 : vector<2x32xf32>
    %197 = math.exp %196 : vector<2x32xf32>
    %cst_107 = arith.constant 1.000000e+00 : f32
    %198 = vector.broadcast %cst_107 : f32 to vector<2x32xf32>
    %199 = arith.addf %198, %197 : vector<2x32xf32>
    %200 = arith.divf %198, %199 : vector<2x32xf32>
    %201 = arith.mulf %194, %188 : vector<2x32xf32>
    %202 = arith.addf %183, %201 : vector<2x32xf32>
    %203 = math.tanh %202 : vector<2x32xf32>
    %cst_108 = arith.constant 1.000000e+00 : f32
    %204 = vector.broadcast %cst_108 : f32 to vector<2x32xf32>
    %205 = arith.subf %204, %200 : vector<2x32xf32>
    %206 = arith.mulf %205, %203 : vector<2x32xf32>
    %207 = arith.mulf %200, %174 : vector<2x32xf32>
    %208 = arith.addf %206, %207 : vector<2x32xf32>
    %c0_109 = arith.constant 0 : index
    %c5_110 = arith.constant 5 : index
    %c0_111 = arith.constant 0 : index
    %209 = vector.load %arg8[%c0_109, %c5_110, %c0_111] : memref<2x8x32xf32, #tpu.memory_space<vmem>>, vector<2x1x32xf32>
    %210 = vector.shape_cast %209 : vector<2x1x32xf32> to vector<2x32xf32>
    %211 = vector.shape_cast %208 : vector<2x32xf32> to vector<2x1x32xf32>
    tpu.vector_store %arg8[%c0_109, %c5_110, %c0_111], %211 {strides = array<i32>} : memref<2x8x32xf32, #tpu.memory_space<vmem>>, vector<2x1x32xf32>,
    %c0_112 = arith.constant 0 : index
    %c6 = arith.constant 6 : index
    %c0_113 = arith.constant 0 : index
    %212 = vector.load %arg1[%c0_112, %c6, %c0_113] : memref<2x8x32xf32, #tpu.memory_space<vmem>>, vector<2x1x32xf32>
    %213 = vector.shape_cast %212 : vector<2x1x32xf32> to vector<2x32xf32>
    %c0_114 = arith.constant 0 : index
    %c6_115 = arith.constant 6 : index
    %c0_116 = arith.constant 0 : index
    %214 = vector.load %arg2[%c0_114, %c6_115, %c0_116] : memref<2x8x32xf32, #tpu.memory_space<vmem>>, vector<2x1x32xf32>
    %215 = vector.shape_cast %214 : vector<2x1x32xf32> to vector<2x32xf32>
    %c0_117 = arith.constant 0 : index
    %c6_118 = arith.constant 6 : index
    %c0_119 = arith.constant 0 : index
    %216 = vector.load %arg3[%c0_117, %c6_118, %c0_119] : memref<2x8x32xf32, #tpu.memory_space<vmem>>, vector<2x1x32xf32>
    %217 = vector.shape_cast %216 : vector<2x1x32xf32> to vector<2x32xf32>
    %cst_120 = arith.constant dense<0.000000e+00> : vector<2x32xf32>
    %218 = tpu.matmul %208, %4, %cst_120 {dimension_numbers = #tpu.dot_dimension_numbers<[1], [0], [0], [1], [0, 0, 1, 1], [], []>} : vector<2x32xf32>, vector<32x32xf32>, vector<2x32xf32> -> vector<2x32xf32>
    %cst_121 = arith.constant dense<0.000000e+00> : vector<2x32xf32>
    %219 = tpu.matmul %208, %5, %cst_121 {dimension_numbers = #tpu.dot_dimension_numbers<[1], [0], [0], [1], [0, 0, 1, 1], [], []>} : vector<2x32xf32>, vector<32x32xf32>, vector<2x32xf32> -> vector<2x32xf32>
    %cst_122 = arith.constant dense<0.000000e+00> : vector<2x32xf32>
    %220 = tpu.matmul %208, %6, %cst_122 {dimension_numbers = #tpu.dot_dimension_numbers<[1], [0], [0], [1], [0, 0, 1, 1], [], []>} : vector<2x32xf32>, vector<32x32xf32>, vector<2x32xf32> -> vector<2x32xf32>
    %221 = vector.broadcast %7 : vector<1x32xf32> to vector<2x32xf32>
    %222 = arith.addf %220, %221 : vector<2x32xf32>
    %223 = arith.addf %213, %218 : vector<2x32xf32>
    %224 = arith.negf %223 : vector<2x32xf32>
    %225 = math.exp %224 : vector<2x32xf32>
    %cst_123 = arith.constant 1.000000e+00 : f32
    %226 = vector.broadcast %cst_123 : f32 to vector<2x32xf32>
    %227 = arith.addf %226, %225 : vector<2x32xf32>
    %228 = arith.divf %226, %227 : vector<2x32xf32>
    %229 = arith.addf %215, %219 : vector<2x32xf32>
    %230 = arith.negf %229 : vector<2x32xf32>
    %231 = math.exp %230 : vector<2x32xf32>
    %cst_124 = arith.constant 1.000000e+00 : f32
    %232 = vector.broadcast %cst_124 : f32 to vector<2x32xf32>
    %233 = arith.addf %232, %231 : vector<2x32xf32>
    %234 = arith.divf %232, %233 : vector<2x32xf32>
    %235 = arith.mulf %228, %222 : vector<2x32xf32>
    %236 = arith.addf %217, %235 : vector<2x32xf32>
    %237 = math.tanh %236 : vector<2x32xf32>
    %cst_125 = arith.constant 1.000000e+00 : f32
    %238 = vector.broadcast %cst_125 : f32 to vector<2x32xf32>
    %239 = arith.subf %238, %234 : vector<2x32xf32>
    %240 = arith.mulf %239, %237 : vector<2x32xf32>
    %241 = arith.mulf %234, %208 : vector<2x32xf32>
    %242 = arith.addf %240, %241 : vector<2x32xf32>
    %c0_126 = arith.constant 0 : index
    %c6_127 = arith.constant 6 : index
    %c0_128 = arith.constant 0 : index
    %243 = vector.load %arg8[%c0_126, %c6_127, %c0_128] : memref<2x8x32xf32, #tpu.memory_space<vmem>>, vector<2x1x32xf32>
    %244 = vector.shape_cast %243 : vector<2x1x32xf32> to vector<2x32xf32>
    %245 = vector.shape_cast %242 : vector<2x32xf32> to vector<2x1x32xf32>
    tpu.vector_store %arg8[%c0_126, %c6_127, %c0_128], %245 {strides = array<i32>} : memref<2x8x32xf32, #tpu.memory_space<vmem>>, vector<2x1x32xf32>,
    %c0_129 = arith.constant 0 : index
    %c7 = arith.constant 7 : index
    %c0_130 = arith.constant 0 : index
    %246 = vector.load %arg1[%c0_129, %c7, %c0_130] : memref<2x8x32xf32, #tpu.memory_space<vmem>>, vector<2x1x32xf32>
    %247 = vector.shape_cast %246 : vector<2x1x32xf32> to vector<2x32xf32>
    %c0_131 = arith.constant 0 : index
    %c7_132 = arith.constant 7 : index
    %c0_133 = arith.constant 0 : index
    %248 = vector.load %arg2[%c0_131, %c7_132, %c0_133] : memref<2x8x32xf32, #tpu.memory_space<vmem>>, vector<2x1x32xf32>
    %249 = vector.shape_cast %248 : vector<2x1x32xf32> to vector<2x32xf32>
    %c0_134 = arith.constant 0 : index
    %c7_135 = arith.constant 7 : index
    %c0_136 = arith.constant 0 : index
    %250 = vector.load %arg3[%c0_134, %c7_135, %c0_136] : memref<2x8x32xf32, #tpu.memory_space<vmem>>, vector<2x1x32xf32>
    %251 = vector.shape_cast %250 : vector<2x1x32xf32> to vector<2x32xf32>
    %cst_137 = arith.constant dense<0.000000e+00> : vector<2x32xf32>
    %252 = tpu.matmul %242, %4, %cst_137 {dimension_numbers = #tpu.dot_dimension_numbers<[1], [0], [0], [1], [0, 0, 1, 1], [], []>} : vector<2x32xf32>, vector<32x32xf32>, vector<2x32xf32> -> vector<2x32xf32>
    %cst_138 = arith.constant dense<0.000000e+00> : vector<2x32xf32>
    %253 = tpu.matmul %242, %5, %cst_138 {dimension_numbers = #tpu.dot_dimension_numbers<[1], [0], [0], [1], [0, 0, 1, 1], [], []>} : vector<2x32xf32>, vector<32x32xf32>, vector<2x32xf32> -> vector<2x32xf32>
    %cst_139 = arith.constant dense<0.000000e+00> : vector<2x32xf32>
    %254 = tpu.matmul %242, %6, %cst_139 {dimension_numbers = #tpu.dot_dimension_numbers<[1], [0], [0], [1], [0, 0, 1, 1], [], []>} : vector<2x32xf32>, vector<32x32xf32>, vector<2x32xf32> -> vector<2x32xf32>
    %255 = vector.broadcast %7 : vector<1x32xf32> to vector<2x32xf32>
    %256 = arith.addf %254, %255 : vector<2x32xf32>
    %257 = arith.addf %247, %252 : vector<2x32xf32>
    %258 = arith.negf %257 : vector<2x32xf32>
    %259 = math.exp %258 : vector<2x32xf32>
    %cst_140 = arith.constant 1.000000e+00 : f32
    %260 = vector.broadcast %cst_140 : f32 to vector<2x32xf32>
    %261 = arith.addf %260, %259 : vector<2x32xf32>
    %262 = arith.divf %260, %261 : vector<2x32xf32>
    %263 = arith.addf %249, %253 : vector<2x32xf32>
    %264 = arith.negf %263 : vector<2x32xf32>
    %265 = math.exp %264 : vector<2x32xf32>
    %cst_141 = arith.constant 1.000000e+00 : f32
    %266 = vector.broadcast %cst_141 : f32 to vector<2x32xf32>
    %267 = arith.addf %266, %265 : vector<2x32xf32>
    %268 = arith.divf %266, %267 : vector<2x32xf32>
    %269 = arith.mulf %262, %256 : vector<2x32xf32>
    %270 = arith.addf %251, %269 : vector<2x32xf32>
    %271 = math.tanh %270 : vector<2x32xf32>
    %cst_142 = arith.constant 1.000000e+00 : f32
    %272 = vector.broadcast %cst_142 : f32 to vector<2x32xf32>
    %273 = arith.subf %272, %268 : vector<2x32xf32>
    %274 = arith.mulf %273, %271 : vector<2x32xf32>
    %275 = arith.mulf %268, %242 : vector<2x32xf32>
    %276 = arith.addf %274, %275 : vector<2x32xf32>
    %c0_143 = arith.constant 0 : index
    %c7_144 = arith.constant 7 : index
    %c0_145 = arith.constant 0 : index
    %277 = vector.load %arg8[%c0_143, %c7_144, %c0_145] : memref<2x8x32xf32, #tpu.memory_space<vmem>>, vector<2x1x32xf32>
    %278 = vector.shape_cast %277 : vector<2x1x32xf32> to vector<2x32xf32>
    %279 = vector.shape_cast %276 : vector<2x32xf32> to vector<2x1x32xf32>
    tpu.vector_store %arg8[%c0_143, %c7_144, %c0_145], %279 {strides = array<i32>} : memref<2x8x32xf32, #tpu.memory_space<vmem>>, vector<2x1x32xf32>,
    %c0_146 = arith.constant 0 : index
    %c0_147 = arith.constant 0 : index
    %280 = vector.load %arg9[%c0_146, %c0_147] : memref<2x32xf32, #tpu.memory_space<vmem>>, vector<2x32xf32>
    tpu.vector_store %arg9[%c0_146, %c0_147], %276 {strides = array<i32>} : memref<2x32xf32, #tpu.memory_space<vmem>>, vector<2x32xf32>,
    return
  }
  func.func @transform_0(%arg0: i32) -> (i32, i32, i32) {
    %c0_i32 = arith.constant 0 : i32
    %c0_i32_0 = arith.constant 0 : i32
    %c0_i32_1 = arith.constant 0 : i32
    return %c0_i32, %arg0, %c0_i32_0 : i32, i32, i32
  }
  func.func @transform_1(%arg0: i32) -> (i32, i32, i32) {
    %c0_i32 = arith.constant 0 : i32
    %c0_i32_0 = arith.constant 0 : i32
    %c0_i32_1 = arith.constant 0 : i32
    return %c0_i32, %arg0, %c0_i32_0 : i32, i32, i32
  }
  func.func @transform_2(%arg0: i32) -> (i32, i32, i32) {
    %c0_i32 = arith.constant 0 : i32
    %c0_i32_0 = arith.constant 0 : i32
    %c0_i32_1 = arith.constant 0 : i32
    return %c0_i32, %arg0, %c0_i32_0 : i32, i32, i32
  }
  func.func @transform_3(%arg0: i32) -> (i32, i32) {
    %c0_i32 = arith.constant 0 : i32
    %c0_i32_0 = arith.constant 0 : i32
    %c0_i32_1 = arith.constant 0 : i32
    return %c0_i32, %c0_i32_0 : i32, i32
  }
  func.func @transform_4(%arg0: i32) -> (i32, i32) {
    %c0_i32 = arith.constant 0 : i32
    %c0_i32_0 = arith.constant 0 : i32
    %c0_i32_1 = arith.constant 0 : i32
    return %c0_i32, %c0_i32_0 : i32, i32
  }
  func.func @transform_5(%arg0: i32) -> (i32, i32) {
    %c0_i32 = arith.constant 0 : i32
    %c0_i32_0 = arith.constant 0 : i32
    %c0_i32_1 = arith.constant 0 : i32
    return %c0_i32, %c0_i32_0 : i32, i32
  }
  func.func @transform_6(%arg0: i32) -> (i32, i32) {
    %c0_i32 = arith.constant 0 : i32
    %c0_i32_0 = arith.constant 0 : i32
    %c0_i32_1 = arith.constant 0 : i32
    return %c0_i32, %c0_i32_0 : i32, i32
  }
  func.func @transform_7(%arg0: i32) -> (i32, i32, i32) {
    %c0_i32 = arith.constant 0 : i32
    %c0_i32_0 = arith.constant 0 : i32
    %c0_i32_1 = arith.constant 0 : i32
    return %c0_i32, %arg0, %c0_i32_0 : i32, i32, i32
  }
}

module attributes {stable_mosaic.version = 11 : i64} {
  func.func @_gru_chunk_kernel(%arg0: i32, %arg1: memref<2x8x32xf32, #tpu.memory_space<vmem>>, %arg2: memref<2x8x32xf32, #tpu.memory_space<vmem>>, %arg3: memref<2x8x32xf32, #tpu.memory_space<vmem>>, %arg4: memref<32x32xf32, #tpu.memory_space<vmem>>, %arg5: memref<32x32xf32, #tpu.memory_space<vmem>>, %arg6: memref<32x32xf32, #tpu.memory_space<vmem>>, %arg7: memref<1x32xf32, #tpu.memory_space<vmem>>, %arg8: memref<2x32xf32, #tpu.memory_space<vmem>>, %arg9: memref<2x32xf32, #tpu.memory_space<vmem>>) attributes {dimension_semantics = [#tpu.dimension_semantics<arbitrary>], iteration_bounds = array<i64: 2>, scalar_prefetch = 0 : i64, scratch_operands = 1 : i64, tpu.core_type = #tpu.core_type<tc>, window_params = [{transform_indices = @transform_0, window_bounds = array<i64: 2, 8, 32>}, {transform_indices = @transform_1, window_bounds = array<i64: 2, 8, 32>}, {transform_indices = @transform_2, window_bounds = array<i64: 2, 8, 32>}, {pipeline_mode = #tpu.pipeline_mode<synchronous>, transform_indices = @transform_3, window_bounds = array<i64: 32, 32>}, {pipeline_mode = #tpu.pipeline_mode<synchronous>, transform_indices = @transform_4, window_bounds = array<i64: 32, 32>}, {pipeline_mode = #tpu.pipeline_mode<synchronous>, transform_indices = @transform_5, window_bounds = array<i64: 32, 32>}, {pipeline_mode = #tpu.pipeline_mode<synchronous>, transform_indices = @transform_6, window_bounds = array<i64: 1, 32>}, {pipeline_mode = #tpu.pipeline_mode<synchronous>, transform_indices = @transform_7, window_bounds = array<i64: 2, 32>}]} {
    %c0_i32 = arith.constant 0 : i32
    %0 = arith.cmpi eq, %arg0, %c0_i32 : i32
    %1 = arith.extui %0 : i1 to i32
    %c0_i32_0 = arith.constant 0 : i32
    %2 = arith.cmpi ne, %1, %c0_i32_0 : i32
    scf.if %2 {
      %cst_126 = arith.constant 0.000000e+00 : f32
      %258 = vector.broadcast %cst_126 : f32 to vector<2x32xf32>
      %c0_127 = arith.constant 0 : index
      %c0_128 = arith.constant 0 : index
      %259 = vector.load %arg9[%c0_127, %c0_128] : memref<2x32xf32, #tpu.memory_space<vmem>>, vector<2x32xf32>
      tpu.vector_store %arg9[%c0_127, %c0_128], %258 {strides = array<i32>} : memref<2x32xf32, #tpu.memory_space<vmem>>, vector<2x32xf32>,
    } else {
    }
    %c0 = arith.constant 0 : index
    %c0_1 = arith.constant 0 : index
    %3 = vector.load %arg9[%c0, %c0_1] : memref<2x32xf32, #tpu.memory_space<vmem>>, vector<2x32xf32>
    %c0_2 = arith.constant 0 : index
    %c0_3 = arith.constant 0 : index
    %4 = vector.load %arg4[%c0_2, %c0_3] : memref<32x32xf32, #tpu.memory_space<vmem>>, vector<32x32xf32>
    %c0_4 = arith.constant 0 : index
    %c0_5 = arith.constant 0 : index
    %5 = vector.load %arg5[%c0_4, %c0_5] : memref<32x32xf32, #tpu.memory_space<vmem>>, vector<32x32xf32>
    %c0_6 = arith.constant 0 : index
    %c0_7 = arith.constant 0 : index
    %6 = vector.load %arg6[%c0_6, %c0_7] : memref<32x32xf32, #tpu.memory_space<vmem>>, vector<32x32xf32>
    %c0_8 = arith.constant 0 : index
    %c0_9 = arith.constant 0 : index
    %7 = vector.load %arg7[%c0_8, %c0_9] : memref<1x32xf32, #tpu.memory_space<vmem>>, vector<1x32xf32>
    %c0_10 = arith.constant 0 : index
    %c0_11 = arith.constant 0 : index
    %c0_12 = arith.constant 0 : index
    %8 = vector.load %arg1[%c0_10, %c0_11, %c0_12] : memref<2x8x32xf32, #tpu.memory_space<vmem>>, vector<2x1x32xf32>
    %9 = vector.shape_cast %8 : vector<2x1x32xf32> to vector<2x32xf32>
    %c0_13 = arith.constant 0 : index
    %c0_14 = arith.constant 0 : index
    %c0_15 = arith.constant 0 : index
    %10 = vector.load %arg2[%c0_13, %c0_14, %c0_15] : memref<2x8x32xf32, #tpu.memory_space<vmem>>, vector<2x1x32xf32>
    %11 = vector.shape_cast %10 : vector<2x1x32xf32> to vector<2x32xf32>
    %c0_16 = arith.constant 0 : index
    %c0_17 = arith.constant 0 : index
    %c0_18 = arith.constant 0 : index
    %12 = vector.load %arg3[%c0_16, %c0_17, %c0_18] : memref<2x8x32xf32, #tpu.memory_space<vmem>>, vector<2x1x32xf32>
    %13 = vector.shape_cast %12 : vector<2x1x32xf32> to vector<2x32xf32>
    %cst = arith.constant dense<0.000000e+00> : vector<2x32xf32>
    %14 = tpu.matmul %3, %4, %cst {dimension_numbers = #tpu.dot_dimension_numbers<[1], [0], [0], [1], [0, 0, 1, 1], [], []>} : vector<2x32xf32>, vector<32x32xf32>, vector<2x32xf32> -> vector<2x32xf32>
    %cst_19 = arith.constant dense<0.000000e+00> : vector<2x32xf32>
    %15 = tpu.matmul %3, %5, %cst_19 {dimension_numbers = #tpu.dot_dimension_numbers<[1], [0], [0], [1], [0, 0, 1, 1], [], []>} : vector<2x32xf32>, vector<32x32xf32>, vector<2x32xf32> -> vector<2x32xf32>
    %cst_20 = arith.constant dense<0.000000e+00> : vector<2x32xf32>
    %16 = tpu.matmul %3, %6, %cst_20 {dimension_numbers = #tpu.dot_dimension_numbers<[1], [0], [0], [1], [0, 0, 1, 1], [], []>} : vector<2x32xf32>, vector<32x32xf32>, vector<2x32xf32> -> vector<2x32xf32>
    %17 = vector.broadcast %7 : vector<1x32xf32> to vector<2x32xf32>
    %18 = arith.addf %16, %17 : vector<2x32xf32>
    %19 = arith.addf %9, %14 : vector<2x32xf32>
    %20 = arith.negf %19 : vector<2x32xf32>
    %21 = math.exp %20 : vector<2x32xf32>
    %cst_21 = arith.constant 1.000000e+00 : f32
    %22 = vector.broadcast %cst_21 : f32 to vector<2x32xf32>
    %23 = arith.addf %22, %21 : vector<2x32xf32>
    %24 = arith.divf %22, %23 : vector<2x32xf32>
    %25 = arith.addf %11, %15 : vector<2x32xf32>
    %26 = arith.negf %25 : vector<2x32xf32>
    %27 = math.exp %26 : vector<2x32xf32>
    %cst_22 = arith.constant 1.000000e+00 : f32
    %28 = vector.broadcast %cst_22 : f32 to vector<2x32xf32>
    %29 = arith.addf %28, %27 : vector<2x32xf32>
    %30 = arith.divf %28, %29 : vector<2x32xf32>
    %31 = arith.mulf %24, %18 : vector<2x32xf32>
    %32 = arith.addf %13, %31 : vector<2x32xf32>
    %33 = math.tanh %32 : vector<2x32xf32>
    %cst_23 = arith.constant 1.000000e+00 : f32
    %34 = vector.broadcast %cst_23 : f32 to vector<2x32xf32>
    %35 = arith.subf %34, %30 : vector<2x32xf32>
    %36 = arith.mulf %35, %33 : vector<2x32xf32>
    %37 = arith.mulf %30, %3 : vector<2x32xf32>
    %38 = arith.addf %36, %37 : vector<2x32xf32>
    %c0_24 = arith.constant 0 : index
    %c1 = arith.constant 1 : index
    %c0_25 = arith.constant 0 : index
    %39 = vector.load %arg1[%c0_24, %c1, %c0_25] : memref<2x8x32xf32, #tpu.memory_space<vmem>>, vector<2x1x32xf32>
    %40 = vector.shape_cast %39 : vector<2x1x32xf32> to vector<2x32xf32>
    %c0_26 = arith.constant 0 : index
    %c1_27 = arith.constant 1 : index
    %c0_28 = arith.constant 0 : index
    %41 = vector.load %arg2[%c0_26, %c1_27, %c0_28] : memref<2x8x32xf32, #tpu.memory_space<vmem>>, vector<2x1x32xf32>
    %42 = vector.shape_cast %41 : vector<2x1x32xf32> to vector<2x32xf32>
    %c0_29 = arith.constant 0 : index
    %c1_30 = arith.constant 1 : index
    %c0_31 = arith.constant 0 : index
    %43 = vector.load %arg3[%c0_29, %c1_30, %c0_31] : memref<2x8x32xf32, #tpu.memory_space<vmem>>, vector<2x1x32xf32>
    %44 = vector.shape_cast %43 : vector<2x1x32xf32> to vector<2x32xf32>
    %cst_32 = arith.constant dense<0.000000e+00> : vector<2x32xf32>
    %45 = tpu.matmul %38, %4, %cst_32 {dimension_numbers = #tpu.dot_dimension_numbers<[1], [0], [0], [1], [0, 0, 1, 1], [], []>} : vector<2x32xf32>, vector<32x32xf32>, vector<2x32xf32> -> vector<2x32xf32>
    %cst_33 = arith.constant dense<0.000000e+00> : vector<2x32xf32>
    %46 = tpu.matmul %38, %5, %cst_33 {dimension_numbers = #tpu.dot_dimension_numbers<[1], [0], [0], [1], [0, 0, 1, 1], [], []>} : vector<2x32xf32>, vector<32x32xf32>, vector<2x32xf32> -> vector<2x32xf32>
    %cst_34 = arith.constant dense<0.000000e+00> : vector<2x32xf32>
    %47 = tpu.matmul %38, %6, %cst_34 {dimension_numbers = #tpu.dot_dimension_numbers<[1], [0], [0], [1], [0, 0, 1, 1], [], []>} : vector<2x32xf32>, vector<32x32xf32>, vector<2x32xf32> -> vector<2x32xf32>
    %48 = vector.broadcast %7 : vector<1x32xf32> to vector<2x32xf32>
    %49 = arith.addf %47, %48 : vector<2x32xf32>
    %50 = arith.addf %40, %45 : vector<2x32xf32>
    %51 = arith.negf %50 : vector<2x32xf32>
    %52 = math.exp %51 : vector<2x32xf32>
    %cst_35 = arith.constant 1.000000e+00 : f32
    %53 = vector.broadcast %cst_35 : f32 to vector<2x32xf32>
    %54 = arith.addf %53, %52 : vector<2x32xf32>
    %55 = arith.divf %53, %54 : vector<2x32xf32>
    %56 = arith.addf %42, %46 : vector<2x32xf32>
    %57 = arith.negf %56 : vector<2x32xf32>
    %58 = math.exp %57 : vector<2x32xf32>
    %cst_36 = arith.constant 1.000000e+00 : f32
    %59 = vector.broadcast %cst_36 : f32 to vector<2x32xf32>
    %60 = arith.addf %59, %58 : vector<2x32xf32>
    %61 = arith.divf %59, %60 : vector<2x32xf32>
    %62 = arith.mulf %55, %49 : vector<2x32xf32>
    %63 = arith.addf %44, %62 : vector<2x32xf32>
    %64 = math.tanh %63 : vector<2x32xf32>
    %cst_37 = arith.constant 1.000000e+00 : f32
    %65 = vector.broadcast %cst_37 : f32 to vector<2x32xf32>
    %66 = arith.subf %65, %61 : vector<2x32xf32>
    %67 = arith.mulf %66, %64 : vector<2x32xf32>
    %68 = arith.mulf %61, %38 : vector<2x32xf32>
    %69 = arith.addf %67, %68 : vector<2x32xf32>
    %c0_38 = arith.constant 0 : index
    %c2 = arith.constant 2 : index
    %c0_39 = arith.constant 0 : index
    %70 = vector.load %arg1[%c0_38, %c2, %c0_39] : memref<2x8x32xf32, #tpu.memory_space<vmem>>, vector<2x1x32xf32>
    %71 = vector.shape_cast %70 : vector<2x1x32xf32> to vector<2x32xf32>
    %c0_40 = arith.constant 0 : index
    %c2_41 = arith.constant 2 : index
    %c0_42 = arith.constant 0 : index
    %72 = vector.load %arg2[%c0_40, %c2_41, %c0_42] : memref<2x8x32xf32, #tpu.memory_space<vmem>>, vector<2x1x32xf32>
    %73 = vector.shape_cast %72 : vector<2x1x32xf32> to vector<2x32xf32>
    %c0_43 = arith.constant 0 : index
    %c2_44 = arith.constant 2 : index
    %c0_45 = arith.constant 0 : index
    %74 = vector.load %arg3[%c0_43, %c2_44, %c0_45] : memref<2x8x32xf32, #tpu.memory_space<vmem>>, vector<2x1x32xf32>
    %75 = vector.shape_cast %74 : vector<2x1x32xf32> to vector<2x32xf32>
    %cst_46 = arith.constant dense<0.000000e+00> : vector<2x32xf32>
    %76 = tpu.matmul %69, %4, %cst_46 {dimension_numbers = #tpu.dot_dimension_numbers<[1], [0], [0], [1], [0, 0, 1, 1], [], []>} : vector<2x32xf32>, vector<32x32xf32>, vector<2x32xf32> -> vector<2x32xf32>
    %cst_47 = arith.constant dense<0.000000e+00> : vector<2x32xf32>
    %77 = tpu.matmul %69, %5, %cst_47 {dimension_numbers = #tpu.dot_dimension_numbers<[1], [0], [0], [1], [0, 0, 1, 1], [], []>} : vector<2x32xf32>, vector<32x32xf32>, vector<2x32xf32> -> vector<2x32xf32>
    %cst_48 = arith.constant dense<0.000000e+00> : vector<2x32xf32>
    %78 = tpu.matmul %69, %6, %cst_48 {dimension_numbers = #tpu.dot_dimension_numbers<[1], [0], [0], [1], [0, 0, 1, 1], [], []>} : vector<2x32xf32>, vector<32x32xf32>, vector<2x32xf32> -> vector<2x32xf32>
    %79 = vector.broadcast %7 : vector<1x32xf32> to vector<2x32xf32>
    %80 = arith.addf %78, %79 : vector<2x32xf32>
    %81 = arith.addf %71, %76 : vector<2x32xf32>
    %82 = arith.negf %81 : vector<2x32xf32>
    %83 = math.exp %82 : vector<2x32xf32>
    %cst_49 = arith.constant 1.000000e+00 : f32
    %84 = vector.broadcast %cst_49 : f32 to vector<2x32xf32>
    %85 = arith.addf %84, %83 : vector<2x32xf32>
    %86 = arith.divf %84, %85 : vector<2x32xf32>
    %87 = arith.addf %73, %77 : vector<2x32xf32>
    %88 = arith.negf %87 : vector<2x32xf32>
    %89 = math.exp %88 : vector<2x32xf32>
    %cst_50 = arith.constant 1.000000e+00 : f32
    %90 = vector.broadcast %cst_50 : f32 to vector<2x32xf32>
    %91 = arith.addf %90, %89 : vector<2x32xf32>
    %92 = arith.divf %90, %91 : vector<2x32xf32>
    %93 = arith.mulf %86, %80 : vector<2x32xf32>
    %94 = arith.addf %75, %93 : vector<2x32xf32>
    %95 = math.tanh %94 : vector<2x32xf32>
    %cst_51 = arith.constant 1.000000e+00 : f32
    %96 = vector.broadcast %cst_51 : f32 to vector<2x32xf32>
    %97 = arith.subf %96, %92 : vector<2x32xf32>
    %98 = arith.mulf %97, %95 : vector<2x32xf32>
    %99 = arith.mulf %92, %69 : vector<2x32xf32>
    %100 = arith.addf %98, %99 : vector<2x32xf32>
    %c0_52 = arith.constant 0 : index
    %c3 = arith.constant 3 : index
    %c0_53 = arith.constant 0 : index
    %101 = vector.load %arg1[%c0_52, %c3, %c0_53] : memref<2x8x32xf32, #tpu.memory_space<vmem>>, vector<2x1x32xf32>
    %102 = vector.shape_cast %101 : vector<2x1x32xf32> to vector<2x32xf32>
    %c0_54 = arith.constant 0 : index
    %c3_55 = arith.constant 3 : index
    %c0_56 = arith.constant 0 : index
    %103 = vector.load %arg2[%c0_54, %c3_55, %c0_56] : memref<2x8x32xf32, #tpu.memory_space<vmem>>, vector<2x1x32xf32>
    %104 = vector.shape_cast %103 : vector<2x1x32xf32> to vector<2x32xf32>
    %c0_57 = arith.constant 0 : index
    %c3_58 = arith.constant 3 : index
    %c0_59 = arith.constant 0 : index
    %105 = vector.load %arg3[%c0_57, %c3_58, %c0_59] : memref<2x8x32xf32, #tpu.memory_space<vmem>>, vector<2x1x32xf32>
    %106 = vector.shape_cast %105 : vector<2x1x32xf32> to vector<2x32xf32>
    %cst_60 = arith.constant dense<0.000000e+00> : vector<2x32xf32>
    %107 = tpu.matmul %100, %4, %cst_60 {dimension_numbers = #tpu.dot_dimension_numbers<[1], [0], [0], [1], [0, 0, 1, 1], [], []>} : vector<2x32xf32>, vector<32x32xf32>, vector<2x32xf32> -> vector<2x32xf32>
    %cst_61 = arith.constant dense<0.000000e+00> : vector<2x32xf32>
    %108 = tpu.matmul %100, %5, %cst_61 {dimension_numbers = #tpu.dot_dimension_numbers<[1], [0], [0], [1], [0, 0, 1, 1], [], []>} : vector<2x32xf32>, vector<32x32xf32>, vector<2x32xf32> -> vector<2x32xf32>
    %cst_62 = arith.constant dense<0.000000e+00> : vector<2x32xf32>
    %109 = tpu.matmul %100, %6, %cst_62 {dimension_numbers = #tpu.dot_dimension_numbers<[1], [0], [0], [1], [0, 0, 1, 1], [], []>} : vector<2x32xf32>, vector<32x32xf32>, vector<2x32xf32> -> vector<2x32xf32>
    %110 = vector.broadcast %7 : vector<1x32xf32> to vector<2x32xf32>
    %111 = arith.addf %109, %110 : vector<2x32xf32>
    %112 = arith.addf %102, %107 : vector<2x32xf32>
    %113 = arith.negf %112 : vector<2x32xf32>
    %114 = math.exp %113 : vector<2x32xf32>
    %cst_63 = arith.constant 1.000000e+00 : f32
    %115 = vector.broadcast %cst_63 : f32 to vector<2x32xf32>
    %116 = arith.addf %115, %114 : vector<2x32xf32>
    %117 = arith.divf %115, %116 : vector<2x32xf32>
    %118 = arith.addf %104, %108 : vector<2x32xf32>
    %119 = arith.negf %118 : vector<2x32xf32>
    %120 = math.exp %119 : vector<2x32xf32>
    %cst_64 = arith.constant 1.000000e+00 : f32
    %121 = vector.broadcast %cst_64 : f32 to vector<2x32xf32>
    %122 = arith.addf %121, %120 : vector<2x32xf32>
    %123 = arith.divf %121, %122 : vector<2x32xf32>
    %124 = arith.mulf %117, %111 : vector<2x32xf32>
    %125 = arith.addf %106, %124 : vector<2x32xf32>
    %126 = math.tanh %125 : vector<2x32xf32>
    %cst_65 = arith.constant 1.000000e+00 : f32
    %127 = vector.broadcast %cst_65 : f32 to vector<2x32xf32>
    %128 = arith.subf %127, %123 : vector<2x32xf32>
    %129 = arith.mulf %128, %126 : vector<2x32xf32>
    %130 = arith.mulf %123, %100 : vector<2x32xf32>
    %131 = arith.addf %129, %130 : vector<2x32xf32>
    %c0_66 = arith.constant 0 : index
    %c4 = arith.constant 4 : index
    %c0_67 = arith.constant 0 : index
    %132 = vector.load %arg1[%c0_66, %c4, %c0_67] : memref<2x8x32xf32, #tpu.memory_space<vmem>>, vector<2x1x32xf32>
    %133 = vector.shape_cast %132 : vector<2x1x32xf32> to vector<2x32xf32>
    %c0_68 = arith.constant 0 : index
    %c4_69 = arith.constant 4 : index
    %c0_70 = arith.constant 0 : index
    %134 = vector.load %arg2[%c0_68, %c4_69, %c0_70] : memref<2x8x32xf32, #tpu.memory_space<vmem>>, vector<2x1x32xf32>
    %135 = vector.shape_cast %134 : vector<2x1x32xf32> to vector<2x32xf32>
    %c0_71 = arith.constant 0 : index
    %c4_72 = arith.constant 4 : index
    %c0_73 = arith.constant 0 : index
    %136 = vector.load %arg3[%c0_71, %c4_72, %c0_73] : memref<2x8x32xf32, #tpu.memory_space<vmem>>, vector<2x1x32xf32>
    %137 = vector.shape_cast %136 : vector<2x1x32xf32> to vector<2x32xf32>
    %cst_74 = arith.constant dense<0.000000e+00> : vector<2x32xf32>
    %138 = tpu.matmul %131, %4, %cst_74 {dimension_numbers = #tpu.dot_dimension_numbers<[1], [0], [0], [1], [0, 0, 1, 1], [], []>} : vector<2x32xf32>, vector<32x32xf32>, vector<2x32xf32> -> vector<2x32xf32>
    %cst_75 = arith.constant dense<0.000000e+00> : vector<2x32xf32>
    %139 = tpu.matmul %131, %5, %cst_75 {dimension_numbers = #tpu.dot_dimension_numbers<[1], [0], [0], [1], [0, 0, 1, 1], [], []>} : vector<2x32xf32>, vector<32x32xf32>, vector<2x32xf32> -> vector<2x32xf32>
    %cst_76 = arith.constant dense<0.000000e+00> : vector<2x32xf32>
    %140 = tpu.matmul %131, %6, %cst_76 {dimension_numbers = #tpu.dot_dimension_numbers<[1], [0], [0], [1], [0, 0, 1, 1], [], []>} : vector<2x32xf32>, vector<32x32xf32>, vector<2x32xf32> -> vector<2x32xf32>
    %141 = vector.broadcast %7 : vector<1x32xf32> to vector<2x32xf32>
    %142 = arith.addf %140, %141 : vector<2x32xf32>
    %143 = arith.addf %133, %138 : vector<2x32xf32>
    %144 = arith.negf %143 : vector<2x32xf32>
    %145 = math.exp %144 : vector<2x32xf32>
    %cst_77 = arith.constant 1.000000e+00 : f32
    %146 = vector.broadcast %cst_77 : f32 to vector<2x32xf32>
    %147 = arith.addf %146, %145 : vector<2x32xf32>
    %148 = arith.divf %146, %147 : vector<2x32xf32>
    %149 = arith.addf %135, %139 : vector<2x32xf32>
    %150 = arith.negf %149 : vector<2x32xf32>
    %151 = math.exp %150 : vector<2x32xf32>
    %cst_78 = arith.constant 1.000000e+00 : f32
    %152 = vector.broadcast %cst_78 : f32 to vector<2x32xf32>
    %153 = arith.addf %152, %151 : vector<2x32xf32>
    %154 = arith.divf %152, %153 : vector<2x32xf32>
    %155 = arith.mulf %148, %142 : vector<2x32xf32>
    %156 = arith.addf %137, %155 : vector<2x32xf32>
    %157 = math.tanh %156 : vector<2x32xf32>
    %cst_79 = arith.constant 1.000000e+00 : f32
    %158 = vector.broadcast %cst_79 : f32 to vector<2x32xf32>
    %159 = arith.subf %158, %154 : vector<2x32xf32>
    %160 = arith.mulf %159, %157 : vector<2x32xf32>
    %161 = arith.mulf %154, %131 : vector<2x32xf32>
    %162 = arith.addf %160, %161 : vector<2x32xf32>
    %c0_80 = arith.constant 0 : index
    %c5 = arith.constant 5 : index
    %c0_81 = arith.constant 0 : index
    %163 = vector.load %arg1[%c0_80, %c5, %c0_81] : memref<2x8x32xf32, #tpu.memory_space<vmem>>, vector<2x1x32xf32>
    %164 = vector.shape_cast %163 : vector<2x1x32xf32> to vector<2x32xf32>
    %c0_82 = arith.constant 0 : index
    %c5_83 = arith.constant 5 : index
    %c0_84 = arith.constant 0 : index
    %165 = vector.load %arg2[%c0_82, %c5_83, %c0_84] : memref<2x8x32xf32, #tpu.memory_space<vmem>>, vector<2x1x32xf32>
    %166 = vector.shape_cast %165 : vector<2x1x32xf32> to vector<2x32xf32>
    %c0_85 = arith.constant 0 : index
    %c5_86 = arith.constant 5 : index
    %c0_87 = arith.constant 0 : index
    %167 = vector.load %arg3[%c0_85, %c5_86, %c0_87] : memref<2x8x32xf32, #tpu.memory_space<vmem>>, vector<2x1x32xf32>
    %168 = vector.shape_cast %167 : vector<2x1x32xf32> to vector<2x32xf32>
    %cst_88 = arith.constant dense<0.000000e+00> : vector<2x32xf32>
    %169 = tpu.matmul %162, %4, %cst_88 {dimension_numbers = #tpu.dot_dimension_numbers<[1], [0], [0], [1], [0, 0, 1, 1], [], []>} : vector<2x32xf32>, vector<32x32xf32>, vector<2x32xf32> -> vector<2x32xf32>
    %cst_89 = arith.constant dense<0.000000e+00> : vector<2x32xf32>
    %170 = tpu.matmul %162, %5, %cst_89 {dimension_numbers = #tpu.dot_dimension_numbers<[1], [0], [0], [1], [0, 0, 1, 1], [], []>} : vector<2x32xf32>, vector<32x32xf32>, vector<2x32xf32> -> vector<2x32xf32>
    %cst_90 = arith.constant dense<0.000000e+00> : vector<2x32xf32>
    %171 = tpu.matmul %162, %6, %cst_90 {dimension_numbers = #tpu.dot_dimension_numbers<[1], [0], [0], [1], [0, 0, 1, 1], [], []>} : vector<2x32xf32>, vector<32x32xf32>, vector<2x32xf32> -> vector<2x32xf32>
    %172 = vector.broadcast %7 : vector<1x32xf32> to vector<2x32xf32>
    %173 = arith.addf %171, %172 : vector<2x32xf32>
    %174 = arith.addf %164, %169 : vector<2x32xf32>
    %175 = arith.negf %174 : vector<2x32xf32>
    %176 = math.exp %175 : vector<2x32xf32>
    %cst_91 = arith.constant 1.000000e+00 : f32
    %177 = vector.broadcast %cst_91 : f32 to vector<2x32xf32>
    %178 = arith.addf %177, %176 : vector<2x32xf32>
    %179 = arith.divf %177, %178 : vector<2x32xf32>
    %180 = arith.addf %166, %170 : vector<2x32xf32>
    %181 = arith.negf %180 : vector<2x32xf32>
    %182 = math.exp %181 : vector<2x32xf32>
    %cst_92 = arith.constant 1.000000e+00 : f32
    %183 = vector.broadcast %cst_92 : f32 to vector<2x32xf32>
    %184 = arith.addf %183, %182 : vector<2x32xf32>
    %185 = arith.divf %183, %184 : vector<2x32xf32>
    %186 = arith.mulf %179, %173 : vector<2x32xf32>
    %187 = arith.addf %168, %186 : vector<2x32xf32>
    %188 = math.tanh %187 : vector<2x32xf32>
    %cst_93 = arith.constant 1.000000e+00 : f32
    %189 = vector.broadcast %cst_93 : f32 to vector<2x32xf32>
    %190 = arith.subf %189, %185 : vector<2x32xf32>
    %191 = arith.mulf %190, %188 : vector<2x32xf32>
    %192 = arith.mulf %185, %162 : vector<2x32xf32>
    %193 = arith.addf %191, %192 : vector<2x32xf32>
    %c0_94 = arith.constant 0 : index
    %c6 = arith.constant 6 : index
    %c0_95 = arith.constant 0 : index
    %194 = vector.load %arg1[%c0_94, %c6, %c0_95] : memref<2x8x32xf32, #tpu.memory_space<vmem>>, vector<2x1x32xf32>
    %195 = vector.shape_cast %194 : vector<2x1x32xf32> to vector<2x32xf32>
    %c0_96 = arith.constant 0 : index
    %c6_97 = arith.constant 6 : index
    %c0_98 = arith.constant 0 : index
    %196 = vector.load %arg2[%c0_96, %c6_97, %c0_98] : memref<2x8x32xf32, #tpu.memory_space<vmem>>, vector<2x1x32xf32>
    %197 = vector.shape_cast %196 : vector<2x1x32xf32> to vector<2x32xf32>
    %c0_99 = arith.constant 0 : index
    %c6_100 = arith.constant 6 : index
    %c0_101 = arith.constant 0 : index
    %198 = vector.load %arg3[%c0_99, %c6_100, %c0_101] : memref<2x8x32xf32, #tpu.memory_space<vmem>>, vector<2x1x32xf32>
    %199 = vector.shape_cast %198 : vector<2x1x32xf32> to vector<2x32xf32>
    %cst_102 = arith.constant dense<0.000000e+00> : vector<2x32xf32>
    %200 = tpu.matmul %193, %4, %cst_102 {dimension_numbers = #tpu.dot_dimension_numbers<[1], [0], [0], [1], [0, 0, 1, 1], [], []>} : vector<2x32xf32>, vector<32x32xf32>, vector<2x32xf32> -> vector<2x32xf32>
    %cst_103 = arith.constant dense<0.000000e+00> : vector<2x32xf32>
    %201 = tpu.matmul %193, %5, %cst_103 {dimension_numbers = #tpu.dot_dimension_numbers<[1], [0], [0], [1], [0, 0, 1, 1], [], []>} : vector<2x32xf32>, vector<32x32xf32>, vector<2x32xf32> -> vector<2x32xf32>
    %cst_104 = arith.constant dense<0.000000e+00> : vector<2x32xf32>
    %202 = tpu.matmul %193, %6, %cst_104 {dimension_numbers = #tpu.dot_dimension_numbers<[1], [0], [0], [1], [0, 0, 1, 1], [], []>} : vector<2x32xf32>, vector<32x32xf32>, vector<2x32xf32> -> vector<2x32xf32>
    %203 = vector.broadcast %7 : vector<1x32xf32> to vector<2x32xf32>
    %204 = arith.addf %202, %203 : vector<2x32xf32>
    %205 = arith.addf %195, %200 : vector<2x32xf32>
    %206 = arith.negf %205 : vector<2x32xf32>
    %207 = math.exp %206 : vector<2x32xf32>
    %cst_105 = arith.constant 1.000000e+00 : f32
    %208 = vector.broadcast %cst_105 : f32 to vector<2x32xf32>
    %209 = arith.addf %208, %207 : vector<2x32xf32>
    %210 = arith.divf %208, %209 : vector<2x32xf32>
    %211 = arith.addf %197, %201 : vector<2x32xf32>
    %212 = arith.negf %211 : vector<2x32xf32>
    %213 = math.exp %212 : vector<2x32xf32>
    %cst_106 = arith.constant 1.000000e+00 : f32
    %214 = vector.broadcast %cst_106 : f32 to vector<2x32xf32>
    %215 = arith.addf %214, %213 : vector<2x32xf32>
    %216 = arith.divf %214, %215 : vector<2x32xf32>
    %217 = arith.mulf %210, %204 : vector<2x32xf32>
    %218 = arith.addf %199, %217 : vector<2x32xf32>
    %219 = math.tanh %218 : vector<2x32xf32>
    %cst_107 = arith.constant 1.000000e+00 : f32
    %220 = vector.broadcast %cst_107 : f32 to vector<2x32xf32>
    %221 = arith.subf %220, %216 : vector<2x32xf32>
    %222 = arith.mulf %221, %219 : vector<2x32xf32>
    %223 = arith.mulf %216, %193 : vector<2x32xf32>
    %224 = arith.addf %222, %223 : vector<2x32xf32>
    %c0_108 = arith.constant 0 : index
    %c7 = arith.constant 7 : index
    %c0_109 = arith.constant 0 : index
    %225 = vector.load %arg1[%c0_108, %c7, %c0_109] : memref<2x8x32xf32, #tpu.memory_space<vmem>>, vector<2x1x32xf32>
    %226 = vector.shape_cast %225 : vector<2x1x32xf32> to vector<2x32xf32>
    %c0_110 = arith.constant 0 : index
    %c7_111 = arith.constant 7 : index
    %c0_112 = arith.constant 0 : index
    %227 = vector.load %arg2[%c0_110, %c7_111, %c0_112] : memref<2x8x32xf32, #tpu.memory_space<vmem>>, vector<2x1x32xf32>
    %228 = vector.shape_cast %227 : vector<2x1x32xf32> to vector<2x32xf32>
    %c0_113 = arith.constant 0 : index
    %c7_114 = arith.constant 7 : index
    %c0_115 = arith.constant 0 : index
    %229 = vector.load %arg3[%c0_113, %c7_114, %c0_115] : memref<2x8x32xf32, #tpu.memory_space<vmem>>, vector<2x1x32xf32>
    %230 = vector.shape_cast %229 : vector<2x1x32xf32> to vector<2x32xf32>
    %cst_116 = arith.constant dense<0.000000e+00> : vector<2x32xf32>
    %231 = tpu.matmul %224, %4, %cst_116 {dimension_numbers = #tpu.dot_dimension_numbers<[1], [0], [0], [1], [0, 0, 1, 1], [], []>} : vector<2x32xf32>, vector<32x32xf32>, vector<2x32xf32> -> vector<2x32xf32>
    %cst_117 = arith.constant dense<0.000000e+00> : vector<2x32xf32>
    %232 = tpu.matmul %224, %5, %cst_117 {dimension_numbers = #tpu.dot_dimension_numbers<[1], [0], [0], [1], [0, 0, 1, 1], [], []>} : vector<2x32xf32>, vector<32x32xf32>, vector<2x32xf32> -> vector<2x32xf32>
    %cst_118 = arith.constant dense<0.000000e+00> : vector<2x32xf32>
    %233 = tpu.matmul %224, %6, %cst_118 {dimension_numbers = #tpu.dot_dimension_numbers<[1], [0], [0], [1], [0, 0, 1, 1], [], []>} : vector<2x32xf32>, vector<32x32xf32>, vector<2x32xf32> -> vector<2x32xf32>
    %234 = vector.broadcast %7 : vector<1x32xf32> to vector<2x32xf32>
    %235 = arith.addf %233, %234 : vector<2x32xf32>
    %236 = arith.addf %226, %231 : vector<2x32xf32>
    %237 = arith.negf %236 : vector<2x32xf32>
    %238 = math.exp %237 : vector<2x32xf32>
    %cst_119 = arith.constant 1.000000e+00 : f32
    %239 = vector.broadcast %cst_119 : f32 to vector<2x32xf32>
    %240 = arith.addf %239, %238 : vector<2x32xf32>
    %241 = arith.divf %239, %240 : vector<2x32xf32>
    %242 = arith.addf %228, %232 : vector<2x32xf32>
    %243 = arith.negf %242 : vector<2x32xf32>
    %244 = math.exp %243 : vector<2x32xf32>
    %cst_120 = arith.constant 1.000000e+00 : f32
    %245 = vector.broadcast %cst_120 : f32 to vector<2x32xf32>
    %246 = arith.addf %245, %244 : vector<2x32xf32>
    %247 = arith.divf %245, %246 : vector<2x32xf32>
    %248 = arith.mulf %241, %235 : vector<2x32xf32>
    %249 = arith.addf %230, %248 : vector<2x32xf32>
    %250 = math.tanh %249 : vector<2x32xf32>
    %cst_121 = arith.constant 1.000000e+00 : f32
    %251 = vector.broadcast %cst_121 : f32 to vector<2x32xf32>
    %252 = arith.subf %251, %247 : vector<2x32xf32>
    %253 = arith.mulf %252, %250 : vector<2x32xf32>
    %254 = arith.mulf %247, %224 : vector<2x32xf32>
    %255 = arith.addf %253, %254 : vector<2x32xf32>
    %c0_122 = arith.constant 0 : index
    %c0_123 = arith.constant 0 : index
    %256 = vector.load %arg9[%c0_122, %c0_123] : memref<2x32xf32, #tpu.memory_space<vmem>>, vector<2x32xf32>
    tpu.vector_store %arg9[%c0_122, %c0_123], %255 {strides = array<i32>} : memref<2x32xf32, #tpu.memory_space<vmem>>, vector<2x32xf32>,
    %c0_124 = arith.constant 0 : index
    %c0_125 = arith.constant 0 : index
    %257 = vector.load %arg8[%c0_124, %c0_125] : memref<2x32xf32, #tpu.memory_space<vmem>>, vector<2x32xf32>
    tpu.vector_store %arg8[%c0_124, %c0_125], %255 {strides = array<i32>} : memref<2x32xf32, #tpu.memory_space<vmem>>, vector<2x32xf32>,
    return
  }
  func.func @transform_0(%arg0: i32) -> (i32, i32, i32) {
    %c0_i32 = arith.constant 0 : i32
    %c0_i32_0 = arith.constant 0 : i32
    %c0_i32_1 = arith.constant 0 : i32
    return %c0_i32, %arg0, %c0_i32_0 : i32, i32, i32
  }
  func.func @transform_1(%arg0: i32) -> (i32, i32, i32) {
    %c0_i32 = arith.constant 0 : i32
    %c0_i32_0 = arith.constant 0 : i32
    %c0_i32_1 = arith.constant 0 : i32
    return %c0_i32, %arg0, %c0_i32_0 : i32, i32, i32
  }
  func.func @transform_2(%arg0: i32) -> (i32, i32, i32) {
    %c0_i32 = arith.constant 0 : i32
    %c0_i32_0 = arith.constant 0 : i32
    %c0_i32_1 = arith.constant 0 : i32
    return %c0_i32, %arg0, %c0_i32_0 : i32, i32, i32
  }
  func.func @transform_3(%arg0: i32) -> (i32, i32) {
    %c0_i32 = arith.constant 0 : i32
    %c0_i32_0 = arith.constant 0 : i32
    %c0_i32_1 = arith.constant 0 : i32
    return %c0_i32, %c0_i32_0 : i32, i32
  }
  func.func @transform_4(%arg0: i32) -> (i32, i32) {
    %c0_i32 = arith.constant 0 : i32
    %c0_i32_0 = arith.constant 0 : i32
    %c0_i32_1 = arith.constant 0 : i32
    return %c0_i32, %c0_i32_0 : i32, i32
  }
  func.func @transform_5(%arg0: i32) -> (i32, i32) {
    %c0_i32 = arith.constant 0 : i32
    %c0_i32_0 = arith.constant 0 : i32
    %c0_i32_1 = arith.constant 0 : i32
    return %c0_i32, %c0_i32_0 : i32, i32
  }
  func.func @transform_6(%arg0: i32) -> (i32, i32) {
    %c0_i32 = arith.constant 0 : i32
    %c0_i32_0 = arith.constant 0 : i32
    %c0_i32_1 = arith.constant 0 : i32
    return %c0_i32, %c0_i32_0 : i32, i32
  }
  func.func @transform_7(%arg0: i32) -> (i32, i32) {
    %c0_i32 = arith.constant 0 : i32
    %c0_i32_0 = arith.constant 0 : i32
    %c0_i32_1 = arith.constant 0 : i32
    return %c0_i32, %c0_i32_0 : i32, i32
  }
}

</mosaic_0001>

<bundles_post_ra>
// kernel: custom_rnn_forward.2
= control target key start
LH: loop header
LB: loop body
LE: loop exit
PB: predicated region body
PF: predicated region fallthrough
CT: control target
= control target key end

     0   :  { %s2381_s24 = smov 0   ;;  %s2383_s25 = smov 0   ;;  %s3075_s0 = inlined_call_operand.vmem [shape: f32[2,16,32], index: 0, kind: input, shape index: {}]   ;;  %s3076_s1 = inlined_call_operand.vmem [shape: f32[2,16,32], index: 1, kind: input, shape index: {}]   ;;  %s3077_s2 = inlined_call_operand.vmem [shape: f32[2,16,32], index: 2, kind: input, shape index: {}]   ;;  %s3078_s3 = inlined_call_operand.vmem [shape: f32[32,32], index: 3, kind: input, shape index: {}]   ;;  %s3079_s4 = inlined_call_operand.vmem [shape: f32[32,32], index: 4, kind: input, shape index: {}]   ;;  %s3080_s5 = inlined_call_operand.vmem [shape: f32[32,32], index: 5, kind: input, shape index: {}]   ;;  %s3081_s6 = inlined_call_operand.vmem [shape: f32[1,32], index: 6, kind: input, shape index: {}]   ;;  %s3082_s7 = inlined_call_operand.vmem [shape: f32[2,16,32], index: 7, kind: output, shape index: {}]  }
   0x1   :  { %s2385_s26 = smov 0  }
   0x2 LB: > { %s2397_s27 = sadd.s32 4294967295, %s2338_s26   ;;  %s2400_s28 = sadd.s32 1, %s2338_s26   ;;  %s2338_s26 = sphi %s2385_s26, %s3091_s26   ;;  %s2334_s25 = sphi %s2383_s25, %s3090_s25   ;;  %s2330_s24 = sphi %s2381_s24, %s3089_s24  }
   0x3   : > { %s21_s29 = ssub.s32 %s2338_s26, %s2400_s28  ;;  %s24_s30 = sadd.s32 1, %s2334_s25 }
   0x4   : > { %p22_p0 = scmp.eq.s32.totalorder %s21_s29, 0  ;;  %p31_p1 = scmp.ne.s32.totalorder %s2334_s25, %s2330_s24 }
   0x5   : > { %p32_p2 = scmp.eq.s32.totalorder %s2338_s26, 0  ;;  %p197_p3 = scmp.eq.s32.totalorder %s2397_s27, 1 }
   0x6   : > { %s2410_s8 = scalar_select %p22_p0, %s2334_s25, %s24_s30  }
   0x7   : > { %p2412_p4 = por %p32_p2, %p31_p1  ;;  %p2416_p5 = por %p197_p3, %p31_p1 }
   0x8   : > { %p2044_p6 = scmp.ge.s32.totalorder %s2338_s26, 2 }
   0xa   : > { %231 = sbr.rel (%p2044_p6) target bundleno = 33 (0x21), region = 32 }
   0xf   : > { %234 = sbr.rel (!%p2412_p4) target bundleno = 21 (0x15), region = 36  ;;  %s236_s11 = sand.u32 (%p2412_p4), 1, %s2334_s25  }
  0x10   : > { %s2046_s12 = sshll.u32 (%p2412_p4), %s2338_s26, 3  ;;  %s2045_s13 = sshll.u32 (%p2412_p4), %s236_s11, 4 }
  0x11   : > { %s240_s16 = scalar_lea.vmem (%p2412_p4), %s3075_s0, %s2046_s12  ;;  %s238_s17 = scalar_lea.vmem (%p2412_p4), [#allocation3], %s2045_s13 }
  0x12   : > { %v271_v0 = vld [vmem:[%s240_s16] sm:$0xff] (%p2412_p4)  ;;  %v273_v1 = vld [vmem:[%s240_s16 + $0x10] sm:$0xff] (%p2412_p4) }
  0x13   : > { %272 = vst [vmem:[%s238_s17] sm:$0xff] (%p2412_p4), %v271_v0 }
  0x14   : > { %274 = vst [vmem:[%s238_s17 + $0x8] sm:$0xff] %v273_v1 }
  0x15 PF: > { %280 = sbr.rel (!%p2412_p4) target bundleno = 27 (0x1b), region = 74  ;;  %s282_s18 = sand.u32 (%p2412_p4), 1, %s2334_s25  }
  0x16   : > { %s2048_s19 = sshll.u32 (%p2412_p4), %s2338_s26, 3  ;;  %s2047_s20 = sshll.u32 (%p2412_p4), %s282_s18, 4 }
  0x17   : > { %s286_s23 = scalar_lea.vmem (%p2412_p4), %s3076_s1, %s2048_s19  ;;  %s284_s29 = scalar_lea.vmem (%p2412_p4), [#allocation4], %s2047_s20 }
  0x18   : > { %v317_v2 = vld [vmem:[%s286_s23] sm:$0xff] (%p2412_p4)  ;;  %v319_v3 = vld [vmem:[%s286_s23 + $0x10] sm:$0xff] (%p2412_p4) }
  0x19   : > { %318 = vst [vmem:[%s284_s29] sm:$0xff] (%p2412_p4), %v317_v2 }
  0x1a   : > { %320 = vst [vmem:[%s284_s29 + $0x8] sm:$0xff] %v319_v3 }
  0x1b PF: > { %326 = sbr.rel (!%p2412_p4) target bundleno = 33 (0x21), region = 112  ;;  %s328_s30 = sand.u32 (%p2412_p4), 1, %s2334_s25  }
  0x1c   : > { %s2050_s11 = sshll.u32 (%p2412_p4), %s2338_s26, 3  ;;  %s2049_s12 = sshll.u32 (%p2412_p4), %s328_s30, 4 }
  0x1d   : > { %s332_s15 = scalar_lea.vmem (%p2412_p4), %s3077_s2, %s2050_s11  ;;  %s330_s16 = scalar_lea.vmem (%p2412_p4), [#allocation5], %s2049_s12 }
  0x1e   : > { %v363_v4 = vld [vmem:[%s332_s15] sm:$0xff] (%p2412_p4)  ;;  %v365_v5 = vld [vmem:[%s332_s15 + $0x10] sm:$0xff] (%p2412_p4) }
  0x1f   : > { %364 = vst [vmem:[%s330_s16] sm:$0xff] (%p2412_p4), %v363_v4 }
  0x20   : > { %366 = vst [vmem:[%s330_s16 + $0x8] sm:$0xff] %v365_v5 }
  0x21 PF: > { %p2051_p7 = scmp.ge.s32.totalorder %s2338_s26, 1  ;;  %p371_p8 = scmp.lt.s32.totalorder %s2338_s26, 3 }
  0x23   : > { %p372_p9 = pnand %p2051_p7, %p371_p8 }
  0x24   : > { %s378_s9 = sand.u32 (!%p372_p9), 1, %s2330_s24   ;;  %p2056_p10 = scmp.ne.s32.totalorder (!%p372_p9), %s2397_s27, 0 }
  0x25   : > { %375 = sbr.rel (%p372_p9) target bundleno = 1495 (0x5d7), region = 150  ;;  %s2052_s17 = sshll.u32 (!%p372_p9), %s378_s9, 4 }
  0x26   : > { %s2445_s18 = scalar_lea.vmem (!%p372_p9), [#allocation3], %s2052_s17  ;;  %s2447_s19 = scalar_lea.vmem (!%p372_p9), [#allocation4], %s2052_s17 }
  0x27   : > { %s2449_s20 = scalar_lea.vmem (!%p372_p9), [#allocation5], %s2052_s17  ;;  %s2451_s21 = scalar_lea.vmem (!%p372_p9), [#allocation6], %s2052_s17 }
  0x2a   : > { %433 = sbr.rel (%p2056_p10) target bundleno = 49 (0x31), region = 166 }
  0x2f   : > { %vm434_vm0 = vcmask 254976   ;;  %v2340_v6 = vmov 0.0  }
  0x30   : > { %435 = vst.msk [vmem:[#allocation2] sm:$0x3] %vm434_vm0, %v2340_v6 }
  0x31 PF: > { %v2457_v7 = vld [vmem:[%s3078_s3 + $0x18] sm:$0xff]  ;;  %v2467_v9 = vld [vmem:[%s3078_s3 + $0x10] sm:$0xff]  ;;  %v2479_v11 = vld [vmem:[%s3078_s3 + $0x8] sm:$0xff]  ;;  %vm456_vm1 = vcmask 261120  }
  0x32   : > { %v2462_v8 = vld [vmem:[%s3079_s4 + $0x18] sm:$0xff]  ;;  %472 = vmatpush.msra.mxu0 %v2457_v7  ;;  %v2474_v10 = vld [vmem:[%s3079_s4 + $0x10] sm:$0xff]  ;;  %v2484_v12 = vld [vmem:[%s3079_s4 + $0x8] sm:$0xff]  ;;  %660 = vmatpush.msra.mxu3 %v2457_v7 }
  0x33   : > { %492 = vmatpush.msra.mxu1 %v2462_v8  ;;  %v2492_v13 = vld [vmem:[%s3080_s5 + $0x18] sm:$0xff]  ;;  %v2497_v14 = vld [vmem:[%s3080_s5 + $0x10] sm:$0xff]  ;;  %v2502_v15 = vld [vmem:[%s3078_s3] sm:$0xff] }
  0x34   : > { %473 = vmatpush.msra.mxu0 %v2467_v9  ;;  %v2507_v16 = vld [vmem:[%s3079_s4] sm:$0xff]  ;;  %515 = vmatpush.msra.mxu2 %v2492_v13  ;;  %v2519_v18 = vld [vmem:[%s3080_s5 + $0x8] sm:$0xff] }
  0x35   : > { %493 = vmatpush.msra.mxu1 %v2474_v10  ;;  %661 = vmatpush.msra.mxu3 %v2467_v9  ;;  %v2531_v19 = vld [vmem:[%s3080_s5] sm:$0xff]  ;;  %v451_v22 = vld [vmem:[%s2445_s18 + $0x8] sm:$0x1] }
  0x36   : > { %474 = vmatpush.msra.mxu0 %v2479_v11  ;;  %516 = vmatpush.msra.mxu2 %v2497_v14  ;;  %v450_v20 = vld [vmem:[%s2445_s18] sm:$0x1]  ;;  %v453_v24 = vld [vmem:[%s2447_s19 + $0x8] sm:$0x1]  ;;  %v2579_v44 = vld [vmem:[%s3081_s6] ss:$0 sm:$0xff] }
  0x37   : > { %494 = vmatpush.msra.mxu1 %v2484_v12  ;;  %v2513_v17 = vld [vmem:[#allocation2] sm:$0x3]  ;;  %662 = vmatpush.msra.mxu3 %v2479_v11  ;;  %v452_v21 = vld [vmem:[%s2447_s19] sm:$0x1] }
  0x38   : > { %475 = vmatpush.msra.mxu0 %v2502_v15  ;;  %517 = vmatpush.msra.mxu2 %v2519_v18 }
  0x39   : > { %495 = vmatpush.msra.mxu1 %v2507_v16  ;;  %2057 = vmatmul.msk.f32.vlgmr.msra.gmra.mxu0 %vm456_vm1, %v2513_v17 }
  0x3a   : > { %2058 = vmatmul.msk.f32.vlgmr.msra.gmra.mxu1 %vm456_vm1, %v2513_v17  ;;  %680 = vmatpush.msrb.mxu0 %v2462_v8 }
  0x3b   : > { %700 = vmatpush.msrb.mxu1 %v2492_v13  ;;  %663 = vmatpush.msra.mxu3 %v2502_v15 }
  0x3c   : > { %518 = vmatpush.msra.mxu2 %v2531_v19  ;;  %681 = vmatpush.msrb.mxu0 %v2474_v10 }
  0x3d   : > { %2059 = vmatmul.msk.f32.vlgmr.msra.gmra.mxu2 %vm456_vm1, %v2513_v17  ;;  %701 = vmatpush.msrb.mxu1 %v2497_v14 }
  0x3e   : > { %682 = vmatpush.msrb.mxu0 %v2484_v12  ;;  %840 = vmatpush.msrb.mxu2 %v2457_v7 }
  0x3f   : > { %702 = vmatpush.msrb.mxu1 %v2519_v18  ;;  %860 = vmatpush.msrb.mxu3 %v2462_v8 }
  0x40   : > { %683 = vmatpush.msrb.mxu0 %v2507_v16  ;;  %841 = vmatpush.msrb.mxu2 %v2467_v9 }
  0x41   : > { %703 = vmatpush.msrb.mxu1 %v2531_v19  ;;  %861 = vmatpush.msrb.mxu3 %v2474_v10 }
  0x42   : > { %880 = vmatpush.msra.mxu0 %v2492_v13  ;;  %842 = vmatpush.msrb.mxu2 %v2479_v11 }
  0x43   : > { %1020 = vmatpush.msra.mxu1 %v2457_v7  ;;  %862 = vmatpush.msrb.mxu3 %v2484_v12 }
  0x44   : > { %881 = vmatpush.msra.mxu0 %v2497_v14  ;;  %843 = vmatpush.msrb.mxu2 %v2502_v15 }
  0x45   : > { %863 = vmatpush.msrb.mxu3 %v2507_v16  ;;  %1021 = vmatpush.msra.mxu1 %v2467_v9 }
  0x46   : > { %882 = vmatpush.msra.mxu0 %v2519_v18  ;;  %1040 = vmatpush.msra.mxu2 %v2462_v8 }
  0x47   : > { %1022 = vmatpush.msra.mxu1 %v2479_v11 }
  0x48   : > { %883 = vmatpush.msra.mxu0 %v2531_v19  ;;  %1041 = vmatpush.msra.mxu2 %v2474_v10 }
  0x49   : > { %1023 = vmatpush.msra.mxu1 %v2502_v15 }
  0x4a   : > { %1042 = vmatpush.msra.mxu2 %v2484_v12 }
  0x4c   : > { %1043 = vmatpush.msra.mxu2 %v2507_v16 }
  0xb6   : > { %v477_v23 = vpop.f32.mrf.mxu0 }
  0xb7   : > { %v497_v25 = vpop.f32.mrf.mxu1  ;;  %v524_v26 = vrot.slane %v477_v23, 1  ;;  %v527_v27 = vadd.f32 %v477_v23, %v450_v20 }
  0xb8   : > { %v568_v28 = vrot.slane %v497_v25, 1  ;;  %v571_v29 = vadd.f32 %v497_v25, %v452_v21  ;;  %v454_v21 = vld [vmem:[%s2449_s20] sm:$0x1] }
  0xb9   : > { %v528_v30 = vadd.f32 %v524_v26, %v451_v22  ;;  %v2060_v31 = vmul.f32 -1.442695, %v527_v27 }
  0xba   : > { %v572_v32 = vadd.f32 %v568_v28, %v453_v24  ;;  %v2062_v33 = vmul.f32 -1.442695, %v571_v29  ;;  %v455_v28 = vld [vmem:[%s2449_s20 + $0x8] sm:$0x1] }
  0xbb   : > { %2143 = vpow2.f32 %v2060_v31  ;;  %v2061_v34 = vmul.f32 -1.442695, %v528_v30 }
  0xbc   : > { %v2063_v35 = vmul.f32 -1.442695, %v572_v32  ;;  %2145 = vpow2.f32 %v2062_v33 }
  0xbd   : > { %2147 = vpow2.f32 %v2061_v34 }
  0xbe   : > { %2149 = vpow2.f32 %v2063_v35 }
  0xc0   : > { %v520_v45 = vpop.f32.mrf.mxu2 }
  0xc1   : > { %v2144_v36 = vpop.eup %2143  ;;  %v521_v48 = vadd.f32 %v2579_v44, %v520_v45 }
  0xc2   : > { %v2146_v37 = vpop.eup %2145  ;;  %v535_v38 = vadd.f32 1.0, %v2144_v36 }
  0xc3   : > { %v2148_v39 = vpop.eup %2147  ;;  %v2570_v40 = vadd.f32 1.0, %v2146_v37  ;;  %v612_v61 = vrot.slane %v521_v48, 1 }
  0xc4   : > { %v2150_v41 = vpop.eup %2149  ;;  %v536_v42 = vadd.f32 1.0, %v2148_v39  ;;  %2151 = vrcp.f32 %v535_v38  ;;  %v546_v57 = vand.u32 2147483647, %v535_v38  ;;  %v548_v58 = vand.u32 2147483648, %v535_v38 }
  0xc5   : > { %v2572_v43 = vadd.f32 1.0, %v2150_v41  ;;  %2153 = vrcp.f32 %v2570_v40  ;;  %vm542_vm3 = vweird.f32 %v535_v38  ;;  %vm586_vm7 = vweird.f32 %v2570_v40 }
  0xc6   : > { %2155 = vrcp.f32 %v536_v42  ;;  %v563_v63 = vand.u32 2147483648, %v536_v42  ;;  %v561_v3 = vand.u32 2147483647, %v536_v42  ;;  %vm547_vm6 = vcmp.eq.f32.partialorder %v546_v57, 8.507059e+37  ;;  %v638_v57 = vld [vmem:[%s2447_s19 + $0x9] sm:$0x1] }
  0xc7   : > { %2157 = vrcp.f32 %v2572_v43  ;;  %v549_v5 = vor.u32 1.1754944e-38, %v548_v58  ;;  %vm601_vm8 = vweird.f32 %v2572_v43  ;;  %vm557_vm9 = vweird.f32 %v536_v42 }
  0xc8   : > { %v564_v23 = vor.u32 1.1754944e-38, %v563_v63  ;;  %vm562_vm12 = vcmp.eq.f32.partialorder %v561_v3, 8.507059e+37  ;;  %v592_v27 = vand.u32 2147483648, %v2570_v40  ;;  %v590_v30 = vand.u32 2147483647, %v2570_v40 }
  0xc9   : > { %v607_v34 = vand.u32 2147483648, %v2572_v43  ;;  %v605_v36 = vand.u32 2147483647, %v2572_v43  ;;  %v635_v63 = vld [vmem:[%s2445_s18 + $0x1] sm:$0x1] }
  0xca   : > { %v2152_v46 = vpop.eup %2151  ;;  %vm591_vm0 = vcmp.eq.f32.partialorder %v590_v30, 8.507059e+37 }
  0xcb   : > { %v2581_v47 = vpop.eup %2153  ;;  %v538_v49 = vmul.f32 %v2152_v46, %v535_v38  ;;  %vm543_vm2 = vweird.f32 %v2152_v46  ;;  %v593_v38 = vor.u32 1.1754944e-38, %v592_v27 }
  0xcc   : > { %v2156_v50 = vpop.eup %2155  ;;  %v582_v51 = vmul.f32 %v2581_v47, %v2570_v40  ;;  %vm544_vm5 = vmor %vm542_vm3, %vm543_vm2  ;;  %vm587_vm11 = vweird.f32 %v2581_v47  ;;  %vm606_vm2 = vcmp.eq.f32.partialorder %v605_v36, 8.507059e+37  ;;  %vm632_vm3 = vcmask 253952  }
  0xcd   : > { %v2158_v52 = vpop.eup %2157  ;;  %v539_v53 = vsub.f32 1.0, %v538_v49  ;;  %v553_v54 = vmul.f32 %v2156_v50, %v536_v42  ;;  %vm558_vm4 = vweird.f32 %v2156_v50  ;;  %vm588_vm14 = vmor %vm586_vm7, %vm587_vm11  ;;  %v608_v42 = vor.u32 1.1754944e-38, %v607_v34 }
  0xce   : > { %v583_v55 = vsub.f32 1.0, %v582_v51  ;;  %v597_v56 = vmul.f32 %v2158_v52, %v2572_v43  ;;  %vm559_vm10 = vmor %vm557_vm9, %vm558_vm4  ;;  %vm602_vm13 = vweird.f32 %v2158_v52  ;;  %vm644_vm4 = vcmask 1041409  }
  0xcf   : > { %v540_v59 = vmul.f32 %v2152_v46, %v539_v53  ;;  %v554_v60 = vsub.f32 1.0, %v553_v54  ;;  %vm603_vm15 = vmor %vm601_vm8, %vm602_vm13 }
  0xd0   : > { %v598_v62 = vsub.f32 1.0, %v597_v56  ;;  %v584_v0 = vmul.f32 %v2581_v47, %v583_v55  ;;  %v637_v56 = vld [vmem:[%s2447_s19 + $0x1] sm:$0x1] }
  0xd1   : > { %v541_v1 = vadd.f32 %v2152_v46, %v540_v59  ;;  %v555_v2 = vmul.f32 %v2156_v50, %v554_v60 }
  0xd2   : > { %v599_v4 = vmul.f32 %v2158_v52, %v598_v62  ;;  %v585_v24 = vadd.f32 %v2581_v47, %v584_v0 }
  0xd3   : > { %v545_v6 = vsel %vm544_vm5, %v2152_v46, %v541_v1  ;;  %v556_v20 = vadd.f32 %v2156_v50, %v555_v2  ;;  %v625_v46 = vrot.slane %v2513_v17, 1  ;;  %v636_v1 = vld [vmem:[%s2445_s18 + $0x9] sm:$0x1] }
  0xd4   : > { %v550_v22 = vsel %vm547_vm6, %v549_v5, %v545_v6  ;;  %v600_v31 = vadd.f32 %v2158_v52, %v599_v4  ;;  %v589_v35 = vsel %vm588_vm14, %v2581_v47, %v585_v24 }
  0xd5   : > { %v560_v25 = vsel %vm559_vm10, %v2156_v50, %v556_v20  ;;  %v615_v26 = vmul.f32 %v550_v22, %v521_v48  ;;  %v594_v41 = vsel %vm591_vm0, %v593_v38, %v589_v35 }
  0xd6   : > { %v565_v29 = vsel %vm562_vm12, %v564_v23, %v560_v25  ;;  %v604_v39 = vsel %vm603_vm15, %v2158_v52, %v600_v31  ;;  %v621_v45 = vsub.f32 1.0, %v594_v41  ;;  %v628_v50 = vmul.f32 %v594_v41, %v2513_v17 }
  0xd7   : > { %v616_v32 = vmul.f32 %v612_v61, %v565_v29  ;;  %v617_v33 = vadd.f32 %v615_v26, %v454_v21  ;;  %v609_v40 = vsel %vm606_vm2, %v608_v42, %v604_v39 }
  0xd8   : > { %v622_v48 = vsub.f32 1.0, %v609_v40  ;;  %v629_v53 = vmul.f32 %v625_v46, %v609_v40 }
  0xd9   : > { %v618_v37 = vadd.f32 %v616_v32, %v455_v28  ;;  %2159 = vtanh.f32 %v617_v33 }
  0xdb   : > { %2161 = vtanh.f32 %v618_v37 }
  0xdf   : > { %v2160_v47 = vpop.eup %2159 }
  0xe0   : > { %v623_v49 = vmul.f32 %v2160_v47, %v621_v45 }
  0xe1   : > { %v2162_v51 = vpop.eup %2161 }
  0xe2   : > { %v624_v43 = vmul.f32 %v2162_v51, %v622_v48  ;;  %v2605_v52 = vadd.f32 %v628_v50, %v623_v49 }
  0xe4   : > { %v2607_v54 = vadd.f32 %v629_v53, %v624_v43  ;;  %633 = vst.msk [vmem:[%s2451_s21] sm:$0x1] %vm632_vm3, %v2605_v52 }
  0xe6   : > { %634 = vst.msk [vmem:[%s2451_s21 + $0x8] sm:$0x1] %vm632_vm3, %v2607_v54  ;;  %v643_v55 = vrot.slane %v2607_v54, 7 }
  0xe8   : > { %v645_v17 = vsel %vm644_vm4, %v643_v55, %v2605_v52 }
  0xe9   : > { %2064 = vmatmul.msk.f32.vlgmr.msra.gmra.mxu3 %vm456_vm1, %v645_v17  ;;  %2065 = vmatmul.msk.f32.vlgmr.msrb.gmra.mxu0 %vm456_vm1, %v645_v17 }
  0xea   : > { %2066 = vmatmul.msk.f32.vlgmr.msrb.gmra.mxu1 %vm456_vm1, %v645_v17  ;;  %1060 = vmatpush.msra.mxu3 %v2492_v13 }
  0xeb   : > { %1200 = vmatpush.msrb.mxu0 %v2457_v7  ;;  %1220 = vmatpush.msrb.mxu1 %v2462_v8 }
  0xec   : > { %1061 = vmatpush.msra.mxu3 %v2497_v14 }
  0xed   : > { %1201 = vmatpush.msrb.mxu0 %v2467_v9  ;;  %1221 = vmatpush.msrb.mxu1 %v2474_v10 }
  0xee   : > { %1062 = vmatpush.msra.mxu3 %v2519_v18 }
  0xef   : > { %1202 = vmatpush.msrb.mxu0 %v2479_v11  ;;  %1222 = vmatpush.msrb.mxu1 %v2484_v12 }
  0xf0   : > { %1063 = vmatpush.msra.mxu3 %v2531_v19 }
  0xf1   : > { %1203 = vmatpush.msrb.mxu0 %v2502_v15  ;;  %1223 = vmatpush.msrb.mxu1 %v2507_v16 }
 0x166   : > { %v685_v58 = vpop.f32.mrf.mxu0 }
 0x167   : > { %v753_v59 = vrot.slane %v685_v58, 1  ;;  %v756_v60 = vadd.f32 %v685_v58, %v637_v56  ;;  %v705_v34 = vpop.f32.mrf.mxu1 }
 0x168   : > { %v706_v42 = vadd.f32 %v2579_v44, %v705_v34 }
 0x169   : > { %v757_v61 = vadd.f32 %v753_v59, %v638_v57  ;;  %v2069_v62 = vmul.f32 -1.442695, %v756_v60  ;;  %v639_v60 = vld [vmem:[%s2449_s20 + $0x1] sm:$0x1] }
 0x16a   : > { %v797_v55 = vrot.slane %v706_v42, 1 }
 0x16b   : > { %2163 = vpow2.f32 %v2069_v62  ;;  %v2070_v0 = vmul.f32 -1.442695, %v757_v61 }
 0x16c   : > { %v665_v2 = vpop.f32.mrf.mxu3 }
 0x16d   : > { %2165 = vpow2.f32 %v2070_v0  ;;  %v709_v3 = vrot.slane %v665_v2, 1  ;;  %v712_v4 = vadd.f32 %v665_v2, %v635_v63  ;;  %v640_v2 = vld [vmem:[%s2449_s20 + $0x9] sm:$0x1] }
 0x16f   : > { %v713_v5 = vadd.f32 %v709_v3, %v636_v1  ;;  %v2067_v6 = vmul.f32 -1.442695, %v712_v4 }
 0x171   : > { %v2164_v20 = vpop.eup %2163  ;;  %2167 = vpow2.f32 %v2067_v6  ;;  %v2068_v21 = vmul.f32 -1.442695, %v713_v5 }
 0x172   : > { %v2637_v22 = vadd.f32 1.0, %v2164_v20 }
 0x173   : > { %v2166_v23 = vpop.eup %2165  ;;  %2169 = vpow2.f32 %v2068_v21 }
 0x174   : > { %v2639_v24 = vadd.f32 1.0, %v2166_v23  ;;  %2171 = vrcp.f32 %v2637_v22  ;;  %vm771_vm9 = vweird.f32 %v2637_v22  ;;  %v777_v63 = vand.u32 2147483648, %v2637_v22 }
 0x175   : > { %v775_v3 = vand.u32 2147483647, %v2637_v22 }
 0x176   : > { %2173 = vrcp.f32 %v2639_v24  ;;  %v792_v5 = vand.u32 2147483648, %v2639_v24  ;;  %vm786_vm2 = vweird.f32 %v2639_v24  ;;  %v790_v23 = vand.u32 2147483647, %v2639_v24 }
 0x177   : > { %v2168_v25 = vpop.eup %2167 }
 0x178   : > { %v720_v26 = vadd.f32 1.0, %v2168_v25  ;;  %v778_v25 = vor.u32 1.1754944e-38, %v777_v63 }
 0x179   : > { %v2170_v27 = vpop.eup %2169 }
 0x17a   : > { %v721_v28 = vadd.f32 1.0, %v2170_v27  ;;  %2175 = vrcp.f32 %v720_v26  ;;  %v2643_v29 = vpop.eup %2171  ;;  %v733_v40 = vand.u32 2147483648, %v720_v26  ;;  %v731_v46 = vand.u32 2147483647, %v720_v26 }
 0x17b   : > { %v767_v31 = vmul.f32 %v2643_v29, %v2637_v22  ;;  %vm727_vm6 = vweird.f32 %v720_v26  ;;  %vm772_vm13 = vweird.f32 %v2643_v29 }
 0x17c   : > { %2177 = vrcp.f32 %v721_v28  ;;  %v2645_v30 = vpop.eup %2173  ;;  %v748_v49 = vand.u32 2147483648, %v721_v28  ;;  %v746_v43 = vand.u32 2147483647, %v721_v28  ;;  %v734_v17 = vor.u32 1.1754944e-38, %v733_v40  ;;  %vm773_vm0 = vmor %vm771_vm9, %vm772_vm13 }
 0x17d   : > { %v782_v33 = vmul.f32 %v2645_v30, %v2639_v24  ;;  %v768_v37 = vsub.f32 1.0, %v767_v31  ;;  %vm732_vm10 = vcmp.eq.f32.partialorder %v731_v46, 8.507059e+37  ;;  %vm742_vm11 = vweird.f32 %v721_v28 }
 0x17e   : > { %v749_v59 = vor.u32 1.1754944e-38, %v748_v49  ;;  %vm747_vm14 = vcmp.eq.f32.partialorder %v746_v43, 8.507059e+37  ;;  %vm787_vm15 = vweird.f32 %v2645_v30 }
 0x17f   : > { %v783_v41 = vsub.f32 1.0, %v782_v33  ;;  %v769_v48 = vmul.f32 %v2643_v29, %v768_v37 }
 0x180   : > { %v2176_v32 = vpop.eup %2175 }
 0x181   : > { %v723_v35 = vmul.f32 %v2176_v32, %v720_v26  ;;  %vm728_vm5 = vweird.f32 %v2176_v32  ;;  %v784_v53 = vmul.f32 %v2645_v30, %v783_v41  ;;  %v770_v61 = vadd.f32 %v2643_v29, %v769_v48 }
 0x182   : > { %v2178_v36 = vpop.eup %2177  ;;  %vm729_vm8 = vmor %vm727_vm6, %vm728_vm5  ;;  %vm776_vm6 = vcmp.eq.f32.partialorder %v775_v3, 8.507059e+37 }
 0x183   : > { %v724_v38 = vsub.f32 1.0, %v723_v35  ;;  %v738_v39 = vmul.f32 %v2178_v36, %v721_v28  ;;  %vm743_vm7 = vweird.f32 %v2178_v36  ;;  %v785_v4 = vadd.f32 %v2645_v30, %v784_v53  ;;  %vm788_vm5 = vmor %vm786_vm2, %vm787_vm15 }
 0x184   : > { %vm744_vm12 = vmor %vm742_vm11, %vm743_vm7  ;;  %v774_v21 = vsel %vm773_vm0, %v2643_v29, %v770_v61  ;;  %v793_v28 = vor.u32 1.1754944e-38, %v792_v5  ;;  %vm791_vm7 = vcmp.eq.f32.partialorder %v790_v23, 8.507059e+37 }
 0x185   : > { %v725_v45 = vmul.f32 %v2176_v32, %v724_v38  ;;  %v739_v47 = vsub.f32 1.0, %v738_v39  ;;  %v789_v27 = vsel %vm788_vm5, %v2645_v30, %v785_v4  ;;  %v779_v31 = vsel %vm776_vm6, %v778_v25, %v774_v21 }
 0x186   : > { %v794_v22 = vsel %vm791_vm7, %v793_v28, %v789_v27  ;;  %v810_v24 = vmul.f32 %v779_v31, %v2605_v52  ;;  %v816_v52 = vld [vmem:[%s2445_s18 + $0x2] sm:$0x1] }
 0x187   : > { %v726_v50 = vadd.f32 %v2176_v32, %v725_v45  ;;  %v740_v51 = vmul.f32 %v2178_v36, %v739_v47  ;;  %v807_v34 = vsub.f32 1.0, %v794_v22  ;;  %v811_v37 = vmul.f32 %v794_v22, %v2607_v54  ;;  %v818_v54 = vld [vmem:[%s2447_s19 + $0x2] sm:$0x1]  ;;  %v819_v45 = vld [vmem:[%s2447_s19 + $0xa] sm:$0x1] }
 0x189   : > { %v730_v56 = vsel %vm729_vm8, %v2176_v32, %v726_v50  ;;  %v741_v57 = vadd.f32 %v2178_v36, %v740_v51  ;;  %v806_v32 = vsub.f32 1.0, %v779_v31 }
 0x18a   : > { %v735_v58 = vsel %vm732_vm10, %v734_v17, %v730_v56 }
 0x18b   : > { %v745_v62 = vsel %vm744_vm12, %v2178_v36, %v741_v57  ;;  %v800_v0 = vmul.f32 %v735_v58, %v706_v42  ;;  %v817_v42 = vld [vmem:[%s2445_s18 + $0xa] sm:$0x1] }
 0x18c   : > { %v750_v1 = vsel %vm747_vm14, %v749_v59, %v745_v62 }
 0x18d   : > { %v801_v6 = vmul.f32 %v797_v55, %v750_v1  ;;  %v802_v20 = vadd.f32 %v800_v0, %v639_v60 }
 0x18f   : > { %v803_v26 = vadd.f32 %v801_v6, %v640_v2  ;;  %2179 = vtanh.f32 %v802_v20 }
 0x191   : > { %2181 = vtanh.f32 %v803_v26 }
 0x195   : > { %v2180_v33 = vpop.eup %2179 }
 0x196   : > { %v808_v29 = vmul.f32 %v2180_v33, %v806_v32 }
 0x197   : > { %v2182_v35 = vpop.eup %2181 }
 0x198   : > { %v809_v36 = vmul.f32 %v2182_v35, %v807_v34  ;;  %v2672_v38 = vadd.f32 %v810_v24, %v808_v29 }
 0x19a   : > { %v2674_v30 = vadd.f32 %v811_v37, %v809_v36  ;;  %814 = vst.msk [vmem:[%s2451_s21 + $0x1] sm:$0x1] %vm632_vm3, %v2672_v38 }
 0x19c   : > { %815 = vst.msk [vmem:[%s2451_s21 + $0x9] sm:$0x1] %vm632_vm3, %v2674_v30  ;;  %v824_v39 = vrot.slane %v2674_v30, 7 }
 0x19e   : > { %v825_v41 = vsel %vm644_vm4, %v824_v39, %v2672_v38 }
 0x19f   : > { %2071 = vmatmul.msk.f32.vlgmr.msrb.gmra.mxu2 %vm456_vm1, %v825_v41  ;;  %2072 = vmatmul.msk.f32.vlgmr.msrb.gmra.mxu3 %vm456_vm1, %v825_v41 }
 0x1a0   : > { %2073 = vmatmul.msk.f32.vlgmr.msra.gmra.mxu0 %vm456_vm1, %v825_v41  ;;  %1240 = vmatpush.msrb.mxu2 %v2492_v13 }
 0x1a1   : > { %1380 = vmatpush.msrb.mxu3 %v2457_v7  ;;  %1400 = vmatpush.msra.mxu0 %v2462_v8 }
 0x1a2   : > { %1241 = vmatpush.msrb.mxu2 %v2497_v14 }
 0x1a3   : > { %1381 = vmatpush.msrb.mxu3 %v2467_v9  ;;  %1401 = vmatpush.msra.mxu0 %v2474_v10 }
 0x1a4   : > { %1242 = vmatpush.msrb.mxu2 %v2519_v18 }
 0x1a5   : > { %1382 = vmatpush.msrb.mxu3 %v2479_v11  ;;  %1402 = vmatpush.msra.mxu0 %v2484_v12 }
 0x1a6   : > { %1243 = vmatpush.msrb.mxu2 %v2531_v19 }
 0x1a7   : > { %1383 = vmatpush.msrb.mxu3 %v2502_v15  ;;  %1403 = vmatpush.msra.mxu0 %v2507_v16 }
 0x21d   : > { %v885_v3 = vpop.f32.mrf.mxu0 }
 0x21e   : > { %v886_v25 = vadd.f32 %v2579_v44, %v885_v3 }
 0x220   : > { %v977_v37 = vrot.slane %v886_v25, 1 }
 0x222   : > { %v845_v40 = vpop.f32.mrf.mxu2  ;;  %v865_v46 = vpop.f32.mrf.mxu3 }
 0x223   : > { %v889_v47 = vrot.slane %v845_v40, 1  ;;  %v892_v48 = vadd.f32 %v845_v40, %v816_v52  ;;  %v933_v49 = vrot.slane %v865_v46, 1  ;;  %v936_v50 = vadd.f32 %v865_v46, %v818_v54 }
 0x225   : > { %v893_v51 = vadd.f32 %v889_v47, %v817_v42  ;;  %v2074_v43 = vmul.f32 -1.442695, %v892_v48  ;;  %v937_v53 = vadd.f32 %v933_v49, %v819_v45  ;;  %v2076_v55 = vmul.f32 -1.442695, %v936_v50  ;;  %v820_v45 = vld [vmem:[%s2449_s20 + $0x2] sm:$0x1] }
 0x227   : > { %2183 = vpow2.f32 %v2074_v43  ;;  %v2075_v17 = vmul.f32 -1.442695, %v893_v51  ;;  %v2077_v56 = vmul.f32 -1.442695, %v937_v53  ;;  %v821_v43 = vld [vmem:[%s2449_s20 + $0xa] sm:$0x1] }
 0x228   : > { %2185 = vpow2.f32 %v2076_v55 }
 0x229   : > { %2187 = vpow2.f32 %v2075_v17 }
 0x22a   : > { %2189 = vpow2.f32 %v2077_v56 }
 0x22d   : > { %v2184_v57 = vpop.eup %2183 }
 0x22e   : > { %v2186_v58 = vpop.eup %2185  ;;  %v900_v59 = vadd.f32 1.0, %v2184_v57 }
 0x22f   : > { %v2188_v60 = vpop.eup %2187  ;;  %v2704_v61 = vadd.f32 1.0, %v2186_v58 }
 0x230   : > { %v2190_v62 = vpop.eup %2189  ;;  %v901_v63 = vadd.f32 1.0, %v2188_v60  ;;  %2191 = vrcp.f32 %v900_v59  ;;  %v913_v26 = vand.u32 2147483648, %v900_v59  ;;  %v911_v22 = vand.u32 2147483647, %v900_v59 }
 0x231   : > { %v2706_v0 = vadd.f32 1.0, %v2190_v62  ;;  %2193 = vrcp.f32 %v2704_v61  ;;  %vm907_vm9 = vweird.f32 %v900_v59  ;;  %vm951_vm12 = vweird.f32 %v2704_v61 }
 0x232   : > { %2195 = vrcp.f32 %v901_v63  ;;  %v928_v33 = vand.u32 2147483648, %v901_v63  ;;  %v926_v36 = vand.u32 2147483647, %v901_v63  ;;  %v914_v39 = vor.u32 1.1754944e-38, %v913_v26 }
 0x233   : > { %2197 = vrcp.f32 %v2706_v0  ;;  %vm912_vm13 = vcmp.eq.f32.partialorder %v911_v22, 8.507059e+37  ;;  %vm922_vm14 = vweird.f32 %v901_v63  ;;  %v957_v49 = vand.u32 2147483648, %v2704_v61 }
 0x234   : > { %v929_v40 = vor.u32 1.1754944e-38, %v928_v33  ;;  %vm927_vm2 = vcmp.eq.f32.partialorder %v926_v36, 8.507059e+37  ;;  %v955_v53 = vand.u32 2147483647, %v2704_v61  ;;  %v972_v17 = vand.u32 2147483648, %v2706_v0 }
 0x235   : > { %vm966_vm7 = vweird.f32 %v2706_v0  ;;  %v970_v57 = vand.u32 2147483647, %v2706_v0 }
 0x236   : > { %v2192_v1 = vpop.eup %2191 }
 0x237   : > { %v2710_v2 = vpop.eup %2193  ;;  %v903_v4 = vmul.f32 %v2192_v1, %v900_v59  ;;  %vm908_vm8 = vweird.f32 %v2192_v1  ;;  %v958_v59 = vor.u32 1.1754944e-38, %v957_v49 }
 0x238   : > { %v2196_v5 = vpop.eup %2195  ;;  %v947_v6 = vmul.f32 %v2710_v2, %v2704_v61  ;;  %vm909_vm11 = vmor %vm907_vm9, %vm908_vm8  ;;  %vm952_vm0 = vweird.f32 %v2710_v2  ;;  %vm956_vm9 = vcmp.eq.f32.partialorder %v955_v53, 8.507059e+37 }
 0x239   : > { %v2198_v20 = vpop.eup %2197  ;;  %v904_v21 = vsub.f32 1.0, %v903_v4  ;;  %v918_v23 = vmul.f32 %v2196_v5, %v901_v63  ;;  %vm923_vm10 = vweird.f32 %v2196_v5  ;;  %vm953_vm6 = vmor %vm951_vm12, %vm952_vm0  ;;  %v973_v63 = vor.u32 1.1754944e-38, %v972_v17 }
 0x23a   : > { %v948_v27 = vsub.f32 1.0, %v947_v6  ;;  %v962_v28 = vmul.f32 %v2198_v20, %v2706_v0  ;;  %vm924_vm15 = vmor %vm922_vm14, %vm923_vm10  ;;  %vm967_vm5 = vweird.f32 %v2198_v20  ;;  %vm971_vm10 = vcmp.eq.f32.partialorder %v970_v57, 8.507059e+37 }
 0x23b   : > { %v905_v31 = vmul.f32 %v2192_v1, %v904_v21  ;;  %v919_v32 = vsub.f32 1.0, %v918_v23  ;;  %vm968_vm8 = vmor %vm966_vm7, %vm967_vm5 }
 0x23c   : > { %v949_v34 = vmul.f32 %v2710_v2, %v948_v27  ;;  %v963_v29 = vsub.f32 1.0, %v962_v28  ;;  %v999_v28 = vld [vmem:[%s2447_s19 + $0xb] sm:$0x1] }
 0x23d   : > { %v906_v24 = vadd.f32 %v2192_v1, %v905_v31  ;;  %v920_v35 = vmul.f32 %v2196_v5, %v919_v32 }
 0x23e   : > { %v964_v41 = vmul.f32 %v2198_v20, %v963_v29  ;;  %v950_v46 = vadd.f32 %v2710_v2, %v949_v34 }
 0x23f   : > { %v910_v52 = vsel %vm909_vm11, %v2192_v1, %v906_v24  ;;  %v921_v54 = vadd.f32 %v2196_v5, %v920_v35 }
 0x240   : > { %v915_v42 = vsel %vm912_vm13, %v914_v39, %v910_v52  ;;  %v965_v51 = vadd.f32 %v2198_v20, %v964_v41  ;;  %v954_v58 = vsel %vm953_vm6, %v2710_v2, %v950_v46 }
 0x241   : > { %v925_v47 = vsel %vm924_vm15, %v2196_v5, %v921_v54  ;;  %v980_v48 = vmul.f32 %v915_v42, %v886_v25  ;;  %v959_v1 = vsel %vm956_vm9, %v958_v59, %v954_v58 }
 0x242   : > { %v930_v50 = vsel %vm927_vm2, %v929_v40, %v925_v47  ;;  %v969_v62 = vsel %vm968_vm8, %v2198_v20, %v965_v51  ;;  %v986_v3 = vsub.f32 1.0, %v959_v1  ;;  %v990_v0 = vmul.f32 %v959_v1, %v2672_v38 }
 0x243   : > { %v981_v55 = vmul.f32 %v977_v37, %v930_v50  ;;  %v982_v56 = vadd.f32 %v980_v48, %v820_v45  ;;  %v974_v61 = vsel %vm971_vm10, %v973_v63, %v969_v62  ;;  %v1000_v63 = vld [vmem:[%s2449_s20 + $0x3] sm:$0x1] }
 0x244   : > { %v987_v5 = vsub.f32 1.0, %v974_v61  ;;  %v991_v23 = vmul.f32 %v974_v61, %v2674_v30  ;;  %v998_v30 = vld [vmem:[%s2447_s19 + $0x3] sm:$0x1] }
 0x245   : > { %v983_v60 = vadd.f32 %v981_v55, %v821_v43  ;;  %2199 = vtanh.f32 %v982_v56 }
 0x247   : > { %2201 = vtanh.f32 %v983_v60 }
 0x24b   : > { %v2200_v4 = vpop.eup %2199 }
 0x24c   : > { %v988_v6 = vmul.f32 %v2200_v4, %v986_v3 }
 0x24d   : > { %v2202_v2 = vpop.eup %2201 }
 0x24e   : > { %v989_v21 = vmul.f32 %v2202_v2, %v987_v5  ;;  %v2732_v25 = vadd.f32 %v990_v0, %v988_v6 }
 0x250   : > { %v2734_v20 = vadd.f32 %v991_v23, %v989_v21  ;;  %994 = vst.msk [vmem:[%s2451_s21 + $0x2] sm:$0x1] %vm632_vm3, %v2732_v25 }
 0x252   : > { %995 = vst.msk [vmem:[%s2451_s21 + $0xa] sm:$0x1] %vm632_vm3, %v2734_v20  ;;  %v1004_v26 = vrot.slane %v2734_v20, 7 }
 0x254   : > { %v1005_v27 = vsel %vm644_vm4, %v1004_v26, %v2732_v25  ;;  %v1001_v26 = vld [vmem:[%s2449_s20 + $0xb] sm:$0x1] }
 0x255   : > { %2078 = vmatmul.msk.f32.vlgmr.msra.gmra.mxu1 %vm456_vm1, %v1005_v27  ;;  %2079 = vmatmul.msk.f32.vlgmr.msra.gmra.mxu2 %vm456_vm1, %v1005_v27 }
 0x256   : > { %2080 = vmatmul.msk.f32.vlgmr.msra.gmra.mxu3 %vm456_vm1, %v1005_v27  ;;  %1420 = vmatpush.msra.mxu1 %v2492_v13 }
 0x257   : > { %1560 = vmatpush.msra.mxu2 %v2457_v7  ;;  %1580 = vmatpush.msra.mxu3 %v2462_v8  ;;  %v996_v7 = vld [vmem:[%s2445_s18 + $0x3] sm:$0x1]  ;;  %v997_v8 = vld [vmem:[%s2445_s18 + $0xb] sm:$0x1] }
 0x258   : > { %1421 = vmatpush.msra.mxu1 %v2497_v14 }
 0x259   : > { %1561 = vmatpush.msra.mxu2 %v2467_v9  ;;  %1581 = vmatpush.msra.mxu3 %v2474_v10 }
 0x25a   : > { %1422 = vmatpush.msra.mxu1 %v2519_v18 }
 0x25b   : > { %1562 = vmatpush.msra.mxu2 %v2479_v11  ;;  %1582 = vmatpush.msra.mxu3 %v2484_v12 }
 0x25c   : > { %1423 = vmatpush.msra.mxu1 %v2531_v19 }
 0x25d   : > { %1563 = vmatpush.msra.mxu2 %v2502_v15  ;;  %1583 = vmatpush.msra.mxu3 %v2507_v16 }
 0x2d2   : > { %v1025_v13 = vpop.f32.mrf.mxu1 }
 0x2d3   : > { %v1069_v14 = vrot.slane %v1025_v13, 1  ;;  %v1072_v9 = vadd.f32 %v1025_v13, %v996_v7 }
 0x2d5   : > { %v1073_v38 = vadd.f32 %v1069_v14, %v997_v8  ;;  %v2081_v10 = vmul.f32 -1.442695, %v1072_v9 }
 0x2d7   : > { %2203 = vpow2.f32 %v2081_v10  ;;  %v2082_v18 = vmul.f32 -1.442695, %v1073_v38 }
 0x2d8   : > { %v1045_v11 = vpop.f32.mrf.mxu2 }
 0x2d9   : > { %2205 = vpow2.f32 %v2082_v18  ;;  %v1113_v12 = vrot.slane %v1045_v11, 1  ;;  %v1116_v31 = vadd.f32 %v1045_v11, %v998_v30  ;;  %v1065_v36 = vpop.f32.mrf.mxu3 }
 0x2da   : > { %v1066_v54 = vadd.f32 %v2579_v44, %v1065_v36  ;;  %v2304_v36 = vld [vmem:[%s3078_s3 + $0x18] sm:$0xff] }
 0x2db   : > { %v1117_v19 = vadd.f32 %v1113_v12, %v999_v28  ;;  %v2083_v22 = vmul.f32 -1.442695, %v1116_v31 }
 0x2dc   : > { %v1157_v43 = vrot.slane %v1066_v54, 1 }
 0x2dd   : > { %v2204_v15 = vpop.eup %2203  ;;  %2207 = vpow2.f32 %v2083_v22  ;;  %v2084_v16 = vmul.f32 -1.442695, %v1117_v19 }
 0x2de   : > { %v1080_v32 = vadd.f32 1.0, %v2204_v15 }
 0x2df   : > { %v2206_v33 = vpop.eup %2205  ;;  %2209 = vpow2.f32 %v2084_v16 }
 0x2e0   : > { %v1081_v34 = vadd.f32 1.0, %v2206_v33  ;;  %2211 = vrcp.f32 %v1080_v32  ;;  %v1091_v45 = vand.u32 2147483647, %v1080_v32  ;;  %v1093_v46 = vand.u32 2147483648, %v1080_v32 }
 0x2e1   : > { %vm1087_vm12 = vweird.f32 %v1080_v32 }
 0x2e2   : > { %2213 = vrcp.f32 %v1081_v34  ;;  %v1106_v49 = vand.u32 2147483647, %v1081_v34  ;;  %v1108_v51 = vand.u32 2147483648, %v1081_v34  ;;  %vm1092_vm14 = vcmp.eq.f32.partialorder %v1091_v45, 8.507059e+37  ;;  %v2845_v45 = vld [vmem:[%s3080_s5] sm:$0xff] }
 0x2e3   : > { %v2208_v29 = vpop.eup %2207  ;;  %v1094_v44 = vor.u32 1.1754944e-38, %v1093_v46  ;;  %vm1102_vm15 = vweird.f32 %v1081_v34  ;;  %v2313_v46 = vld [vmem:[%s3078_s3] sm:$0xff] }
 0x2e4   : > { %v2764_v24 = vadd.f32 1.0, %v2208_v29  ;;  %vm2773_vm2 = vcmp.eq.f32.partialorder %v1106_v49, 8.507059e+37  ;;  %v1109_v3 = vor.u32 1.1754944e-38, %v1108_v51  ;;  %v1178_v49 = vld [vmem:[%s2447_s19 + $0x4] sm:$0x1] }
 0x2e5   : > { %v2210_v35 = vpop.eup %2209 }
 0x2e6   : > { %v2212_v37 = vpop.eup %2211  ;;  %v2766_v39 = vadd.f32 1.0, %v2210_v35  ;;  %2215 = vrcp.f32 %v2764_v24  ;;  %v1137_v62 = vand.u32 2147483648, %v2764_v24  ;;  %vm1131_vm7 = vweird.f32 %v2764_v24 }
 0x2e7   : > { %v1083_v41 = vmul.f32 %v2212_v37, %v1080_v32  ;;  %vm1088_vm11 = vweird.f32 %v2212_v37  ;;  %v1135_v0 = vand.u32 2147483647, %v2764_v24 }
 0x2e8   : > { %v2214_v52 = vpop.eup %2213  ;;  %2217 = vrcp.f32 %v2766_v39  ;;  %vm1089_vm13 = vmor %vm1087_vm12, %vm1088_vm11  ;;  %vm1146_vm10 = vweird.f32 %v2766_v39  ;;  %v1150_v8 = vand.u32 2147483647, %v2766_v39  ;;  %v1152_v13 = vand.u32 2147483648, %v2766_v39 }
 0x2e9   : > { %v1084_v42 = vsub.f32 1.0, %v1083_v41  ;;  %v1098_v40 = vmul.f32 %v2214_v52, %v1081_v34  ;;  %vm1103_vm0 = vweird.f32 %v2214_v52  ;;  %v1138_v9 = vor.u32 1.1754944e-38, %v1137_v62  ;;  %v2307_v41 = vld [vmem:[%s3078_s3 + $0x10] sm:$0xff] }
 0x2ea   : > { %vm1104_vm6 = vmor %vm1102_vm15, %vm1103_vm0  ;;  %vm1136_vm12 = vcmp.eq.f32.partialorder %v1135_v0, 8.507059e+37  ;;  %v1153_v11 = vor.u32 1.1754944e-38, %v1152_v13 }
 0x2eb   : > { %v1085_v47 = vmul.f32 %v2212_v37, %v1084_v42  ;;  %v1099_v48 = vsub.f32 1.0, %v1098_v40  ;;  %v2310_v42 = vld [vmem:[%s3078_s3 + $0x8] sm:$0xff] }
 0x2ec   : > { %v2216_v50 = vpop.eup %2215  ;;  %v2311_v40 = vld [vmem:[%s3079_s4 + $0x8] sm:$0xff] }
 0x2ed   : > { %v1127_v53 = vmul.f32 %v2216_v50, %v2764_v24  ;;  %v1086_v55 = vadd.f32 %v2212_v37, %v1085_v47  ;;  %v1100_v17 = vmul.f32 %v2214_v52, %v1099_v48  ;;  %vm1132_vm5 = vweird.f32 %v2216_v50  ;;  %v2314_v47 = vld [vmem:[%s3079_s4] sm:$0xff] }
 0x2ee   : > { %v2218_v56 = vpop.eup %2217  ;;  %vm1133_vm9 = vmor %vm1131_vm7, %vm1132_vm5  ;;  %v1176_v48 = vld [vmem:[%s2445_s18 + $0x4] sm:$0x1] }
 0x2ef   : > { %v1128_v57 = vsub.f32 1.0, %v1127_v53  ;;  %v1142_v58 = vmul.f32 %v2218_v56, %v2766_v39  ;;  %v1090_v59 = vsel %vm1089_vm13, %v2212_v37, %v1086_v55  ;;  %v1101_v61 = vadd.f32 %v2214_v52, %v1100_v17  ;;  %v2305_v37 = vld [vmem:[%s3079_s4 + $0x18] sm:$0xff]  ;;  %v2821_v39 = vld [vmem:[%s3080_s5 + $0x10] sm:$0xff] }
 0x2f0   : > { %v1095_v1 = vsel %vm1092_vm14, %v1094_v44, %v1090_v59  ;;  %vm1147_vm8 = vweird.f32 %v2218_v56  ;;  %vm1151_vm13 = vcmp.eq.f32.partialorder %v1150_v8, 8.507059e+37 }
 0x2f1   : > { %v1129_v4 = vmul.f32 %v2216_v50, %v1128_v57  ;;  %v1143_v5 = vsub.f32 1.0, %v1142_v58  ;;  %v1160_v6 = vmul.f32 %v1095_v1, %v1066_v54  ;;  %v1105_v2 = vsel %vm1104_vm6, %v2214_v52, %v1101_v61  ;;  %vm1148_vm11 = vmor %vm1146_vm10, %vm1147_vm8  ;;  %v2308_v52 = vld [vmem:[%s3079_s4 + $0x10] sm:$0xff]  ;;  %v2833_v54 = vld [vmem:[%s3080_s5 + $0x8] sm:$0xff] }
 0x2f2   : > { %v1110_v27 = vsel %vm2773_vm2, %v1109_v3, %v1105_v2 }
 0x2f3   : > { %v1130_v21 = vadd.f32 %v2216_v50, %v1129_v4  ;;  %v1144_v23 = vmul.f32 %v2218_v56, %v1143_v5  ;;  %v1162_v7 = vadd.f32 %v1160_v6, %v1000_v63  ;;  %v1161_v14 = vmul.f32 %v1157_v43, %v1110_v27  ;;  %v1179_v43 = vld [vmem:[%s2447_s19 + $0xc] sm:$0x1] }
 0x2f5   : > { %v1145_v38 = vadd.f32 %v2218_v56, %v1144_v23  ;;  %v1134_v10 = vsel %vm1133_vm9, %v2216_v50, %v1130_v21  ;;  %2219 = vtanh.f32 %v1162_v7  ;;  %v1163_v30 = vadd.f32 %v1161_v14, %v1001_v26  ;;  %v1177_v50 = vld [vmem:[%s2445_s18 + $0xc] sm:$0x1] }
 0x2f6   : > { %v1139_v18 = vsel %vm1136_vm12, %v1138_v9, %v1134_v10 }
 0x2f7   : > { %v1149_v28 = vsel %vm1148_vm11, %v2218_v56, %v1145_v38  ;;  %2221 = vtanh.f32 %v1163_v30  ;;  %v1166_v31 = vsub.f32 1.0, %v1139_v18  ;;  %v1170_v15 = vmul.f32 %v1139_v18, %v2732_v25  ;;  %v2875_v30 = vld [vmem:[%s3081_s6] ss:$0 sm:$0xff] }
 0x2f8   : > { %v1154_v12 = vsel %vm1151_vm13, %v1153_v11, %v1149_v28 }
 0x2f9   : > { %v1167_v16 = vsub.f32 1.0, %v1154_v12  ;;  %v1171_v29 = vmul.f32 %v1154_v12, %v2734_v20  ;;  %v2809_v20 = vld [vmem:[%s3080_s5 + $0x18] sm:$0xff] }
 0x2fb   : > { %v2220_v19 = vpop.eup %2219 }
 0x2fc   : > { %v1168_v22 = vmul.f32 %v2220_v19, %v1166_v31 }
 0x2fd   : > { %v2222_v32 = vpop.eup %2221 }
 0x2fe   : > { %v2789_v33 = vadd.f32 %v1170_v15, %v1168_v22  ;;  %v1169_v34 = vmul.f32 %v2222_v32, %v1167_v16 }
 0x300   : > { %1174 = vst.msk [vmem:[%s2451_s21 + $0x3] sm:$0x1] %vm632_vm3, %v2789_v33  ;;  %v2795_v24 = vadd.f32 %v1171_v29, %v1169_v34 }
 0x302   : > { %1175 = vst.msk [vmem:[%s2451_s21 + $0xb] sm:$0x1] %vm632_vm3, %v2795_v24  ;;  %v1184_v35 = vrot.slane %v2795_v24, 7 }
 0x304   : > { %v1185_v25 = vsel %vm644_vm4, %v1184_v35, %v2789_v33 }
 0x305   : > { %2085 = vmatmul.msk.f32.vlgmr.msrb.gmra.mxu0 %vm456_vm1, %v1185_v25  ;;  %2086 = vmatmul.msk.f32.vlgmr.msrb.gmra.mxu1 %vm456_vm1, %v1185_v25 }
 0x306   : > { %2087 = vmatmul.msk.f32.vlgmr.msrb.gmra.mxu2 %vm456_vm1, %v1185_v25  ;;  %1600 = vmatpush.msrb.mxu0 %v2809_v20 }
 0x307   : > { %1740 = vmatpush.msrb.mxu1 %v2304_v36  ;;  %1760 = vmatpush.msrb.mxu2 %v2305_v37 }
 0x308   : > { %1601 = vmatpush.msrb.mxu0 %v2821_v39 }
 0x309   : > { %1741 = vmatpush.msrb.mxu1 %v2307_v41  ;;  %1761 = vmatpush.msrb.mxu2 %v2308_v52  ;;  %v1180_v52 = vld [vmem:[%s2449_s20 + $0x4] sm:$0x1] }
 0x30a   : > { %1602 = vmatpush.msrb.mxu0 %v2833_v54 }
 0x30b   : > { %1742 = vmatpush.msrb.mxu1 %v2310_v42  ;;  %1762 = vmatpush.msrb.mxu2 %v2311_v40 }
 0x30c   : > { %1603 = vmatpush.msrb.mxu0 %v2845_v45 }
 0x30d   : > { %1743 = vmatpush.msrb.mxu1 %v2313_v46  ;;  %1763 = vmatpush.msrb.mxu2 %v2314_v47 }
 0x382   : > { %v1205_v51 = vpop.f32.mrf.mxu0  ;;  %v1225_v53 = vpop.f32.mrf.mxu1 }
 0x383   : > { %v1249_v55 = vrot.slane %v1205_v51, 1  ;;  %v1252_v17 = vadd.f32 %v1205_v51, %v1176_v48  ;;  %v1293_v56 = vrot.slane %v1225_v53, 1  ;;  %v1296_v44 = vadd.f32 %v1225_v53, %v1178_v49  ;;  %v1181_v51 = vld [vmem:[%s2449_s20 + $0xc] sm:$0x1] }
 0x385   : > { %v1253_v57 = vadd.f32 %v1249_v55, %v1177_v50  ;;  %v2088_v58 = vmul.f32 -1.442695, %v1252_v17  ;;  %v1297_v59 = vadd.f32 %v1293_v56, %v1179_v43  ;;  %v2090_v60 = vmul.f32 -1.442695, %v1296_v44 }
 0x387   : > { %2223 = vpow2.f32 %v2088_v58  ;;  %v2089_v62 = vmul.f32 -1.442695, %v1253_v57  ;;  %v2091_v63 = vmul.f32 -1.442695, %v1297_v59 }
 0x388   : > { %2225 = vpow2.f32 %v2090_v60 }
 0x389   : > { %2227 = vpow2.f32 %v2089_v62  ;;  %v1245_v26 = vpop.f32.mrf.mxu2 }
 0x38a   : > { %2229 = vpow2.f32 %v2091_v63  ;;  %v1246_v18 = vadd.f32 %v2875_v30, %v1245_v26 }
 0x38c   : > { %v1337_v25 = vrot.slane %v1246_v18, 1 }
 0x38d   : > { %v2224_v1 = vpop.eup %2223 }
 0x38e   : > { %v2226_v61 = vpop.eup %2225  ;;  %v1260_v3 = vadd.f32 1.0, %v2224_v1 }
 0x38f   : > { %v2228_v4 = vpop.eup %2227  ;;  %v2858_v5 = vadd.f32 1.0, %v2226_v61 }
 0x390   : > { %v2230_v6 = vpop.eup %2229  ;;  %v1261_v0 = vadd.f32 1.0, %v2228_v4  ;;  %2231 = vrcp.f32 %v1260_v3  ;;  %v1273_v28 = vand.u32 2147483648, %v1260_v3  ;;  %v1271_v12 = vand.u32 2147483647, %v1260_v3 }
 0x391   : > { %v2860_v2 = vadd.f32 1.0, %v2230_v6  ;;  %2233 = vrcp.f32 %v2858_v5  ;;  %vm1267_vm15 = vweird.f32 %v1260_v3  ;;  %vm1311_vm2 = vweird.f32 %v2858_v5 }
 0x392   : > { %2235 = vrcp.f32 %v1261_v0  ;;  %v1288_v15 = vand.u32 2147483648, %v1261_v0  ;;  %v1286_v34 = vand.u32 2147483647, %v1261_v0  ;;  %v1274_v35 = vor.u32 1.1754944e-38, %v1273_v28 }
 0x393   : > { %2237 = vrcp.f32 %v2860_v2  ;;  %vm1272_vm6 = vcmp.eq.f32.partialorder %v1271_v12, 8.507059e+37  ;;  %vm1282_vm7 = vweird.f32 %v1261_v0  ;;  %v1317_v46 = vand.u32 2147483648, %v2858_v5 }
 0x394   : > { %v1289_v40 = vor.u32 1.1754944e-38, %v1288_v15  ;;  %vm1287_vm10 = vcmp.eq.f32.partialorder %v1286_v34, 8.507059e+37  ;;  %v1315_v49 = vand.u32 2147483647, %v2858_v5  ;;  %v1332_v53 = vand.u32 2147483648, %v2860_v2 }
 0x395   : > { %vm1326_vm13 = vweird.f32 %v2860_v2  ;;  %v1330_v56 = vand.u32 2147483647, %v2860_v2  ;;  %v1318_v57 = vor.u32 1.1754944e-38, %v1317_v46 }
 0x396   : > { %v2232_v21 = vpop.eup %2231  ;;  %v1333_v60 = vor.u32 1.1754944e-38, %v1332_v53 }
 0x397   : > { %v2864_v23 = vpop.eup %2233  ;;  %v1263_v27 = vmul.f32 %v2232_v21, %v1260_v3  ;;  %vm1268_vm14 = vweird.f32 %v2232_v21 }
 0x398   : > { %v2236_v7 = vpop.eup %2235  ;;  %v1307_v8 = vmul.f32 %v2864_v23, %v2858_v5  ;;  %vm1269_vm5 = vmor %vm1267_vm15, %vm1268_vm14  ;;  %vm1312_vm8 = vweird.f32 %v2864_v23  ;;  %vm1316_vm15 = vcmp.eq.f32.partialorder %v1315_v49, 8.507059e+37 }
 0x399   : > { %v2868_v13 = vpop.eup %2237  ;;  %v1264_v14 = vsub.f32 1.0, %v1263_v27  ;;  %v1278_v9 = vmul.f32 %v2236_v7, %v1261_v0  ;;  %vm1283_vm0 = vweird.f32 %v2236_v7  ;;  %vm1313_vm12 = vmor %vm1311_vm2, %vm1312_vm8  ;;  %v1359_v27 = vld [vmem:[%s2447_s19 + $0xd] sm:$0x1] }
 0x39a   : > { %v1308_v38 = vsub.f32 1.0, %v1307_v8  ;;  %v1322_v10 = vmul.f32 %v2868_v13, %v2860_v2  ;;  %vm1284_vm9 = vmor %vm1282_vm7, %vm1283_vm0  ;;  %vm1327_vm11 = vweird.f32 %v2868_v13  ;;  %vm1331_vm0 = vcmp.eq.f32.partialorder %v1330_v56, 8.507059e+37 }
 0x39b   : > { %v1265_v11 = vmul.f32 %v2232_v21, %v1264_v14  ;;  %v1279_v31 = vsub.f32 1.0, %v1278_v9  ;;  %vm1328_vm14 = vmor %vm1326_vm13, %vm1327_vm11 }
 0x39c   : > { %v1309_v19 = vmul.f32 %v2864_v23, %v1308_v38  ;;  %v1323_v22 = vsub.f32 1.0, %v1322_v10  ;;  %v1356_v38 = vld [vmem:[%s2445_s18 + $0x5] sm:$0x1] }
 0x39d   : > { %v1266_v16 = vadd.f32 %v2232_v21, %v1265_v11  ;;  %v1280_v32 = vmul.f32 %v2236_v7, %v1279_v31 }
 0x39e   : > { %v1324_v29 = vmul.f32 %v2868_v13, %v1323_v22  ;;  %v1310_v41 = vadd.f32 %v2864_v23, %v1309_v19 }
 0x39f   : > { %v1270_v36 = vsel %vm1269_vm5, %v2232_v21, %v1266_v16  ;;  %v1281_v37 = vadd.f32 %v2236_v7, %v1280_v32 }
 0x3a0   : > { %v1275_v42 = vsel %vm1272_vm6, %v1274_v35, %v1270_v36  ;;  %v1325_v50 = vadd.f32 %v2868_v13, %v1324_v29  ;;  %v1314_v44 = vsel %vm1313_vm12, %v2864_v23, %v1310_v41 }
 0x3a1   : > { %v1285_v47 = vsel %vm1284_vm9, %v2236_v7, %v1281_v37  ;;  %v1340_v48 = vmul.f32 %v1275_v42, %v1246_v18  ;;  %v1319_v62 = vsel %vm1316_vm15, %v1318_v57, %v1314_v44  ;;  %v1357_v18 = vld [vmem:[%s2445_s18 + $0xd] sm:$0x1] }
 0x3a2   : > { %v1290_v43 = vsel %vm1287_vm10, %v1289_v40, %v1285_v47  ;;  %v1329_v59 = vsel %vm1328_vm14, %v2868_v13, %v1325_v50  ;;  %v1346_v1 = vsub.f32 1.0, %v1319_v62  ;;  %v1350_v5 = vmul.f32 %v1319_v62, %v2789_v33 }
 0x3a3   : > { %v1341_v55 = vmul.f32 %v1337_v25, %v1290_v43  ;;  %v1342_v17 = vadd.f32 %v1340_v48, %v1180_v52  ;;  %v1334_v63 = vsel %vm1331_vm0, %v1333_v60, %v1329_v59 }
 0x3a4   : > { %v1347_v3 = vsub.f32 1.0, %v1334_v63  ;;  %v1351_v2 = vmul.f32 %v1334_v63, %v2795_v24  ;;  %v1358_v24 = vld [vmem:[%s2447_s19 + $0x5] sm:$0x1] }
 0x3a5   : > { %v1343_v58 = vadd.f32 %v1341_v55, %v1181_v51  ;;  %2239 = vtanh.f32 %v1342_v17 }
 0x3a7   : > { %2241 = vtanh.f32 %v1343_v58 }
 0x3ab   : > { %v2240_v61 = vpop.eup %2239 }
 0x3ac   : > { %v1348_v4 = vmul.f32 %v2240_v61, %v1346_v1 }
 0x3ad   : > { %v2242_v6 = vpop.eup %2241 }
 0x3ae   : > { %v1349_v0 = vmul.f32 %v2242_v6, %v1347_v3  ;;  %v2899_v21 = vadd.f32 %v1350_v5, %v1348_v4  ;;  %v1360_v3 = vld [vmem:[%s2449_s20 + $0x5] sm:$0x1] }
 0x3b0   : > { %v2901_v23 = vadd.f32 %v1351_v2, %v1349_v0  ;;  %1354 = vst.msk [vmem:[%s2451_s21 + $0x4] sm:$0x1] %vm632_vm3, %v2899_v21 }
 0x3b2   : > { %1355 = vst.msk [vmem:[%s2451_s21 + $0xc] sm:$0x1] %vm632_vm3, %v2901_v23  ;;  %v1364_v26 = vrot.slane %v2901_v23, 7 }
 0x3b4   : > { %v1365_v33 = vsel %vm644_vm4, %v1364_v26, %v2899_v21 }
 0x3b5   : > { %2092 = vmatmul.msk.f32.vlgmr.msrb.gmra.mxu3 %vm456_vm1, %v1365_v33  ;;  %2093 = vmatmul.msk.f32.vlgmr.msra.gmra.mxu0 %vm456_vm1, %v1365_v33 }
 0x3b6   : > { %2094 = vmatmul.msk.f32.vlgmr.msra.gmra.mxu1 %vm456_vm1, %v1365_v33  ;;  %1780 = vmatpush.msrb.mxu3 %v2809_v20  ;;  %v1361_v33 = vld [vmem:[%s2449_s20 + $0xd] sm:$0x1] }
 0x3b8   : > { %1781 = vmatpush.msrb.mxu3 %v2821_v39 }
 0x3ba   : > { %1782 = vmatpush.msrb.mxu3 %v2833_v54 }
 0x3bc   : > { %1783 = vmatpush.msrb.mxu3 %v2845_v45 }
 0x432   : > { %v1405_v7 = vpop.f32.mrf.mxu0 }
 0x433   : > { %v1473_v8 = vrot.slane %v1405_v7, 1  ;;  %v1476_v13 = vadd.f32 %v1405_v7, %v1358_v24  ;;  %v1425_v41 = vpop.f32.mrf.mxu1 }
 0x434   : > { %v1426_v49 = vadd.f32 %v2875_v30, %v1425_v41 }
 0x435   : > { %v1477_v14 = vadd.f32 %v1473_v8, %v1359_v27  ;;  %v2097_v9 = vmul.f32 -1.442695, %v1476_v13 }
 0x436   : > { %v1517_v59 = vrot.slane %v1426_v49, 1 }
 0x437   : > { %2243 = vpow2.f32 %v2097_v9  ;;  %v2098_v10 = vmul.f32 -1.442695, %v1477_v14 }
 0x438   : > { %v1385_v28 = vpop.f32.mrf.mxu3 }
 0x439   : > { %2245 = vpow2.f32 %v2098_v10  ;;  %v1429_v20 = vrot.slane %v1385_v28, 1  ;;  %v1432_v11 = vadd.f32 %v1385_v28, %v1356_v38 }
 0x43b   : > { %v1433_v39 = vadd.f32 %v1429_v20, %v1357_v18  ;;  %v2095_v12 = vmul.f32 -1.442695, %v1432_v11 }
 0x43d   : > { %v2244_v54 = vpop.eup %2243  ;;  %2247 = vpow2.f32 %v2095_v12  ;;  %v2096_v45 = vmul.f32 -1.442695, %v1433_v39 }
 0x43e   : > { %v2923_v31 = vadd.f32 1.0, %v2244_v54 }
 0x43f   : > { %v2246_v19 = vpop.eup %2245  ;;  %2249 = vpow2.f32 %v2096_v45 }
 0x440   : > { %v2925_v22 = vadd.f32 1.0, %v2246_v19  ;;  %2251 = vrcp.f32 %v2923_v31  ;;  %vm1491_vm7 = vweird.f32 %v2923_v31  ;;  %v1497_v5 = vand.u32 2147483648, %v2923_v31 }
 0x441   : > { %v1495_v24 = vand.u32 2147483647, %v2923_v31 }
 0x442   : > { %2253 = vrcp.f32 %v2925_v22  ;;  %v1512_v27 = vand.u32 2147483648, %v2925_v22  ;;  %vm1506_vm0 = vweird.f32 %v2925_v22  ;;  %v1510_v13 = vand.u32 2147483647, %v2925_v22 }
 0x443   : > { %v2248_v15 = vpop.eup %2247  ;;  %v1498_v9 = vor.u32 1.1754944e-38, %v1497_v5 }
 0x444   : > { %v1440_v16 = vadd.f32 1.0, %v2248_v15  ;;  %v1513_v18 = vor.u32 1.1754944e-38, %v1512_v27 }
 0x445   : > { %v2250_v32 = vpop.eup %2249 }
 0x446   : > { %v1441_v34 = vadd.f32 1.0, %v2250_v32  ;;  %2255 = vrcp.f32 %v1440_v16  ;;  %v2929_v29 = vpop.eup %2251  ;;  %v1453_v50 = vand.u32 2147483648, %v1440_v16  ;;  %v1451_v43 = vand.u32 2147483647, %v1440_v16 }
 0x447   : > { %v1487_v25 = vmul.f32 %v2929_v29, %v2923_v31  ;;  %vm1447_vm5 = vweird.f32 %v1440_v16  ;;  %vm1492_vm12 = vweird.f32 %v2929_v29 }
 0x448   : > { %2257 = vrcp.f32 %v1441_v34  ;;  %v2931_v35 = vpop.eup %2253  ;;  %v1468_v17 = vand.u32 2147483648, %v1441_v34  ;;  %v1466_v57 = vand.u32 2147483647, %v1441_v34  ;;  %v1454_v60 = vor.u32 1.1754944e-38, %v1453_v50  ;;  %vm1493_vm15 = vmor %vm1491_vm7, %vm1492_vm12 }
 0x449   : > { %v1502_v37 = vmul.f32 %v2931_v35, %v2925_v22  ;;  %v1488_v40 = vsub.f32 1.0, %v1487_v25  ;;  %vm1452_vm9 = vcmp.eq.f32.partialorder %v1451_v43, 8.507059e+37  ;;  %vm1462_vm10 = vweird.f32 %v1441_v34  ;;  %v1539_v25 = vld [vmem:[%s2447_s19 + $0xe] sm:$0x1] }
 0x44a   : > { %v1469_v61 = vor.u32 1.1754944e-38, %v1468_v17  ;;  %vm1467_vm13 = vcmp.eq.f32.partialorder %v1466_v57, 8.507059e+37  ;;  %vm1507_vm14 = vweird.f32 %v2931_v35 }
 0x44b   : > { %v1503_v48 = vsub.f32 1.0, %v1502_v37  ;;  %v1489_v55 = vmul.f32 %v2929_v29, %v1488_v40 }
 0x44c   : > { %v2256_v36 = vpop.eup %2255 }
 0x44d   : > { %v1443_v52 = vmul.f32 %v2256_v36, %v1440_v16  ;;  %vm1448_vm2 = vweird.f32 %v2256_v36  ;;  %v1504_v58 = vmul.f32 %v2931_v35, %v1503_v48  ;;  %v1490_v4 = vadd.f32 %v2929_v29, %v1489_v55 }
 0x44e   : > { %v2258_v42 = vpop.eup %2257  ;;  %vm1449_vm8 = vmor %vm1447_vm5, %vm1448_vm2  ;;  %vm1496_vm5 = vcmp.eq.f32.partialorder %v1495_v24, 8.507059e+37 }
 0x44f   : > { %v1444_v46 = vsub.f32 1.0, %v1443_v52  ;;  %v1458_v47 = vmul.f32 %v2258_v42, %v1441_v34  ;;  %vm1463_vm6 = vweird.f32 %v2258_v42  ;;  %v1505_v2 = vadd.f32 %v2931_v35, %v1504_v58  ;;  %vm1508_vm2 = vmor %vm1506_vm0, %vm1507_vm14  ;;  %v1538_v34 = vld [vmem:[%s2447_s19 + $0x6] sm:$0x1] }
 0x450   : > { %vm1464_vm11 = vmor %vm1462_vm10, %vm1463_vm6  ;;  %v1494_v14 = vsel %vm1493_vm15, %v2929_v29, %v1490_v4  ;;  %vm1511_vm6 = vcmp.eq.f32.partialorder %v1510_v13, 8.507059e+37  ;;  %v1537_v29 = vld [vmem:[%s2445_s18 + $0xe] sm:$0x1] }
 0x451   : > { %v1445_v51 = vmul.f32 %v2256_v36, %v1444_v46  ;;  %v1459_v53 = vsub.f32 1.0, %v1458_v47  ;;  %v1509_v10 = vsel %vm1508_vm2, %v2931_v35, %v1505_v2  ;;  %v1499_v28 = vsel %vm1496_vm5, %v1498_v9, %v1494_v14 }
 0x452   : > { %v1514_v20 = vsel %vm1511_vm6, %v1513_v18, %v1509_v10  ;;  %v1526_v11 = vsub.f32 1.0, %v1499_v28  ;;  %v1530_v45 = vmul.f32 %v1499_v28, %v2899_v21 }
 0x453   : > { %v1446_v56 = vadd.f32 %v2256_v36, %v1445_v51  ;;  %v1460_v44 = vmul.f32 %v2258_v42, %v1459_v53  ;;  %v1527_v12 = vsub.f32 1.0, %v1514_v20  ;;  %v1531_v22 = vmul.f32 %v1514_v20, %v2901_v23  ;;  %v1536_v23 = vld [vmem:[%s2445_s18 + $0x6] sm:$0x1] }
 0x455   : > { %v1450_v62 = vsel %vm1449_vm8, %v2256_v36, %v1446_v56  ;;  %v1461_v63 = vadd.f32 %v2258_v42, %v1460_v44 }
 0x456   : > { %v1455_v1 = vsel %vm1452_vm9, %v1454_v60, %v1450_v62 }
 0x457   : > { %v1465_v6 = vsel %vm1464_vm11, %v2258_v42, %v1461_v63  ;;  %v1520_v0 = vmul.f32 %v1455_v1, %v1426_v49 }
 0x458   : > { %v1470_v26 = vsel %vm1467_vm13, %v1469_v61, %v1465_v6 }
 0x459   : > { %v1521_v7 = vmul.f32 %v1517_v59, %v1470_v26  ;;  %v1522_v8 = vadd.f32 %v1520_v0, %v1360_v3 }
 0x45b   : > { %v1523_v38 = vadd.f32 %v1521_v7, %v1361_v33  ;;  %2259 = vtanh.f32 %v1522_v8 }
 0x45d   : > { %2261 = vtanh.f32 %v1523_v38 }
 0x461   : > { %v2260_v39 = vpop.eup %2259 }
 0x462   : > { %v1528_v54 = vmul.f32 %v2260_v39, %v1526_v11 }
 0x463   : > { %v2262_v31 = vpop.eup %2261 }
 0x464   : > { %v1529_v19 = vmul.f32 %v2262_v31, %v1527_v12  ;;  %v2958_v15 = vadd.f32 %v1530_v45, %v1528_v54  ;;  %v1540_v12 = vld [vmem:[%s2449_s20 + $0x6] sm:$0x1] }
 0x466   : > { %v2960_v16 = vadd.f32 %v1531_v22, %v1529_v19  ;;  %1534 = vst.msk [vmem:[%s2451_s21 + $0x5] sm:$0x1] %vm632_vm3, %v2958_v15 }
 0x468   : > { %1535 = vst.msk [vmem:[%s2451_s21 + $0xd] sm:$0x1] %vm632_vm3, %v2960_v16  ;;  %v1544_v32 = vrot.slane %v2960_v16, 7 }
 0x46a   : > { %v1545_v21 = vsel %vm644_vm4, %v1544_v32, %v2958_v15 }
 0x46b   : > { %2099 = vmatmul.msk.f32.vlgmr.msra.gmra.mxu2 %vm456_vm1, %v1545_v21  ;;  %2100 = vmatmul.msk.f32.vlgmr.msra.gmra.mxu3 %vm456_vm1, %v1545_v21 }
 0x46c   : > { %2101 = vmatmul.msk.f32.vlgmr.msrb.gmra.mxu0 %vm456_vm1, %v1545_v21  ;;  %v1541_v21 = vld [vmem:[%s2449_s20 + $0xe] sm:$0x1] }
 0x4e9   : > { %v1605_v60 = vpop.f32.mrf.mxu0 }
 0x4ea   : > { %v1606_v5 = vadd.f32 %v2875_v30, %v1605_v60 }
 0x4ec   : > { %v1697_v38 = vrot.slane %v1606_v5, 1 }
 0x4ee   : > { %v1565_v35 = vpop.f32.mrf.mxu2  ;;  %v1585_v36 = vpop.f32.mrf.mxu3 }
 0x4ef   : > { %v1609_v37 = vrot.slane %v1565_v35, 1  ;;  %v1612_v41 = vadd.f32 %v1565_v35, %v1536_v23  ;;  %v1653_v52 = vrot.slane %v1585_v36, 1  ;;  %v1656_v42 = vadd.f32 %v1585_v36, %v1538_v34 }
 0x4f1   : > { %v1613_v40 = vadd.f32 %v1609_v37, %v1537_v29  ;;  %v2102_v46 = vmul.f32 -1.442695, %v1612_v41  ;;  %v1657_v47 = vadd.f32 %v1653_v52, %v1539_v25  ;;  %v2104_v48 = vmul.f32 -1.442695, %v1656_v42 }
 0x4f3   : > { %2263 = vpow2.f32 %v2102_v46  ;;  %v2103_v49 = vmul.f32 -1.442695, %v1613_v40  ;;  %v2105_v50 = vmul.f32 -1.442695, %v1657_v47 }
 0x4f4   : > { %2265 = vpow2.f32 %v2104_v48 }
 0x4f5   : > { %2267 = vpow2.f32 %v2103_v49 }
 0x4f6   : > { %2269 = vpow2.f32 %v2105_v50 }
 0x4f9   : > { %v2264_v51 = vpop.eup %2263 }
 0x4fa   : > { %v2266_v43 = vpop.eup %2265  ;;  %v1620_v53 = vadd.f32 1.0, %v2264_v51 }
 0x4fb   : > { %v2268_v55 = vpop.eup %2267  ;;  %v2978_v17 = vadd.f32 1.0, %v2266_v43 }
 0x4fc   : > { %v2270_v56 = vpop.eup %2269  ;;  %v1621_v44 = vadd.f32 1.0, %v2268_v55  ;;  %2271 = vrcp.f32 %v1620_v53  ;;  %v1633_v6 = vand.u32 2147483648, %v1620_v53  ;;  %v1631_v33 = vand.u32 2147483647, %v1620_v53 }
 0x4fd   : > { %v2980_v57 = vadd.f32 1.0, %v2270_v56  ;;  %2273 = vrcp.f32 %v2978_v17  ;;  %vm1627_vm8 = vweird.f32 %v1620_v53  ;;  %vm1671_vm11 = vweird.f32 %v2978_v17 }
 0x4fe   : > { %2275 = vrcp.f32 %v1621_v44  ;;  %v1648_v27 = vand.u32 2147483648, %v1621_v44  ;;  %v1646_v9 = vand.u32 2147483647, %v1621_v44  ;;  %v1634_v10 = vor.u32 1.1754944e-38, %v1633_v6 }
 0x4ff   : > { %2277 = vrcp.f32 %v2980_v57  ;;  %vm1632_vm12 = vcmp.eq.f32.partialorder %v1631_v33, 8.507059e+37  ;;  %vm1642_vm13 = vweird.f32 %v1621_v44  ;;  %v1677_v19 = vand.u32 2147483648, %v2978_v17 }
 0x500   : > { %v1649_v39 = vor.u32 1.1754944e-38, %v1648_v27  ;;  %vm1647_vm0 = vcmp.eq.f32.partialorder %v1646_v9, 8.507059e+37  ;;  %v1675_v23 = vand.u32 2147483647, %v2978_v17  ;;  %v1692_v29 = vand.u32 2147483648, %v2980_v57 }
 0x501   : > { %vm1686_vm6 = vweird.f32 %v2980_v57  ;;  %v1690_v25 = vand.u32 2147483647, %v2980_v57  ;;  %v1678_v37 = vor.u32 1.1754944e-38, %v1677_v19 }
 0x502   : > { %v2272_v58 = vpop.eup %2271  ;;  %v1693_v42 = vor.u32 1.1754944e-38, %v1692_v29 }
 0x503   : > { %v2984_v59 = vpop.eup %2273  ;;  %v1623_v62 = vmul.f32 %v2272_v58, %v1620_v53  ;;  %vm1628_vm7 = vweird.f32 %v2272_v58 }
 0x504   : > { %v2276_v63 = vpop.eup %2275  ;;  %v1667_v1 = vmul.f32 %v2984_v59, %v2978_v17  ;;  %vm1629_vm10 = vmor %vm1627_vm8, %vm1628_vm7  ;;  %vm1672_vm15 = vweird.f32 %v2984_v59  ;;  %vm1676_vm8 = vcmp.eq.f32.partialorder %v1675_v23, 8.507059e+37 }
 0x505   : > { %v2278_v61 = vpop.eup %2277  ;;  %v1624_v3 = vsub.f32 1.0, %v1623_v62  ;;  %v1638_v4 = vmul.f32 %v2276_v63, %v1621_v44  ;;  %vm1643_vm9 = vweird.f32 %v2276_v63  ;;  %vm1673_vm5 = vmor %vm1671_vm11, %vm1672_vm15 }
 0x506   : > { %v1668_v0 = vsub.f32 1.0, %v1667_v1  ;;  %v1682_v2 = vmul.f32 %v2278_v61, %v2980_v57  ;;  %vm1644_vm14 = vmor %vm1642_vm13, %vm1643_vm9  ;;  %vm1687_vm2 = vweird.f32 %v2278_v61  ;;  %vm1691_vm9 = vcmp.eq.f32.partialorder %v1690_v25, 8.507059e+37  ;;  %v1717_v57 = vld [vmem:[%s2445_s18 + $0xf] sm:$0x1]  ;;  %v1718_v1 = vld [vmem:[%s2447_s19 + $0x7] sm:$0x1] }
 0x507   : > { %v1625_v26 = vmul.f32 %v2272_v58, %v1624_v3  ;;  %v1639_v24 = vsub.f32 1.0, %v1638_v4  ;;  %vm1688_vm7 = vmor %vm1686_vm6, %vm1687_vm2  ;;  %v1719_v3 = vld [vmem:[%s2447_s19 + $0xf] sm:$0x1] }
 0x508   : > { %v1669_v7 = vmul.f32 %v2984_v59, %v1668_v0  ;;  %v1683_v8 = vsub.f32 1.0, %v1682_v2 }
 0x509   : > { %v1626_v13 = vadd.f32 %v2272_v58, %v1625_v26  ;;  %v1640_v14 = vmul.f32 %v2276_v63, %v1639_v24 }
 0x50a   : > { %v1684_v18 = vmul.f32 %v2278_v61, %v1683_v8  ;;  %v1670_v54 = vadd.f32 %v2984_v59, %v1669_v7 }
 0x50b   : > { %v1630_v28 = vsel %vm1629_vm10, %v2272_v58, %v1626_v13  ;;  %v1641_v20 = vadd.f32 %v2276_v63, %v1640_v14 }
 0x50c   : > { %v1635_v11 = vsel %vm1632_vm12, %v1634_v10, %v1630_v28  ;;  %v1685_v32 = vadd.f32 %v2278_v61, %v1684_v18  ;;  %v1674_v36 = vsel %vm1673_vm5, %v2984_v59, %v1670_v54 }
 0x50d   : > { %v1645_v45 = vsel %vm1644_vm14, %v2276_v63, %v1641_v20  ;;  %v1700_v31 = vmul.f32 %v1635_v11, %v1606_v5  ;;  %v1679_v40 = vsel %vm1676_vm8, %v1678_v37, %v1674_v36 }
 0x50e   : > { %v1650_v22 = vsel %vm1647_vm0, %v1649_v39, %v1645_v45  ;;  %v1689_v52 = vsel %vm1688_vm7, %v2278_v61, %v1685_v32  ;;  %v1706_v47 = vsub.f32 1.0, %v1679_v40  ;;  %v1710_v51 = vmul.f32 %v1679_v40, %v2958_v15 }
 0x50f   : > { %v1701_v34 = vmul.f32 %v1697_v38, %v1650_v22  ;;  %v1702_v35 = vadd.f32 %v1700_v31, %v1540_v12  ;;  %v1694_v46 = vsel %vm1691_vm9, %v1693_v42, %v1689_v52  ;;  %v1720_v42 = vld [vmem:[%s2449_s20 + $0x7] sm:$0x1] }
 0x510   : > { %v1707_v49 = vsub.f32 1.0, %v1694_v46  ;;  %v1711_v55 = vmul.f32 %v1694_v46, %v2960_v16  ;;  %v1716_v16 = vld [vmem:[%s2445_s18 + $0x7] sm:$0x1]  ;;  %s2114_s18 = sshll.u32 (%p2416_p5), %s2397_s27, 3 }
 0x511   : > { %v1703_v41 = vadd.f32 %v1701_v34, %v1541_v21  ;;  %2279 = vtanh.f32 %v1702_v35  ;;  %s1911_s15 = scalar_lea.vmem (%p2416_p5), %s3082_s7, %s2114_s18 }
 0x513   : > { %2281 = vtanh.f32 %v1703_v41 }
 0x517   : > { %v2280_v48 = vpop.eup %2279 }
 0x518   : > { %v1708_v50 = vmul.f32 %v2280_v48, %v1706_v47 }
 0x519   : > { %v2282_v43 = vpop.eup %2281 }
 0x51a   : > { %v1709_v53 = vmul.f32 %v2282_v43, %v1707_v49  ;;  %v3006_v17 = vadd.f32 %v1710_v51, %v1708_v50 }
 0x51c   : > { %v3008_v56 = vadd.f32 %v1711_v55, %v1709_v53  ;;  %1714 = vst.msk [vmem:[%s2451_s21 + $0x6] sm:$0x1] %vm632_vm3, %v3006_v17 }
 0x51e   : > { %1715 = vst.msk [vmem:[%s2451_s21 + $0xe] sm:$0x1] %vm632_vm3, %v3008_v56  ;;  %v1724_v44 = vrot.slane %v3008_v56, 7 }
 0x520   : > { %v1725_v15 = vsel %vm644_vm4, %v1724_v44, %v3006_v17  ;;  %v1721_v44 = vld [vmem:[%s2449_s20 + $0xf] sm:$0x1] }
 0x521   : > { %2106 = vmatmul.msk.f32.vlgmr.msrb.gmra.mxu1 %vm456_vm1, %v1725_v15  ;;  %2107 = vmatmul.msk.f32.vlgmr.msrb.gmra.mxu2 %vm456_vm1, %v1725_v15 }
 0x522   : > { %2108 = vmatmul.msk.f32.vlgmr.msrb.gmra.mxu3 %vm456_vm1, %v1725_v15 }
 0x59e   : > { %v1745_v58 = vpop.f32.mrf.mxu1 }
 0x59f   : > { %v1789_v59 = vrot.slane %v1745_v58, 1  ;;  %v1792_v60 = vadd.f32 %v1745_v58, %v1716_v16 }
 0x5a1   : > { %v1793_v62 = vadd.f32 %v1789_v59, %v1717_v57  ;;  %v2109_v63 = vmul.f32 -1.442695, %v1792_v60 }
 0x5a3   : > { %2283 = vpow2.f32 %v2109_v63  ;;  %v2110_v61 = vmul.f32 -1.442695, %v1793_v62 }
 0x5a4   : > { %v1765_v4 = vpop.f32.mrf.mxu2 }
 0x5a5   : > { %2285 = vpow2.f32 %v2110_v61  ;;  %v1833_v5 = vrot.slane %v1765_v4, 1  ;;  %v1836_v6 = vadd.f32 %v1765_v4, %v1718_v1  ;;  %v1785_v9 = vpop.f32.mrf.mxu3 }
 0x5a6   : > { %v1786_v20 = vadd.f32 %v2875_v30, %v1785_v9 }
 0x5a7   : > { %v1837_v0 = vadd.f32 %v1833_v5, %v1719_v3  ;;  %v2111_v2 = vmul.f32 -1.442695, %v1836_v6 }
 0x5a8   : > { %v1877_v21 = vrot.slane %v1786_v20, 1 }
 0x5a9   : > { %v2284_v26 = vpop.eup %2283  ;;  %2287 = vpow2.f32 %v2111_v2  ;;  %v2112_v33 = vmul.f32 -1.442695, %v1837_v0 }
 0x5aa   : > { %v1800_v24 = vadd.f32 1.0, %v2284_v26 }
 0x5ab   : > { %v2286_v27 = vpop.eup %2285  ;;  %2289 = vpow2.f32 %v2112_v33 }
 0x5ac   : > { %v1801_v7 = vadd.f32 1.0, %v2286_v27  ;;  %2291 = vrcp.f32 %v1800_v24  ;;  %v1811_v12 = vand.u32 2147483647, %v1800_v24  ;;  %v1813_v54 = vand.u32 2147483648, %v1800_v24 }
 0x5ad   : > { %vm1807_vm10 = vweird.f32 %v1800_v24 }
 0x5ae   : > { %2293 = vrcp.f32 %v1801_v7  ;;  %v1826_v19 = vand.u32 2147483647, %v1801_v7  ;;  %v1828_v32 = vand.u32 2147483648, %v1801_v7  ;;  %vm1812_vm12 = vcmp.eq.f32.partialorder %v1811_v12, 8.507059e+37 }
 0x5af   : > { %v2288_v8 = vpop.eup %2287  ;;  %v1814_v30 = vor.u32 1.1754944e-38, %v1813_v54  ;;  %vm1822_vm13 = vweird.f32 %v1801_v7 }
 0x5b0   : > { %v3026_v13 = vadd.f32 1.0, %v2288_v8  ;;  %vm3035_vm15 = vcmp.eq.f32.partialorder %v1826_v19, 8.507059e+37  ;;  %v1829_v47 = vor.u32 1.1754944e-38, %v1828_v32 }
 0x5b1   : > { %v2290_v14 = vpop.eup %2289 }
 0x5b2   : > { %v2292_v38 = vpop.eup %2291  ;;  %v3028_v10 = vadd.f32 1.0, %v2290_v14  ;;  %2295 = vrcp.f32 %v3026_v13  ;;  %v1857_v52 = vand.u32 2147483648, %v3026_v13  ;;  %vm1851_vm5 = vweird.f32 %v3026_v13 }
 0x5b3   : > { %v1803_v18 = vmul.f32 %v2292_v38, %v1800_v24  ;;  %vm1808_vm1 = vweird.f32 %v2292_v38  ;;  %v1855_v51 = vand.u32 2147483647, %v3026_v13 }
 0x5b4   : > { %v2294_v28 = vpop.eup %2293  ;;  %2297 = vrcp.f32 %v3028_v10  ;;  %vm1809_vm11 = vmor %vm1807_vm10, %vm1808_vm1  ;;  %vm1866_vm8 = vweird.f32 %v3028_v10  ;;  %v1870_v57 = vand.u32 2147483647, %v3028_v10  ;;  %v1872_v58 = vand.u32 2147483648, %v3028_v10 }
 0x5b5   : > { %v1804_v11 = vsub.f32 1.0, %v1803_v18  ;;  %v1818_v39 = vmul.f32 %v2294_v28, %v1801_v7  ;;  %vm1823_vm14 = vweird.f32 %v2294_v28  ;;  %v1858_v60 = vor.u32 1.1754944e-38, %v1857_v52 }
 0x5b6   : > { %vm1824_vm2 = vmor %vm1822_vm13, %vm1823_vm14  ;;  %vm1856_vm9 = vcmp.eq.f32.partialorder %v1855_v51, 8.507059e+37  ;;  %v1873_v4 = vor.u32 1.1754944e-38, %v1872_v58  ;;  %vm1871_vm10 = vcmp.eq.f32.partialorder %v1870_v57, 8.507059e+37 }
 0x5b7   : > { %v1805_v45 = vmul.f32 %v2292_v38, %v1804_v11  ;;  %v1819_v31 = vsub.f32 1.0, %v1818_v39 }
 0x5b8   : > { %v2296_v22 = vpop.eup %2295 }
 0x5b9   : > { %v1847_v23 = vmul.f32 %v2296_v22, %v3026_v13  ;;  %v1806_v34 = vadd.f32 %v2292_v38, %v1805_v45  ;;  %v1820_v29 = vmul.f32 %v2294_v28, %v1819_v31  ;;  %vm1852_vm0 = vweird.f32 %v2296_v22 }
 0x5ba   : > { %v2298_v35 = vpop.eup %2297  ;;  %vm1853_vm7 = vmor %vm1851_vm5, %vm1852_vm0 }
 0x5bb   : > { %v1848_v25 = vsub.f32 1.0, %v1847_v23  ;;  %v1862_v36 = vmul.f32 %v2298_v35, %v3028_v10  ;;  %v1810_v37 = vsel %vm1809_vm11, %v2292_v38, %v1806_v34  ;;  %v1821_v46 = vadd.f32 %v2294_v28, %v1820_v29 }
 0x5bc   : > { %v1815_v40 = vsel %vm1812_vm12, %v1814_v30, %v1810_v37  ;;  %vm1867_vm6 = vweird.f32 %v2298_v35  ;;  %vm1901_vm11 = vcmask 254976  }
 0x5bd   : > { %v1849_v48 = vmul.f32 %v2296_v22, %v1848_v25  ;;  %v1863_v49 = vsub.f32 1.0, %v1862_v36  ;;  %v1880_v50 = vmul.f32 %v1815_v40, %v1786_v20  ;;  %v1825_v43 = vsel %vm1824_vm2, %v2294_v28, %v1821_v46  ;;  %vm1868_vm1 = vmor %vm1866_vm8, %vm1867_vm6 }
 0x5be   : > { %v1830_v15 = vsel %vm3035_vm15, %v1829_v47, %v1825_v43 }
 0x5bf   : > { %v1850_v53 = vadd.f32 %v2296_v22, %v1849_v48  ;;  %v1864_v55 = vmul.f32 %v2298_v35, %v1863_v49  ;;  %v1882_v16 = vadd.f32 %v1880_v50, %v1720_v42  ;;  %v1881_v59 = vmul.f32 %v1877_v21, %v1830_v15 }
 0x5c1   : > { %v1865_v62 = vadd.f32 %v2298_v35, %v1864_v55  ;;  %v1854_v63 = vsel %vm1853_vm7, %v2296_v22, %v1850_v53  ;;  %2299 = vtanh.f32 %v1882_v16  ;;  %v1883_v1 = vadd.f32 %v1881_v59, %v1721_v44 }
 0x5c2   : > { %v1859_v61 = vsel %vm1856_vm9, %v1858_v60, %v1854_v63 }
 0x5c3   : > { %v1869_v3 = vsel %vm1868_vm1, %v2298_v35, %v1865_v62  ;;  %2301 = vtanh.f32 %v1883_v1  ;;  %v1886_v6 = vsub.f32 1.0, %v1859_v61  ;;  %v1890_v26 = vmul.f32 %v1859_v61, %v3006_v17 }
 0x5c4   : > { %v1874_v5 = vsel %vm1871_vm10, %v1873_v4, %v1869_v3 }
 0x5c5   : > { %v1887_v33 = vsub.f32 1.0, %v1874_v5  ;;  %v1891_v8 = vmul.f32 %v1874_v5, %v3008_v56 }
 0x5c7   : > { %v2300_v0 = vpop.eup %2299 }
 0x5c8   : > { %v1888_v2 = vmul.f32 %v2300_v0, %v1886_v6 }
 0x5c9   : > { %v2302_v24 = vpop.eup %2301 }
 0x5ca   : > { %v1892_v27 = vadd.f32 %v1890_v26, %v1888_v2  ;;  %v1889_v7 = vmul.f32 %v2302_v24, %v1887_v33 }
 0x5cc   : > { %1894 = vst.msk [vmem:[%s2451_s21 + $0x7] sm:$0x1] %vm632_vm3, %v1892_v27  ;;  %v1893_v13 = vadd.f32 %v1891_v8, %v1889_v7 }
 0x5cd   : > { %1909 = sbr.rel (!%p2416_p5) target bundleno = 1495 (0x5d7), region = 170 }
 0x5ce   : > { %1895 = vst.msk [vmem:[%s2451_s21 + $0xf] sm:$0x1] %vm632_vm3, %v1893_v13  ;;  %v1898_v14 = vrot.slane %v1893_v13, 7 }
 0x5d0   : > { %v1899_v9 = vsel %vm644_vm4, %v1898_v14, %v1892_v27 }
 0x5d1   : > { %1902 = vst.msk [vmem:[#allocation2] sm:$0x3] %vm1901_vm11, %v1899_v9 }
 0x5d3   : > { %v1942_v17 = vld [vmem:[%s2451_s21] sm:$0xff] }
 0x5d4   : > { %1943 = vst [vmem:[%s1911_s15] sm:$0xff] %v1942_v17 }
 0x5d5   : > { %v1944_v38 = vld [vmem:[%s2451_s21 + $0x8] sm:$0xff] }
 0x5d6   : > { %1945 = vst [vmem:[%s1911_s15 + $0x10] sm:$0xff] %v1944_v38 }
 0x5d7 PF: > { %p14_p11 = scmp.ge.s32.totalorder %s2400_s28, 4   ;;  %s3089_s24 = smov %s2334_s25 }
 0x5d8   : > { %s3090_s25 = smov %s2410_s8  ;;  %s3091_s26 = smov %s2400_s28 }
 0x5d9   :  { %16 = sbr.rel (!%p14_p11) target bundleno = 2 (0x2), region = 255 }

// kernel: custom_rnn_forward.3
= control target key start
LH: loop header
LB: loop body
LE: loop exit
PB: predicated region body
PF: predicated region fallthrough
CT: control target
= control target key end

     0   :  { %12 = vsyncpa [#allocation7], 0  ;;  %s2347_s24 = smov 0   ;;  %s2349_s25 = smov 0   ;;  %s2987_s0 = inlined_call_operand.vmem [shape: f32[2,16,32], index: 0, kind: input, shape index: {}]   ;;  %s2988_s1 = inlined_call_operand.vmem [shape: f32[2,16,32], index: 1, kind: input, shape index: {}]   ;;  %s2989_s2 = inlined_call_operand.vmem [shape: f32[2,16,32], index: 2, kind: input, shape index: {}]   ;;  %s2990_s3 = inlined_call_operand.vmem [shape: f32[32,32], index: 3, kind: input, shape index: {}]   ;;  %s2991_s4 = inlined_call_operand.vmem [shape: f32[32,32], index: 4, kind: input, shape index: {}]   ;;  %s2992_s5 = inlined_call_operand.vmem [shape: f32[32,32], index: 5, kind: input, shape index: {}]   ;;  %s2993_s6 = inlined_call_operand.vmem [shape: f32[1,32], index: 6, kind: input, shape index: {}]   ;;  %s2994_s7 = inlined_call_operand.hbm [shape: f32[2,32], index: 7, kind: output, shape index: {}]  }
   0x1   :  { %s2351_s26 = smov 0  }
   0x2 LB: > { %s1969_s27 = sadd.s32 4294967295, %s2303_s26   ;;  %s2364_s28 = sadd.s32 1, %s2303_s26   ;;  %s2303_s26 = sphi %s2351_s26, %s3000_s26   ;;  %s2299_s25 = sphi %s2349_s25, %s2999_s25   ;;  %s2295_s24 = sphi %s2347_s24, %s2998_s24  }
   0x3   : > { %s22_s29 = ssub.s32 %s2303_s26, %s2364_s28  ;;  %s25_s30 = sadd.s32 1, %s2299_s25 }
   0x4   : > { %p23_p0 = scmp.eq.s32.totalorder %s22_s29, 0  ;;  %p32_p1 = scmp.ne.s32.totalorder %s2299_s25, %s2295_s24 }
   0x5   : > { %p33_p2 = scmp.eq.s32.totalorder %s2303_s26, 0  ;;  %p1971_p4 = scmp.ge.s32.totalorder %s2303_s26, 2 }
   0x6   : > { %s2373_s8 = scalar_select %p23_p0, %s2299_s25, %s25_s30  }
   0x7   : > { %p2375_p3 = por %p33_p2, %p32_p1  ;;  %227 = sbr.rel (%p1971_p4) target bundleno = 30 (0x1e), region = 32 }
   0xc   : > { %230 = sbr.rel (!%p2375_p3) target bundleno = 18 (0x12), region = 36  ;;  %s232_s10 = sand.u32 (%p2375_p3), 1, %s2299_s25  }
   0xd   : > { %s1973_s11 = sshll.u32 (%p2375_p3), %s2303_s26, 3  ;;  %s1972_s12 = sshll.u32 (%p2375_p3), %s232_s10, 4 }
   0xe   : > { %s236_s15 = scalar_lea.vmem (%p2375_p3), %s2987_s0, %s1973_s11  ;;  %s234_s16 = scalar_lea.vmem (%p2375_p3), [#allocation3], %s1972_s12 }
   0xf   : > { %v267_v0 = vld [vmem:[%s236_s15] sm:$0xff] (%p2375_p3)  ;;  %v269_v1 = vld [vmem:[%s236_s15 + $0x10] sm:$0xff] (%p2375_p3) }
  0x10   : > { %268 = vst [vmem:[%s234_s16] sm:$0xff] (%p2375_p3), %v267_v0 }
  0x11   : > { %270 = vst [vmem:[%s234_s16 + $0x8] sm:$0xff] %v269_v1 }
  0x12 PF: > { %276 = sbr.rel (!%p2375_p3) target bundleno = 24 (0x18), region = 74  ;;  %s278_s17 = sand.u32 (%p2375_p3), 1, %s2299_s25  }
  0x13   : > { %s1975_s18 = sshll.u32 (%p2375_p3), %s2303_s26, 3  ;;  %s1974_s19 = sshll.u32 (%p2375_p3), %s278_s17, 4 }
  0x14   : > { %s282_s22 = scalar_lea.vmem (%p2375_p3), %s2988_s1, %s1975_s18  ;;  %s280_s23 = scalar_lea.vmem (%p2375_p3), [#allocation4], %s1974_s19 }
  0x15   : > { %v313_v2 = vld [vmem:[%s282_s22] sm:$0xff] (%p2375_p3)  ;;  %v315_v3 = vld [vmem:[%s282_s22 + $0x10] sm:$0xff] (%p2375_p3) }
  0x16   : > { %314 = vst [vmem:[%s280_s23] sm:$0xff] (%p2375_p3), %v313_v2 }
  0x17   : > { %316 = vst [vmem:[%s280_s23 + $0x8] sm:$0xff] %v315_v3 }
  0x18 PF: > { %322 = sbr.rel (!%p2375_p3) target bundleno = 30 (0x1e), region = 112  ;;  %s324_s29 = sand.u32 (%p2375_p3), 1, %s2299_s25  }
  0x19   : > { %s1977_s30 = sshll.u32 (%p2375_p3), %s2303_s26, 3  ;;  %s1976_s10 = sshll.u32 (%p2375_p3), %s324_s29, 4 }
  0x1a   : > { %s328_s13 = scalar_lea.vmem (%p2375_p3), %s2989_s2, %s1977_s30  ;;  %s326_s14 = scalar_lea.vmem (%p2375_p3), [#allocation5], %s1976_s10 }
  0x1b   : > { %v359_v4 = vld [vmem:[%s328_s13] sm:$0xff] (%p2375_p3)  ;;  %v361_v5 = vld [vmem:[%s328_s13 + $0x10] sm:$0xff] (%p2375_p3) }
  0x1c   : > { %360 = vst [vmem:[%s326_s14] sm:$0xff] (%p2375_p3), %v359_v4 }
  0x1d   : > { %362 = vst [vmem:[%s326_s14 + $0x8] sm:$0xff] %v361_v5 }
  0x1e PF: > { %p1978_p5 = scmp.ge.s32.totalorder %s2303_s26, 1  ;;  %p367_p6 = scmp.lt.s32.totalorder %s2303_s26, 3 }
  0x20   : > { %p368_p7 = pnand %p1978_p5, %p367_p6 }
  0x21   : > { %s374_s9 = sand.u32 (!%p368_p7), 1, %s2295_s24   ;;  %p1982_p8 = scmp.ne.s32.totalorder (!%p368_p7), %s1969_s27, 0 }
  0x22   : > { %371 = sbr.rel (%p368_p7) target bundleno = 1491 (0x5d3), region = 150  ;;  %s1979_s15 = sshll.u32 (!%p368_p7), %s374_s9, 4 }
  0x23   : > { %s2404_s16 = scalar_lea.vmem (!%p368_p7), [#allocation3], %s1979_s15  ;;  %s2406_s17 = scalar_lea.vmem (!%p368_p7), [#allocation4], %s1979_s15 }
  0x24   : > { %s2408_s18 = scalar_lea.vmem (!%p368_p7), [#allocation5], %s1979_s15 }
  0x27   : > { %425 = sbr.rel (%p1982_p8) target bundleno = 46 (0x2e), region = 166 }
  0x2c   : > { %vm426_vm0 = vcmask 254976   ;;  %v2305_v6 = vmov 0.0  }
  0x2d   : > { %427 = vst.msk [vmem:[#allocation2] sm:$0x3] %vm426_vm0, %v2305_v6 }
  0x2e PF: > { %v2415_v7 = vld [vmem:[%s2990_s3 + $0x18] sm:$0xff]  ;;  %v2425_v9 = vld [vmem:[%s2990_s3 + $0x10] sm:$0xff]  ;;  %v2437_v11 = vld [vmem:[%s2990_s3 + $0x8] sm:$0xff]  ;;  %vm448_vm1 = vcmask 261120   ;;  %s1887_s10 = sshll.u32 %s2994_s7, 4  ;;  %p2047_p9 = scmp.eq.s32.totalorder %s1969_s27, 1  ;;  %s1888_s10 = int_to_ptr.hbm [resolvable:$true] %s1887_s10 }
  0x2f   : > { %v2420_v8 = vld [vmem:[%s2991_s4 + $0x18] sm:$0xff]  ;;  %464 = vmatpush.msra.mxu0 %v2415_v7  ;;  %v2432_v10 = vld [vmem:[%s2991_s4 + $0x10] sm:$0xff]  ;;  %v2442_v12 = vld [vmem:[%s2991_s4 + $0x8] sm:$0xff]  ;;  %649 = vmatpush.msra.mxu3 %v2415_v7 }
  0x30   : > { %484 = vmatpush.msra.mxu1 %v2420_v8  ;;  %v2450_v13 = vld [vmem:[%s2992_s5 + $0x18] sm:$0xff]  ;;  %v2455_v14 = vld [vmem:[%s2992_s5 + $0x10] sm:$0xff]  ;;  %v2460_v15 = vld [vmem:[%s2990_s3] sm:$0xff] }
  0x31   : > { %465 = vmatpush.msra.mxu0 %v2425_v9  ;;  %v2465_v16 = vld [vmem:[%s2991_s4] sm:$0xff]  ;;  %507 = vmatpush.msra.mxu2 %v2450_v13  ;;  %v2477_v18 = vld [vmem:[%s2992_s5 + $0x8] sm:$0xff] }
  0x32   : > { %485 = vmatpush.msra.mxu1 %v2432_v10  ;;  %650 = vmatpush.msra.mxu3 %v2425_v9  ;;  %v2489_v19 = vld [vmem:[%s2992_s5] sm:$0xff]  ;;  %v443_v22 = vld [vmem:[%s2404_s16 + $0x8] sm:$0x1] }
  0x33   : > { %466 = vmatpush.msra.mxu0 %v2437_v11  ;;  %508 = vmatpush.msra.mxu2 %v2455_v14  ;;  %v442_v20 = vld [vmem:[%s2404_s16] sm:$0x1]  ;;  %v445_v24 = vld [vmem:[%s2406_s17 + $0x8] sm:$0x1]  ;;  %v2537_v45 = vld [vmem:[%s2993_s6] ss:$0 sm:$0xff] }
  0x34   : > { %486 = vmatpush.msra.mxu1 %v2442_v12  ;;  %v2471_v17 = vld [vmem:[#allocation2] sm:$0x3]  ;;  %651 = vmatpush.msra.mxu3 %v2437_v11  ;;  %v444_v21 = vld [vmem:[%s2406_s17] sm:$0x1] }
  0x35   : > { %467 = vmatpush.msra.mxu0 %v2460_v15  ;;  %509 = vmatpush.msra.mxu2 %v2477_v18 }
  0x36   : > { %487 = vmatpush.msra.mxu1 %v2465_v16  ;;  %1983 = vmatmul.msk.f32.vlgmr.msra.gmra.mxu0 %vm448_vm1, %v2471_v17 }
  0x37   : > { %1984 = vmatmul.msk.f32.vlgmr.msra.gmra.mxu1 %vm448_vm1, %v2471_v17  ;;  %669 = vmatpush.msrb.mxu0 %v2420_v8 }
  0x38   : > { %689 = vmatpush.msrb.mxu1 %v2450_v13  ;;  %652 = vmatpush.msra.mxu3 %v2460_v15 }
  0x39   : > { %510 = vmatpush.msra.mxu2 %v2489_v19  ;;  %670 = vmatpush.msrb.mxu0 %v2432_v10 }
  0x3a   : > { %1985 = vmatmul.msk.f32.vlgmr.msra.gmra.mxu2 %vm448_vm1, %v2471_v17  ;;  %690 = vmatpush.msrb.mxu1 %v2455_v14 }
  0x3b   : > { %671 = vmatpush.msrb.mxu0 %v2442_v12  ;;  %827 = vmatpush.msrb.mxu2 %v2415_v7 }
  0x3c   : > { %691 = vmatpush.msrb.mxu1 %v2477_v18  ;;  %847 = vmatpush.msrb.mxu3 %v2420_v8 }
  0x3d   : > { %672 = vmatpush.msrb.mxu0 %v2465_v16  ;;  %828 = vmatpush.msrb.mxu2 %v2425_v9 }
  0x3e   : > { %692 = vmatpush.msrb.mxu1 %v2489_v19  ;;  %848 = vmatpush.msrb.mxu3 %v2432_v10 }
  0x3f   : > { %867 = vmatpush.msra.mxu0 %v2450_v13  ;;  %829 = vmatpush.msrb.mxu2 %v2437_v11 }
  0x40   : > { %1005 = vmatpush.msra.mxu1 %v2415_v7  ;;  %849 = vmatpush.msrb.mxu3 %v2442_v12 }
  0x41   : > { %868 = vmatpush.msra.mxu0 %v2455_v14  ;;  %830 = vmatpush.msrb.mxu2 %v2460_v15 }
  0x42   : > { %850 = vmatpush.msrb.mxu3 %v2465_v16  ;;  %1006 = vmatpush.msra.mxu1 %v2425_v9 }
  0x43   : > { %869 = vmatpush.msra.mxu0 %v2477_v18  ;;  %1025 = vmatpush.msra.mxu2 %v2420_v8 }
  0x44   : > { %1007 = vmatpush.msra.mxu1 %v2437_v11 }
  0x45   : > { %870 = vmatpush.msra.mxu0 %v2489_v19  ;;  %1026 = vmatpush.msra.mxu2 %v2432_v10 }
  0x46   : > { %1008 = vmatpush.msra.mxu1 %v2460_v15 }
  0x47   : > { %1027 = vmatpush.msra.mxu2 %v2442_v12 }
  0x49   : > { %1028 = vmatpush.msra.mxu2 %v2465_v16 }
  0xb3   : > { %v469_v23 = vpop.f32.mrf.mxu0 }
  0xb4   : > { %v489_v25 = vpop.f32.mrf.mxu1  ;;  %v516_v26 = vrot.slane %v469_v23, 1  ;;  %v519_v27 = vadd.f32 %v469_v23, %v442_v20 }
  0xb5   : > { %v560_v28 = vrot.slane %v489_v25, 1  ;;  %v563_v29 = vadd.f32 %v489_v25, %v444_v21  ;;  %v446_v21 = vld [vmem:[%s2408_s18] sm:$0x1] }
  0xb6   : > { %v520_v30 = vadd.f32 %v516_v26, %v443_v22  ;;  %v1986_v31 = vmul.f32 -1.442695, %v519_v27  ;;  %v447_v26 = vld [vmem:[%s2408_s18 + $0x8] sm:$0x1] }
  0xb7   : > { %v564_v32 = vadd.f32 %v560_v28, %v445_v24  ;;  %v1988_v33 = vmul.f32 -1.442695, %v563_v29 }
  0xb8   : > { %2076 = vpow2.f32 %v1986_v31  ;;  %v1987_v34 = vmul.f32 -1.442695, %v520_v30 }
  0xb9   : > { %v1989_v35 = vmul.f32 -1.442695, %v564_v32  ;;  %2078 = vpow2.f32 %v1988_v33 }
  0xba   : > { %2080 = vpow2.f32 %v1987_v34 }
  0xbb   : > { %2082 = vpow2.f32 %v1989_v35 }
  0xbd   : > { %v512_v47 = vpop.f32.mrf.mxu2 }
  0xbe   : > { %v2077_v36 = vpop.eup %2076  ;;  %v513_v56 = vadd.f32 %v2537_v45, %v512_v47  ;;  %v617_v47 = vrot.slane %v2471_v17, 1 }
  0xbf   : > { %v2079_v37 = vpop.eup %2078  ;;  %v527_v38 = vadd.f32 1.0, %v2077_v36 }
  0xc0   : > { %v2081_v39 = vpop.eup %2080  ;;  %v2528_v40 = vadd.f32 1.0, %v2079_v37  ;;  %v604_v3 = vrot.slane %v513_v56, 1 }
  0xc1   : > { %v2083_v41 = vpop.eup %2082  ;;  %v528_v42 = vadd.f32 1.0, %v2081_v39  ;;  %2084 = vrcp.f32 %v527_v38  ;;  %v540_v57 = vand.u32 2147483648, %v527_v38  ;;  %v538_v59 = vand.u32 2147483647, %v527_v38 }
  0xc2   : > { %v2530_v43 = vadd.f32 1.0, %v2083_v41  ;;  %2086 = vrcp.f32 %v2528_v40  ;;  %vm534_vm3 = vweird.f32 %v527_v38  ;;  %vm578_vm10 = vweird.f32 %v2528_v40 }
  0xc3   : > { %2088 = vrcp.f32 %v528_v42  ;;  %v553_v62 = vand.u32 2147483647, %v528_v42  ;;  %v555_v63 = vand.u32 2147483648, %v528_v42  ;;  %v541_v2 = vor.u32 1.1754944e-38, %v540_v57  ;;  %v627_v57 = vld [vmem:[%s2406_s17 + $0x9] sm:$0x1] }
  0xc4   : > { %2090 = vrcp.f32 %v2530_v43  ;;  %vm539_vm6 = vcmp.eq.f32.partialorder %v538_v59, 8.507059e+37  ;;  %vm549_vm7 = vweird.f32 %v528_v42  ;;  %vm593_vm12 = vweird.f32 %v2530_v43 }
  0xc5   : > { %vm554_vm9 = vcmp.eq.f32.partialorder %v553_v62, 8.507059e+37  ;;  %v556_v23 = vor.u32 1.1754944e-38, %v555_v63  ;;  %v584_v32 = vand.u32 2147483648, %v2528_v40  ;;  %v599_v33 = vand.u32 2147483648, %v2530_v43  ;;  %v624_v63 = vld [vmem:[%s2404_s16 + $0x1] sm:$0x1] }
  0xc6   : > { %v582_v34 = vand.u32 2147483647, %v2528_v40  ;;  %v597_v35 = vand.u32 2147483647, %v2530_v43 }
  0xc7   : > { %v2085_v44 = vpop.eup %2084  ;;  %v585_v39 = vor.u32 1.1754944e-38, %v584_v32  ;;  %v600_v41 = vor.u32 1.1754944e-38, %v599_v33 }
  0xc8   : > { %v2539_v46 = vpop.eup %2086  ;;  %v530_v48 = vmul.f32 %v2085_v44, %v527_v38  ;;  %vm535_vm2 = vweird.f32 %v2085_v44  ;;  %vm583_vm0 = vcmp.eq.f32.partialorder %v582_v34, 8.507059e+37 }
  0xc9   : > { %v2089_v49 = vpop.eup %2088  ;;  %v574_v50 = vmul.f32 %v2539_v46, %v2528_v40  ;;  %vm536_vm5 = vmor %vm534_vm3, %vm535_vm2  ;;  %vm579_vm11 = vweird.f32 %v2539_v46  ;;  %vm598_vm2 = vcmp.eq.f32.partialorder %v597_v35, 8.507059e+37  ;;  %vm633_vm3 = vcmask 1041409  }
  0xca   : > { %v2091_v51 = vpop.eup %2090  ;;  %v531_v52 = vsub.f32 1.0, %v530_v48  ;;  %v545_v53 = vmul.f32 %v2089_v49, %v528_v42  ;;  %vm550_vm4 = vweird.f32 %v2089_v49  ;;  %vm580_vm14 = vmor %vm578_vm10, %vm579_vm11 }
  0xcb   : > { %v575_v54 = vsub.f32 1.0, %v574_v50  ;;  %v589_v55 = vmul.f32 %v2091_v51, %v2530_v43  ;;  %vm551_vm8 = vmor %vm549_vm7, %vm550_vm4  ;;  %vm594_vm13 = vweird.f32 %v2091_v51 }
  0xcc   : > { %v532_v58 = vmul.f32 %v2085_v44, %v531_v52  ;;  %v546_v60 = vsub.f32 1.0, %v545_v53  ;;  %vm595_vm15 = vmor %vm593_vm12, %vm594_vm13 }
  0xcd   : > { %v590_v61 = vsub.f32 1.0, %v589_v55  ;;  %v576_v4 = vmul.f32 %v2539_v46, %v575_v54 }
  0xce   : > { %v533_v0 = vadd.f32 %v2085_v44, %v532_v58  ;;  %v547_v1 = vmul.f32 %v2089_v49, %v546_v60 }
  0xcf   : > { %v591_v5 = vmul.f32 %v2091_v51, %v590_v61  ;;  %v577_v28 = vadd.f32 %v2539_v46, %v576_v4 }
  0xd0   : > { %v537_v6 = vsel %vm536_vm5, %v2085_v44, %v533_v0  ;;  %v548_v20 = vadd.f32 %v2089_v49, %v547_v1  ;;  %v625_v1 = vld [vmem:[%s2404_s16 + $0x9] sm:$0x1] }
  0xd1   : > { %v542_v22 = vsel %vm539_vm6, %v541_v2, %v537_v6  ;;  %v592_v29 = vadd.f32 %v2091_v51, %v591_v5  ;;  %v581_v37 = vsel %vm580_vm14, %v2539_v46, %v577_v28 }
  0xd2   : > { %v552_v24 = vsel %vm551_vm8, %v2089_v49, %v548_v20  ;;  %v607_v25 = vmul.f32 %v542_v22, %v513_v56  ;;  %v586_v42 = vsel %vm583_vm0, %v585_v39, %v581_v37 }
  0xd3   : > { %v557_v27 = vsel %vm554_vm9, %v556_v23, %v552_v24  ;;  %v596_v38 = vsel %vm595_vm15, %v2091_v51, %v592_v29  ;;  %v613_v48 = vsub.f32 1.0, %v586_v42  ;;  %v620_v54 = vmul.f32 %v586_v42, %v2471_v17  ;;  %v626_v17 = vld [vmem:[%s2406_s17 + $0x1] sm:$0x1] }
  0xd4   : > { %v608_v30 = vmul.f32 %v604_v3, %v557_v27  ;;  %v609_v31 = vadd.f32 %v607_v25, %v446_v21  ;;  %v601_v44 = vsel %vm598_vm2, %v600_v41, %v596_v38 }
  0xd5   : > { %v614_v49 = vsub.f32 1.0, %v601_v44  ;;  %v621_v43 = vmul.f32 %v617_v47, %v601_v44 }
  0xd6   : > { %v610_v36 = vadd.f32 %v608_v30, %v447_v26  ;;  %2092 = vtanh.f32 %v609_v31 }
  0xd8   : > { %2094 = vtanh.f32 %v610_v36 }
  0xdc   : > { %v2093_v40 = vpop.eup %2092 }
  0xdd   : > { %v615_v52 = vmul.f32 %v2093_v40, %v613_v48 }
  0xde   : > { %v2095_v50 = vpop.eup %2094 }
  0xdf   : > { %v616_v53 = vmul.f32 %v2095_v50, %v614_v49  ;;  %v2563_v51 = vadd.f32 %v620_v54, %v615_v52 }
  0xe1   : > { %v2561_v46 = vadd.f32 %v621_v43, %v616_v53 }
  0xe3   : > { %v632_v55 = vrot.slane %v2561_v46, 7 }
  0xe5   : > { %v634_v56 = vsel %vm633_vm3, %v632_v55, %v2563_v51 }
  0xe6   : > { %1990 = vmatmul.msk.f32.vlgmr.msra.gmra.mxu3 %vm448_vm1, %v634_v56  ;;  %1991 = vmatmul.msk.f32.vlgmr.msrb.gmra.mxu0 %vm448_vm1, %v634_v56 }
  0xe7   : > { %1992 = vmatmul.msk.f32.vlgmr.msrb.gmra.mxu1 %vm448_vm1, %v634_v56  ;;  %1045 = vmatpush.msra.mxu3 %v2450_v13 }
  0xe8   : > { %1183 = vmatpush.msrb.mxu0 %v2415_v7  ;;  %1203 = vmatpush.msrb.mxu1 %v2420_v8 }
  0xe9   : > { %1046 = vmatpush.msra.mxu3 %v2455_v14 }
  0xea   : > { %1184 = vmatpush.msrb.mxu0 %v2425_v9  ;;  %1204 = vmatpush.msrb.mxu1 %v2432_v10 }
  0xeb   : > { %1047 = vmatpush.msra.mxu3 %v2477_v18 }
  0xec   : > { %1185 = vmatpush.msrb.mxu0 %v2437_v11  ;;  %1205 = vmatpush.msrb.mxu1 %v2442_v12 }
  0xed   : > { %1048 = vmatpush.msra.mxu3 %v2489_v19 }
  0xee   : > { %1186 = vmatpush.msrb.mxu0 %v2460_v15  ;;  %1206 = vmatpush.msrb.mxu1 %v2465_v16 }
 0x163   : > { %v674_v58 = vpop.f32.mrf.mxu0 }
 0x164   : > { %v742_v59 = vrot.slane %v674_v58, 1  ;;  %v745_v60 = vadd.f32 %v674_v58, %v626_v17  ;;  %v694_v36 = vpop.f32.mrf.mxu1 }
 0x165   : > { %v695_v48 = vadd.f32 %v2537_v45, %v694_v36 }
 0x166   : > { %v746_v61 = vadd.f32 %v742_v59, %v627_v57  ;;  %v1995_v62 = vmul.f32 -1.442695, %v745_v60  ;;  %v628_v60 = vld [vmem:[%s2408_s18 + $0x1] sm:$0x1] }
 0x167   : > { %v786_v57 = vrot.slane %v695_v48, 1 }
 0x168   : > { %2096 = vpow2.f32 %v1995_v62  ;;  %v1996_v0 = vmul.f32 -1.442695, %v746_v61 }
 0x169   : > { %v654_v2 = vpop.f32.mrf.mxu3 }
 0x16a   : > { %2098 = vpow2.f32 %v1996_v0  ;;  %v698_v3 = vrot.slane %v654_v2, 1  ;;  %v701_v4 = vadd.f32 %v654_v2, %v624_v63  ;;  %v629_v0 = vld [vmem:[%s2408_s18 + $0x9] sm:$0x1] }
 0x16c   : > { %v702_v5 = vadd.f32 %v698_v3, %v625_v1  ;;  %v1993_v6 = vmul.f32 -1.442695, %v701_v4 }
 0x16e   : > { %v2097_v20 = vpop.eup %2096  ;;  %2100 = vpow2.f32 %v1993_v6  ;;  %v1994_v21 = vmul.f32 -1.442695, %v702_v5 }
 0x16f   : > { %v2587_v22 = vadd.f32 1.0, %v2097_v20 }
 0x170   : > { %v2099_v23 = vpop.eup %2098  ;;  %2102 = vpow2.f32 %v1994_v21 }
 0x171   : > { %v2589_v24 = vadd.f32 1.0, %v2099_v23  ;;  %2104 = vrcp.f32 %v2587_v22  ;;  %vm760_vm11 = vweird.f32 %v2587_v22  ;;  %v766_v3 = vand.u32 2147483648, %v2587_v22 }
 0x172   : > { %v764_v20 = vand.u32 2147483647, %v2587_v22 }
 0x173   : > { %2106 = vrcp.f32 %v2589_v24  ;;  %v781_v4 = vand.u32 2147483648, %v2589_v24  ;;  %vm775_vm0 = vweird.f32 %v2589_v24  ;;  %v779_v21 = vand.u32 2147483647, %v2589_v24 }
 0x174   : > { %v2101_v25 = vpop.eup %2100 }
 0x175   : > { %v709_v26 = vadd.f32 1.0, %v2101_v25 }
 0x176   : > { %v2103_v27 = vpop.eup %2102 }
 0x177   : > { %v710_v28 = vadd.f32 1.0, %v2103_v27  ;;  %2108 = vrcp.f32 %v709_v26  ;;  %v2593_v29 = vpop.eup %2104  ;;  %v722_v42 = vand.u32 2147483648, %v709_v26  ;;  %v720_v47 = vand.u32 2147483647, %v709_v26 }
 0x178   : > { %v756_v32 = vmul.f32 %v2593_v29, %v2587_v22  ;;  %vm716_vm5 = vweird.f32 %v709_v26  ;;  %vm761_vm13 = vweird.f32 %v2593_v29  ;;  %v767_v27 = vor.u32 1.1754944e-38, %v766_v3 }
 0x179   : > { %2110 = vrcp.f32 %v710_v28  ;;  %v2595_v30 = vpop.eup %2106  ;;  %v737_v49 = vand.u32 2147483648, %v710_v28  ;;  %v735_v53 = vand.u32 2147483647, %v710_v28  ;;  %v723_v55 = vor.u32 1.1754944e-38, %v722_v42  ;;  %vm762_vm15 = vmor %vm760_vm11, %vm761_vm13  ;;  %v804_v42 = vld [vmem:[%s2404_s16 + $0xa] sm:$0x1] }
 0x17a   : > { %v771_v33 = vmul.f32 %v2595_v30, %v2589_v24  ;;  %v757_v39 = vsub.f32 1.0, %v756_v32  ;;  %vm721_vm8 = vcmp.eq.f32.partialorder %v720_v47, 8.507059e+37  ;;  %vm731_vm9 = vweird.f32 %v710_v28  ;;  %v806_v47 = vld [vmem:[%s2406_s17 + $0xa] sm:$0x1] }
 0x17b   : > { %v738_v59 = vor.u32 1.1754944e-38, %v737_v49  ;;  %vm736_vm12 = vcmp.eq.f32.partialorder %v735_v53, 8.507059e+37  ;;  %vm776_vm14 = vweird.f32 %v2595_v30 }
 0x17c   : > { %v772_v41 = vsub.f32 1.0, %v771_v33  ;;  %v758_v43 = vmul.f32 %v2593_v29, %v757_v39  ;;  %vm777_vm2 = vmor %vm775_vm0, %vm776_vm14 }
 0x17d   : > { %v2109_v31 = vpop.eup %2108 }
 0x17e   : > { %v712_v34 = vmul.f32 %v2109_v31, %v709_v26  ;;  %vm717_vm4 = vweird.f32 %v2109_v31  ;;  %v773_v54 = vmul.f32 %v2595_v30, %v772_v41  ;;  %v759_v1 = vadd.f32 %v2593_v29, %v758_v43 }
 0x17f   : > { %v2111_v35 = vpop.eup %2110  ;;  %vm718_vm7 = vmor %vm716_vm5, %vm717_vm4  ;;  %vm765_vm4 = vcmp.eq.f32.partialorder %v764_v20, 8.507059e+37  ;;  %vm780_vm5 = vcmp.eq.f32.partialorder %v779_v21, 8.507059e+37 }
 0x180   : > { %v713_v37 = vsub.f32 1.0, %v712_v34  ;;  %v727_v38 = vmul.f32 %v2111_v35, %v710_v28  ;;  %vm732_vm6 = vweird.f32 %v2111_v35  ;;  %v774_v2 = vadd.f32 %v2595_v30, %v773_v54 }
 0x181   : > { %vm733_vm10 = vmor %vm731_vm9, %vm732_vm6  ;;  %v763_v25 = vsel %vm762_vm15, %v2593_v29, %v759_v1  ;;  %v782_v28 = vor.u32 1.1754944e-38, %v781_v4 }
 0x182   : > { %v714_v44 = vmul.f32 %v2109_v31, %v713_v37  ;;  %v728_v40 = vsub.f32 1.0, %v727_v38  ;;  %v778_v26 = vsel %vm777_vm2, %v2595_v30, %v774_v2 }
 0x183   : > { %v783_v32 = vsel %vm780_vm5, %v782_v28, %v778_v26 }
 0x184   : > { %v715_v50 = vadd.f32 %v2109_v31, %v714_v44  ;;  %v729_v52 = vmul.f32 %v2111_v35, %v728_v40  ;;  %v796_v34 = vsub.f32 1.0, %v783_v32  ;;  %v800_v37 = vmul.f32 %v783_v32, %v2561_v46  ;;  %v803_v46 = vld [vmem:[%s2404_s16 + $0x2] sm:$0x1] }
 0x186   : > { %v719_v56 = vsel %vm718_vm7, %v2109_v31, %v715_v50  ;;  %v730_v17 = vadd.f32 %v2111_v35, %v729_v52  ;;  %v768_v31 = vsel %vm765_vm4, %v767_v27, %v763_v25 }
 0x187   : > { %v724_v58 = vsel %vm721_vm8, %v723_v55, %v719_v56  ;;  %v795_v22 = vsub.f32 1.0, %v768_v31  ;;  %v799_v38 = vmul.f32 %v768_v31, %v2563_v51  ;;  %v805_v51 = vld [vmem:[%s2406_s17 + $0x2] sm:$0x1] }
 0x188   : > { %v734_v61 = vsel %vm733_vm10, %v2111_v35, %v730_v17  ;;  %v789_v62 = vmul.f32 %v724_v58, %v695_v48 }
 0x189   : > { %v739_v63 = vsel %vm736_vm12, %v738_v59, %v734_v61 }
 0x18a   : > { %v790_v5 = vmul.f32 %v786_v57, %v739_v63  ;;  %v791_v6 = vadd.f32 %v789_v62, %v628_v60 }
 0x18c   : > { %v792_v23 = vadd.f32 %v790_v5, %v629_v0  ;;  %2112 = vtanh.f32 %v791_v6 }
 0x18e   : > { %2114 = vtanh.f32 %v792_v23 }
 0x192   : > { %v2113_v33 = vpop.eup %2112 }
 0x193   : > { %v797_v36 = vmul.f32 %v2113_v33, %v795_v22 }
 0x194   : > { %v2115_v35 = vpop.eup %2114 }
 0x195   : > { %v798_v24 = vmul.f32 %v2115_v35, %v796_v34  ;;  %v2622_v30 = vadd.f32 %v799_v38, %v797_v36 }
 0x197   : > { %v2620_v29 = vadd.f32 %v800_v37, %v798_v24 }
 0x199   : > { %v811_v39 = vrot.slane %v2620_v29, 7 }
 0x19b   : > { %v812_v41 = vsel %vm633_vm3, %v811_v39, %v2622_v30 }
 0x19c   : > { %1997 = vmatmul.msk.f32.vlgmr.msrb.gmra.mxu2 %vm448_vm1, %v812_v41  ;;  %1998 = vmatmul.msk.f32.vlgmr.msrb.gmra.mxu3 %vm448_vm1, %v812_v41 }
 0x19d   : > { %1999 = vmatmul.msk.f32.vlgmr.msra.gmra.mxu0 %vm448_vm1, %v812_v41  ;;  %1223 = vmatpush.msrb.mxu2 %v2450_v13 }
 0x19e   : > { %1361 = vmatpush.msrb.mxu3 %v2415_v7  ;;  %1381 = vmatpush.msra.mxu0 %v2420_v8 }
 0x19f   : > { %1224 = vmatpush.msrb.mxu2 %v2455_v14 }
 0x1a0   : > { %1362 = vmatpush.msrb.mxu3 %v2425_v9  ;;  %1382 = vmatpush.msra.mxu0 %v2432_v10 }
 0x1a1   : > { %1225 = vmatpush.msrb.mxu2 %v2477_v18 }
 0x1a2   : > { %1363 = vmatpush.msrb.mxu3 %v2437_v11  ;;  %1383 = vmatpush.msra.mxu0 %v2442_v12 }
 0x1a3   : > { %1226 = vmatpush.msrb.mxu2 %v2489_v19 }
 0x1a4   : > { %1364 = vmatpush.msrb.mxu3 %v2460_v15  ;;  %1384 = vmatpush.msra.mxu0 %v2465_v16 }
 0x21a   : > { %v872_v20 = vpop.f32.mrf.mxu0 }
 0x21b   : > { %v873_v33 = vadd.f32 %v2537_v45, %v872_v20 }
 0x21f   : > { %v832_v44 = vpop.f32.mrf.mxu2  ;;  %v852_v40 = vpop.f32.mrf.mxu3 }
 0x220   : > { %v876_v48 = vrot.slane %v832_v44, 1  ;;  %v879_v49 = vadd.f32 %v832_v44, %v803_v46  ;;  %v920_v50 = vrot.slane %v852_v40, 1  ;;  %v923_v52 = vadd.f32 %v852_v40, %v805_v51 }
 0x221   : > { %v964_v51 = vrot.slane %v873_v33, 1 }
 0x222   : > { %v880_v53 = vadd.f32 %v876_v48, %v804_v42  ;;  %v2000_v43 = vmul.f32 -1.442695, %v879_v49  ;;  %v924_v54 = vadd.f32 %v920_v50, %v806_v47  ;;  %v2002_v55 = vmul.f32 -1.442695, %v923_v52  ;;  %v807_v47 = vld [vmem:[%s2408_s18 + $0x2] sm:$0x1] }
 0x223   : > { %v808_v50 = vld [vmem:[%s2408_s18 + $0xa] sm:$0x1] }
 0x224   : > { %2116 = vpow2.f32 %v2000_v43  ;;  %v2001_v56 = vmul.f32 -1.442695, %v880_v53  ;;  %v2003_v17 = vmul.f32 -1.442695, %v924_v54 }
 0x225   : > { %2118 = vpow2.f32 %v2002_v55 }
 0x226   : > { %2120 = vpow2.f32 %v2001_v56 }
 0x227   : > { %2122 = vpow2.f32 %v2003_v17 }
 0x22a   : > { %v2117_v57 = vpop.eup %2116 }
 0x22b   : > { %v2119_v58 = vpop.eup %2118  ;;  %v887_v59 = vadd.f32 1.0, %v2117_v57 }
 0x22c   : > { %v2121_v60 = vpop.eup %2120  ;;  %v2646_v61 = vadd.f32 1.0, %v2119_v58 }
 0x22d   : > { %v2123_v62 = vpop.eup %2122  ;;  %v888_v63 = vadd.f32 1.0, %v2121_v60  ;;  %2124 = vrcp.f32 %v887_v59  ;;  %v900_v25 = vand.u32 2147483648, %v887_v59  ;;  %v898_v31 = vand.u32 2147483647, %v887_v59 }
 0x22e   : > { %v2648_v0 = vadd.f32 1.0, %v2123_v62  ;;  %2126 = vrcp.f32 %v2646_v61  ;;  %vm894_vm7 = vweird.f32 %v887_v59  ;;  %vm938_vm13 = vweird.f32 %v2646_v61 }
 0x22f   : > { %2128 = vrcp.f32 %v888_v63  ;;  %v915_v22 = vand.u32 2147483648, %v888_v63  ;;  %v913_v24 = vand.u32 2147483647, %v888_v63  ;;  %v901_v37 = vor.u32 1.1754944e-38, %v900_v25 }
 0x230   : > { %2130 = vrcp.f32 %v2648_v0  ;;  %vm899_vm10 = vcmp.eq.f32.partialorder %v898_v31, 8.507059e+37  ;;  %vm909_vm11 = vweird.f32 %v888_v63  ;;  %v944_v54 = vand.u32 2147483648, %v2646_v61 }
 0x231   : > { %v916_v44 = vor.u32 1.1754944e-38, %v915_v22  ;;  %vm914_vm14 = vcmp.eq.f32.partialorder %v913_v24, 8.507059e+37  ;;  %v959_v55 = vand.u32 2147483648, %v2648_v0  ;;  %vm953_vm2 = vweird.f32 %v2648_v0 }
 0x232   : > { %v942_v17 = vand.u32 2147483647, %v2646_v61  ;;  %v957_v57 = vand.u32 2147483647, %v2648_v0  ;;  %v945_v62 = vor.u32 1.1754944e-38, %v944_v54 }
 0x233   : > { %v2125_v1 = vpop.eup %2124 }
 0x234   : > { %v2652_v2 = vpop.eup %2126  ;;  %v890_v3 = vmul.f32 %v2125_v1, %v887_v59  ;;  %vm895_vm6 = vweird.f32 %v2125_v1 }
 0x235   : > { %v2129_v4 = vpop.eup %2128  ;;  %v934_v5 = vmul.f32 %v2652_v2, %v2646_v61  ;;  %vm896_vm9 = vmor %vm894_vm7, %vm895_vm6  ;;  %vm939_vm15 = vweird.f32 %v2652_v2  ;;  %vm943_vm6 = vcmp.eq.f32.partialorder %v942_v17, 8.507059e+37  ;;  %vm958_vm7 = vcmp.eq.f32.partialorder %v957_v57, 8.507059e+37 }
 0x236   : > { %v2656_v6 = vpop.eup %2130  ;;  %v891_v21 = vsub.f32 1.0, %v890_v3  ;;  %v905_v23 = vmul.f32 %v2129_v4, %v888_v63  ;;  %vm910_vm8 = vweird.f32 %v2129_v4  ;;  %vm940_vm4 = vmor %vm938_vm13, %vm939_vm15  ;;  %v960_v63 = vor.u32 1.1754944e-38, %v959_v55 }
 0x237   : > { %v935_v26 = vsub.f32 1.0, %v934_v5  ;;  %v949_v27 = vmul.f32 %v2656_v6, %v2648_v0  ;;  %vm911_vm12 = vmor %vm909_vm11, %vm910_vm8  ;;  %vm954_vm0 = vweird.f32 %v2656_v6 }
 0x238   : > { %v892_v28 = vmul.f32 %v2125_v1, %v891_v21  ;;  %v906_v32 = vsub.f32 1.0, %v905_v23  ;;  %vm955_vm5 = vmor %vm953_vm2, %vm954_vm0 }
 0x239   : > { %v950_v34 = vsub.f32 1.0, %v949_v27  ;;  %v936_v38 = vmul.f32 %v2652_v2, %v935_v26 }
 0x23a   : > { %v893_v35 = vadd.f32 %v2125_v1, %v892_v28  ;;  %v907_v36 = vmul.f32 %v2129_v4, %v906_v32  ;;  %v984_v28 = vld [vmem:[%s2406_s17 + $0xb] sm:$0x1] }
 0x23b   : > { %v951_v39 = vmul.f32 %v2656_v6, %v950_v34  ;;  %v937_v52 = vadd.f32 %v2652_v2, %v936_v38 }
 0x23c   : > { %v897_v41 = vsel %vm896_vm9, %v2125_v1, %v893_v35  ;;  %v908_v46 = vadd.f32 %v2129_v4, %v907_v36 }
 0x23d   : > { %v902_v42 = vsel %vm899_vm10, %v901_v37, %v897_v41  ;;  %v952_v53 = vadd.f32 %v2656_v6, %v951_v39  ;;  %v941_v59 = vsel %vm940_vm4, %v2652_v2, %v937_v52 }
 0x23e   : > { %v912_v40 = vsel %vm911_vm12, %v2129_v4, %v908_v46  ;;  %v967_v48 = vmul.f32 %v902_v42, %v873_v33  ;;  %v946_v1 = vsel %vm943_vm6, %v945_v62, %v941_v59 }
 0x23f   : > { %v917_v49 = vsel %vm914_vm14, %v916_v44, %v912_v40  ;;  %v956_v60 = vsel %vm955_vm5, %v2656_v6, %v952_v53  ;;  %v973_v5 = vsub.f32 1.0, %v946_v1  ;;  %v977_v25 = vmul.f32 %v946_v1, %v2622_v30  ;;  %v983_v30 = vld [vmem:[%s2406_s17 + $0x3] sm:$0x1] }
 0x240   : > { %v968_v43 = vmul.f32 %v964_v51, %v917_v49  ;;  %v969_v56 = vadd.f32 %v967_v48, %v807_v47  ;;  %v961_v3 = vsel %vm958_vm7, %v960_v63, %v956_v60  ;;  %v985_v60 = vld [vmem:[%s2408_s18 + $0x3] sm:$0x1] }
 0x241   : > { %v974_v20 = vsub.f32 1.0, %v961_v3  ;;  %v978_v23 = vmul.f32 %v961_v3, %v2620_v29 }
 0x242   : > { %v970_v58 = vadd.f32 %v968_v43, %v808_v50  ;;  %2132 = vtanh.f32 %v969_v56 }
 0x244   : > { %2134 = vtanh.f32 %v970_v58 }
 0x248   : > { %v2133_v4 = vpop.eup %2132 }
 0x249   : > { %v975_v21 = vmul.f32 %v2133_v4, %v973_v5 }
 0x24a   : > { %v2135_v61 = vpop.eup %2134 }
 0x24b   : > { %v976_v0 = vmul.f32 %v2135_v61, %v974_v20  ;;  %v2683_v6 = vadd.f32 %v977_v25, %v975_v21 }
 0x24d   : > { %v2681_v2 = vadd.f32 %v978_v23, %v976_v0  ;;  %v986_v0 = vld [vmem:[%s2408_s18 + $0xb] sm:$0x1] }
 0x24f   : > { %v989_v26 = vrot.slane %v2681_v2, 7 }
 0x251   : > { %v990_v27 = vsel %vm633_vm3, %v989_v26, %v2683_v6 }
 0x252   : > { %2004 = vmatmul.msk.f32.vlgmr.msra.gmra.mxu1 %vm448_vm1, %v990_v27  ;;  %2005 = vmatmul.msk.f32.vlgmr.msra.gmra.mxu2 %vm448_vm1, %v990_v27 }
 0x253   : > { %2006 = vmatmul.msk.f32.vlgmr.msra.gmra.mxu3 %vm448_vm1, %v990_v27  ;;  %1401 = vmatpush.msra.mxu1 %v2450_v13 }
 0x254   : > { %1539 = vmatpush.msra.mxu2 %v2415_v7  ;;  %1559 = vmatpush.msra.mxu3 %v2420_v8  ;;  %v981_v7 = vld [vmem:[%s2404_s16 + $0x3] sm:$0x1]  ;;  %v982_v8 = vld [vmem:[%s2404_s16 + $0xb] sm:$0x1] }
 0x255   : > { %1402 = vmatpush.msra.mxu1 %v2455_v14 }
 0x256   : > { %1540 = vmatpush.msra.mxu2 %v2425_v9  ;;  %1560 = vmatpush.msra.mxu3 %v2432_v10 }
 0x257   : > { %1403 = vmatpush.msra.mxu1 %v2477_v18 }
 0x258   : > { %1541 = vmatpush.msra.mxu2 %v2437_v11  ;;  %1561 = vmatpush.msra.mxu3 %v2442_v12 }
 0x259   : > { %1404 = vmatpush.msra.mxu1 %v2489_v19 }
 0x25a   : > { %1542 = vmatpush.msra.mxu2 %v2460_v15  ;;  %1562 = vmatpush.msra.mxu3 %v2465_v16 }
 0x2cf   : > { %v1010_v13 = vpop.f32.mrf.mxu1 }
 0x2d0   : > { %v1054_v14 = vrot.slane %v1010_v13, 1  ;;  %v1057_v9 = vadd.f32 %v1010_v13, %v981_v7 }
 0x2d2   : > { %v1058_v29 = vadd.f32 %v1054_v14, %v982_v8  ;;  %v2007_v10 = vmul.f32 -1.442695, %v1057_v9 }
 0x2d4   : > { %2136 = vpow2.f32 %v2007_v10  ;;  %v2008_v18 = vmul.f32 -1.442695, %v1058_v29 }
 0x2d5   : > { %v1030_v11 = vpop.f32.mrf.mxu2 }
 0x2d6   : > { %2138 = vpow2.f32 %v2008_v18  ;;  %v1098_v12 = vrot.slane %v1030_v11, 1  ;;  %v1101_v31 = vadd.f32 %v1030_v11, %v983_v30  ;;  %v1050_v46 = vpop.f32.mrf.mxu3 }
 0x2d7   : > { %v1051_v50 = vadd.f32 %v2537_v45, %v1050_v46  ;;  %v2241_v46 = vld [vmem:[%s2991_s4 + $0x10] sm:$0xff] }
 0x2d8   : > { %v1102_v19 = vadd.f32 %v1098_v12, %v984_v28  ;;  %v2009_v32 = vmul.f32 -1.442695, %v1101_v31 }
 0x2d9   : > { %v1142_v63 = vrot.slane %v1051_v50, 1 }
 0x2da   : > { %v2137_v15 = vpop.eup %2136  ;;  %2140 = vpow2.f32 %v2009_v32  ;;  %v2010_v16 = vmul.f32 -1.442695, %v1102_v19 }
 0x2db   : > { %v1065_v33 = vadd.f32 1.0, %v2137_v15 }
 0x2dc   : > { %v2139_v22 = vpop.eup %2138  ;;  %2142 = vpow2.f32 %v2010_v16 }
 0x2dd   : > { %v1066_v34 = vadd.f32 1.0, %v2139_v22  ;;  %2144 = vrcp.f32 %v1065_v33  ;;  %v1078_v44 = vand.u32 2147483648, %v1065_v33  ;;  %v1076_v40 = vand.u32 2147483647, %v1065_v33 }
 0x2de   : > { %vm1072_vm9 = vweird.f32 %v1065_v33 }
 0x2df   : > { %2146 = vrcp.f32 %v1066_v34  ;;  %v1093_v54 = vand.u32 2147483648, %v1066_v34  ;;  %v1079_v56 = vor.u32 1.1754944e-38, %v1078_v44  ;;  %v1091_v17 = vand.u32 2147483647, %v1066_v34  ;;  %v2244_v44 = vld [vmem:[%s2991_s4 + $0x8] sm:$0xff] }
 0x2e0   : > { %v2141_v35 = vpop.eup %2140  ;;  %vm1077_vm12 = vcmp.eq.f32.partialorder %v1076_v40, 8.507059e+37  ;;  %vm1087_vm13 = vweird.f32 %v1066_v34  ;;  %v2246_v40 = vld [vmem:[%s2990_s3] sm:$0xff] }
 0x2e1   : > { %v2707_v36 = vadd.f32 1.0, %v2141_v35  ;;  %v1094_v4 = vor.u32 1.1754944e-38, %v1093_v54  ;;  %vm1092_vm2 = vcmp.eq.f32.partialorder %v1091_v17, 8.507059e+37 }
 0x2e2   : > { %v2143_v24 = vpop.eup %2142 }
 0x2e3   : > { %v2145_v37 = vpop.eup %2144  ;;  %v2709_v38 = vadd.f32 1.0, %v2143_v24  ;;  %2148 = vrcp.f32 %v2707_v36  ;;  %vm1116_vm4 = vweird.f32 %v2707_v36  ;;  %v1122_v26 = vand.u32 2147483648, %v2707_v36 }
 0x2e4   : > { %v1068_v39 = vmul.f32 %v2145_v37, %v1065_v33  ;;  %vm1073_vm8 = vweird.f32 %v2145_v37  ;;  %v1120_v13 = vand.u32 2147483647, %v2707_v36 }
 0x2e5   : > { %v2147_v41 = vpop.eup %2146  ;;  %2150 = vrcp.f32 %v2709_v38  ;;  %vm1074_vm10 = vmor %vm1072_vm9, %vm1073_vm8  ;;  %v1137_v27 = vand.u32 2147483648, %v2709_v38  ;;  %vm1131_vm6 = vweird.f32 %v2709_v38  ;;  %v1135_v9 = vand.u32 2147483647, %v2709_v38 }
 0x2e6   : > { %v1069_v51 = vsub.f32 1.0, %v1068_v39  ;;  %v1083_v42 = vmul.f32 %v2147_v41, %v1066_v34  ;;  %vm1088_vm11 = vweird.f32 %v2147_v41  ;;  %v1123_v18 = vor.u32 1.1754944e-38, %v1122_v26  ;;  %v2758_v39 = vld [vmem:[%s2992_s5 + $0x10] sm:$0xff] }
 0x2e7   : > { %vm1089_vm14 = vmor %vm1087_vm13, %vm1088_vm11  ;;  %v1138_v28 = vor.u32 1.1754944e-38, %v1137_v27  ;;  %vm1121_vm8 = vcmp.eq.f32.partialorder %v1120_v13, 8.507059e+37  ;;  %vm1136_vm9 = vcmp.eq.f32.partialorder %v1135_v9, 8.507059e+37 }
 0x2e8   : > { %v1070_v47 = vmul.f32 %v2145_v37, %v1069_v51  ;;  %v1084_v48 = vsub.f32 1.0, %v1083_v42  ;;  %v2770_v51 = vld [vmem:[%s2992_s5 + $0x8] sm:$0xff] }
 0x2e9   : > { %v2149_v49 = vpop.eup %2148  ;;  %v2243_v42 = vld [vmem:[%s2990_s3 + $0x8] sm:$0xff] }
 0x2ea   : > { %v1112_v52 = vmul.f32 %v2149_v49, %v2707_v36  ;;  %v1071_v53 = vadd.f32 %v2145_v37, %v1070_v47  ;;  %v1085_v43 = vmul.f32 %v2147_v41, %v1084_v48  ;;  %vm1117_vm15 = vweird.f32 %v2149_v49  ;;  %v2782_v47 = vld [vmem:[%s2992_s5] sm:$0xff] }
 0x2eb   : > { %v2151_v55 = vpop.eup %2150  ;;  %vm2721_vm5 = vmor %vm1116_vm4, %vm1117_vm15  ;;  %v2247_v48 = vld [vmem:[%s2991_s4] sm:$0xff] }
 0x2ec   : > { %v1113_v57 = vsub.f32 1.0, %v1112_v52  ;;  %v1127_v58 = vmul.f32 %v2151_v55, %v2709_v38  ;;  %v1075_v59 = vsel %vm1074_vm10, %v2145_v37, %v1071_v53  ;;  %v1086_v45 = vadd.f32 %v2147_v41, %v1085_v43  ;;  %v2238_v38 = vld [vmem:[%s2991_s4 + $0x18] sm:$0xff] }
 0x2ed   : > { %v1080_v62 = vsel %vm1077_vm12, %v1079_v56, %v1075_v59  ;;  %vm1132_vm0 = vweird.f32 %v2151_v55  ;;  %v1160_v52 = vld [vmem:[%s2404_s16 + $0xc] sm:$0x1] }
 0x2ee   : > { %v1114_v1 = vmul.f32 %v2149_v49, %v1113_v57  ;;  %v1128_v3 = vsub.f32 1.0, %v1127_v58  ;;  %v1145_v5 = vmul.f32 %v1080_v62, %v1051_v50  ;;  %v1090_v20 = vsel %vm1089_vm14, %v2147_v41, %v1086_v45  ;;  %vm1133_vm7 = vmor %vm1131_vm6, %vm1132_vm0  ;;  %v2240_v41 = vld [vmem:[%s2990_s3 + $0x10] sm:$0xff]  ;;  %v1162_v43 = vld [vmem:[%s2406_s17 + $0xc] sm:$0x1] }
 0x2ef   : > { %v1095_v23 = vsel %vm1092_vm2, %v1094_v4, %v1090_v20  ;;  %v1161_v50 = vld [vmem:[%s2406_s17 + $0x4] sm:$0x1] }
 0x2f0   : > { %v1115_v61 = vadd.f32 %v2149_v49, %v1114_v1  ;;  %v1129_v21 = vmul.f32 %v2151_v55, %v1128_v3  ;;  %v1147_v25 = vadd.f32 %v1145_v5, %v985_v60  ;;  %v1146_v7 = vmul.f32 %v1142_v63, %v1095_v23 }
 0x2f2   : > { %v1130_v14 = vadd.f32 %v2151_v55, %v1129_v21  ;;  %v1148_v29 = vadd.f32 %v1146_v7, %v986_v0  ;;  %2152 = vtanh.f32 %v1147_v25  ;;  %v1119_v10 = vsel %vm2721_vm5, %v2149_v49, %v1115_v61  ;;  %v1159_v49 = vld [vmem:[%s2404_s16 + $0x4] sm:$0x1] }
 0x2f3   : > { %v1124_v11 = vsel %vm1121_vm8, %v1123_v18, %v1119_v10 }
 0x2f4   : > { %v1134_v30 = vsel %vm1133_vm7, %v2151_v55, %v1130_v14  ;;  %2154 = vtanh.f32 %v1148_v29  ;;  %v1151_v19 = vsub.f32 1.0, %v1124_v11  ;;  %v1155_v34 = vmul.f32 %v1124_v11, %v2683_v6  ;;  %v2237_v6 = vld [vmem:[%s2990_s3 + $0x18] sm:$0xff] }
 0x2f5   : > { %v1139_v12 = vsel %vm1136_vm9, %v1138_v28, %v1134_v30 }
 0x2f6   : > { %v1152_v32 = vsub.f32 1.0, %v1139_v12  ;;  %v1156_v22 = vmul.f32 %v1139_v12, %v2681_v2  ;;  %v2746_v2 = vld [vmem:[%s2992_s5 + $0x18] sm:$0xff] }
 0x2f8   : > { %v2153_v31 = vpop.eup %2152 }
 0x2f9   : > { %v1153_v16 = vmul.f32 %v2153_v31, %v1151_v19  ;;  %v2812_v31 = vld [vmem:[%s2993_s6] ss:$0 sm:$0xff] }
 0x2fa   : > { %v2155_v15 = vpop.eup %2154 }
 0x2fb   : > { %v1154_v33 = vmul.f32 %v2155_v15, %v1152_v32  ;;  %v2735_v36 = vadd.f32 %v1155_v34, %v1153_v16 }
 0x2fd   : > { %v2733_v35 = vadd.f32 %v1156_v22, %v1154_v33 }
 0x2ff   : > { %v1167_v24 = vrot.slane %v2733_v35, 7 }
 0x301   : > { %v1168_v37 = vsel %vm633_vm3, %v1167_v24, %v2735_v36 }
 0x302   : > { %2011 = vmatmul.msk.f32.vlgmr.msrb.gmra.mxu0 %vm448_vm1, %v1168_v37  ;;  %2012 = vmatmul.msk.f32.vlgmr.msrb.gmra.mxu1 %vm448_vm1, %v1168_v37 }
 0x303   : > { %2013 = vmatmul.msk.f32.vlgmr.msrb.gmra.mxu2 %vm448_vm1, %v1168_v37  ;;  %1579 = vmatpush.msrb.mxu0 %v2746_v2 }
 0x304   : > { %1717 = vmatpush.msrb.mxu1 %v2237_v6  ;;  %1737 = vmatpush.msrb.mxu2 %v2238_v38  ;;  %v1163_v38 = vld [vmem:[%s2408_s18 + $0x4] sm:$0x1] }
 0x305   : > { %1580 = vmatpush.msrb.mxu0 %v2758_v39 }
 0x306   : > { %1718 = vmatpush.msrb.mxu1 %v2240_v41  ;;  %1738 = vmatpush.msrb.mxu2 %v2241_v46 }
 0x307   : > { %1581 = vmatpush.msrb.mxu0 %v2770_v51 }
 0x308   : > { %1719 = vmatpush.msrb.mxu1 %v2243_v42  ;;  %1739 = vmatpush.msrb.mxu2 %v2244_v44 }
 0x309   : > { %1582 = vmatpush.msrb.mxu0 %v2782_v47 }
 0x30a   : > { %1720 = vmatpush.msrb.mxu1 %v2246_v40  ;;  %1740 = vmatpush.msrb.mxu2 %v2247_v48 }
 0x37f   : > { %v1188_v53 = vpop.f32.mrf.mxu0  ;;  %v1208_v54 = vpop.f32.mrf.mxu1 }
 0x380   : > { %v1232_v55 = vrot.slane %v1188_v53, 1  ;;  %v1235_v56 = vadd.f32 %v1188_v53, %v1159_v49  ;;  %v1276_v17 = vrot.slane %v1208_v54, 1  ;;  %v1279_v57 = vadd.f32 %v1208_v54, %v1161_v50  ;;  %v1164_v50 = vld [vmem:[%s2408_s18 + $0xc] sm:$0x1] }
 0x382   : > { %v1236_v58 = vadd.f32 %v1232_v55, %v1160_v52  ;;  %v2014_v59 = vmul.f32 -1.442695, %v1235_v56  ;;  %v1280_v60 = vadd.f32 %v1276_v17, %v1162_v43  ;;  %v2016_v62 = vmul.f32 -1.442695, %v1279_v57 }
 0x384   : > { %2156 = vpow2.f32 %v2014_v59  ;;  %v2015_v45 = vmul.f32 -1.442695, %v1236_v58  ;;  %v2017_v63 = vmul.f32 -1.442695, %v1280_v60 }
 0x385   : > { %2158 = vpow2.f32 %v2016_v62 }
 0x386   : > { %2160 = vpow2.f32 %v2015_v45  ;;  %v1228_v13 = vpop.f32.mrf.mxu2 }
 0x387   : > { %2162 = vpow2.f32 %v2017_v63  ;;  %v1229_v19 = vadd.f32 %v2812_v31, %v1228_v13 }
 0x389   : > { %v1320_v42 = vrot.slane %v1229_v19, 1 }
 0x38a   : > { %v2157_v1 = vpop.eup %2156 }
 0x38b   : > { %v2159_v3 = vpop.eup %2158  ;;  %v1243_v4 = vadd.f32 1.0, %v2157_v1 }
 0x38c   : > { %v2161_v5 = vpop.eup %2160  ;;  %v2795_v20 = vadd.f32 1.0, %v2159_v3 }
 0x38d   : > { %v2163_v61 = vpop.eup %2162  ;;  %v1244_v21 = vadd.f32 1.0, %v2161_v5  ;;  %2164 = vrcp.f32 %v1243_v4  ;;  %v1256_v30 = vand.u32 2147483648, %v1243_v4  ;;  %v1254_v28 = vand.u32 2147483647, %v1243_v4 }
 0x38e   : > { %v2797_v0 = vadd.f32 1.0, %v2163_v61  ;;  %2166 = vrcp.f32 %v2795_v20  ;;  %vm1250_vm11 = vweird.f32 %v1243_v4  ;;  %vm1294_vm0 = vweird.f32 %v2795_v20 }
 0x38f   : > { %2168 = vrcp.f32 %v1244_v21  ;;  %v1271_v32 = vand.u32 2147483648, %v1244_v21  ;;  %v1269_v33 = vand.u32 2147483647, %v1244_v21  ;;  %v1257_v24 = vor.u32 1.1754944e-38, %v1256_v30  ;;  %v1338_v30 = vld [vmem:[%s2404_s16 + $0xd] sm:$0x1] }
 0x390   : > { %2170 = vrcp.f32 %v2797_v0  ;;  %vm1255_vm14 = vcmp.eq.f32.partialorder %v1254_v28, 8.507059e+37  ;;  %vm1265_vm15 = vweird.f32 %v1244_v21  ;;  %v1300_v53 = vand.u32 2147483648, %v2795_v20 }
 0x391   : > { %v1272_v46 = vor.u32 1.1754944e-38, %v1271_v32  ;;  %vm1270_vm5 = vcmp.eq.f32.partialorder %v1269_v33, 8.507059e+37  ;;  %v1315_v43 = vand.u32 2147483648, %v2797_v0  ;;  %v1298_v56 = vand.u32 2147483647, %v2795_v20 }
 0x392   : > { %vm1309_vm8 = vweird.f32 %v2797_v0  ;;  %v1313_v17 = vand.u32 2147483647, %v2797_v0  ;;  %v1301_v60 = vor.u32 1.1754944e-38, %v1300_v53 }
 0x393   : > { %v2165_v23 = vpop.eup %2164  ;;  %v1316_v62 = vor.u32 1.1754944e-38, %v1315_v43 }
 0x394   : > { %v2801_v25 = vpop.eup %2166  ;;  %v1246_v26 = vmul.f32 %v2165_v23, %v1243_v4  ;;  %vm1251_vm10 = vweird.f32 %v2165_v23 }
 0x395   : > { %v2169_v27 = vpop.eup %2168  ;;  %v1290_v7 = vmul.f32 %v2801_v25, %v2795_v20  ;;  %vm1252_vm13 = vmor %vm1250_vm11, %vm1251_vm10  ;;  %vm1295_vm4 = vweird.f32 %v2801_v25  ;;  %vm1299_vm10 = vcmp.eq.f32.partialorder %v1298_v56, 8.507059e+37  ;;  %vm1314_vm11 = vcmp.eq.f32.partialorder %v1313_v17, 8.507059e+37 }
 0x396   : > { %v2805_v8 = vpop.eup %2170  ;;  %v1247_v14 = vsub.f32 1.0, %v1246_v26  ;;  %v1261_v9 = vmul.f32 %v2169_v27, %v1244_v21  ;;  %vm1266_vm12 = vweird.f32 %v2169_v27  ;;  %vm1296_vm7 = vmor %vm1294_vm0, %vm1295_vm4 }
 0x397   : > { %v1291_v29 = vsub.f32 1.0, %v1290_v7  ;;  %v1305_v10 = vmul.f32 %v2805_v8, %v2797_v0  ;;  %vm1267_vm2 = vmor %vm1265_vm15, %vm1266_vm12  ;;  %vm1310_vm6 = vweird.f32 %v2805_v8 }
 0x398   : > { %v1248_v18 = vmul.f32 %v2165_v23, %v1247_v14  ;;  %v1262_v11 = vsub.f32 1.0, %v1261_v9  ;;  %vm1311_vm9 = vmor %vm1309_vm8, %vm1310_vm6 }
 0x399   : > { %v1306_v12 = vsub.f32 1.0, %v1305_v10  ;;  %v1292_v22 = vmul.f32 %v2801_v25, %v1291_v29  ;;  %v1337_v29 = vld [vmem:[%s2404_s16 + $0x5] sm:$0x1] }
 0x39a   : > { %v1249_v15 = vadd.f32 %v2165_v23, %v1248_v18  ;;  %v1263_v16 = vmul.f32 %v2169_v27, %v1262_v11 }
 0x39b   : > { %v1307_v34 = vmul.f32 %v2805_v8, %v1306_v12  ;;  %v1293_v48 = vadd.f32 %v2801_v25, %v1292_v22 }
 0x39c   : > { %v1253_v37 = vsel %vm1252_vm13, %v2165_v23, %v1249_v15  ;;  %v1264_v6 = vadd.f32 %v2169_v27, %v1263_v16 }
 0x39d   : > { %v1258_v41 = vsel %vm1255_vm14, %v1257_v24, %v1253_v37  ;;  %v1308_v49 = vadd.f32 %v2805_v8, %v1307_v34  ;;  %v1297_v58 = vsel %vm1296_vm7, %v2801_v25, %v1293_v48 }
 0x39e   : > { %v1268_v44 = vsel %vm1267_vm2, %v2169_v27, %v1264_v6  ;;  %v1323_v40 = vmul.f32 %v1258_v41, %v1229_v19  ;;  %v1302_v45 = vsel %vm1299_vm10, %v1301_v60, %v1297_v58 }
 0x39f   : > { %v1273_v52 = vsel %vm1270_vm5, %v1272_v46, %v1268_v44  ;;  %v1312_v59 = vsel %vm1311_vm9, %v2805_v8, %v1308_v49  ;;  %v1329_v3 = vsub.f32 1.0, %v1302_v45  ;;  %v1333_v0 = vmul.f32 %v1302_v45, %v2735_v36  ;;  %v1340_v36 = vld [vmem:[%s2406_s17 + $0xd] sm:$0x1] }
 0x3a0   : > { %v1324_v54 = vmul.f32 %v1320_v42, %v1273_v52  ;;  %v1325_v55 = vadd.f32 %v1323_v40, %v1163_v38  ;;  %v1317_v63 = vsel %vm1314_vm11, %v1316_v62, %v1312_v59 }
 0x3a1   : > { %v1330_v4 = vsub.f32 1.0, %v1317_v63  ;;  %v1334_v21 = vmul.f32 %v1317_v63, %v2733_v35  ;;  %v1339_v35 = vld [vmem:[%s2406_s17 + $0x5] sm:$0x1] }
 0x3a2   : > { %v1326_v57 = vadd.f32 %v1324_v54, %v1164_v50  ;;  %2172 = vtanh.f32 %v1325_v55 }
 0x3a4   : > { %2174 = vtanh.f32 %v1326_v57 }
 0x3a8   : > { %v2173_v1 = vpop.eup %2172 }
 0x3a9   : > { %v1331_v20 = vmul.f32 %v2173_v1, %v1329_v3 }
 0x3aa   : > { %v2175_v5 = vpop.eup %2174 }
 0x3ab   : > { %v1332_v61 = vmul.f32 %v2175_v5, %v1330_v4  ;;  %v2837_v25 = vadd.f32 %v1333_v0, %v1331_v20  ;;  %v1341_v4 = vld [vmem:[%s2408_s18 + $0x5] sm:$0x1] }
 0x3ad   : > { %v2835_v23 = vadd.f32 %v1334_v21, %v1332_v61  ;;  %v1342_v21 = vld [vmem:[%s2408_s18 + $0xd] sm:$0x1] }
 0x3af   : > { %v1345_v26 = vrot.slane %v2835_v23, 7 }
 0x3b1   : > { %v1346_v27 = vsel %vm633_vm3, %v1345_v26, %v2837_v25 }
 0x3b2   : > { %2018 = vmatmul.msk.f32.vlgmr.msrb.gmra.mxu3 %vm448_vm1, %v1346_v27  ;;  %2019 = vmatmul.msk.f32.vlgmr.msra.gmra.mxu0 %vm448_vm1, %v1346_v27 }
 0x3b3   : > { %2020 = vmatmul.msk.f32.vlgmr.msra.gmra.mxu1 %vm448_vm1, %v1346_v27  ;;  %1757 = vmatpush.msrb.mxu3 %v2746_v2 }
 0x3b5   : > { %1758 = vmatpush.msrb.mxu3 %v2758_v39 }
 0x3b7   : > { %1759 = vmatpush.msrb.mxu3 %v2770_v51 }
 0x3b9   : > { %1760 = vmatpush.msrb.mxu3 %v2782_v47 }
 0x42f   : > { %v1386_v7 = vpop.f32.mrf.mxu0 }
 0x430   : > { %v1454_v8 = vrot.slane %v1386_v7, 1  ;;  %v1457_v13 = vadd.f32 %v1386_v7, %v1339_v35  ;;  %v1406_v42 = vpop.f32.mrf.mxu1 }
 0x431   : > { %v1407_v54 = vadd.f32 %v2812_v31, %v1406_v42 }
 0x432   : > { %v1458_v14 = vadd.f32 %v1454_v8, %v1340_v36  ;;  %v2023_v9 = vmul.f32 -1.442695, %v1457_v13 }
 0x433   : > { %v1498_v63 = vrot.slane %v1407_v54, 1 }
 0x434   : > { %2176 = vpow2.f32 %v2023_v9  ;;  %v2024_v10 = vmul.f32 -1.442695, %v1458_v14 }
 0x435   : > { %v1366_v18 = vpop.f32.mrf.mxu3 }
 0x436   : > { %2178 = vpow2.f32 %v2024_v10  ;;  %v1410_v2 = vrot.slane %v1366_v18, 1  ;;  %v1413_v28 = vadd.f32 %v1366_v18, %v1337_v29 }
 0x438   : > { %v1414_v39 = vadd.f32 %v1410_v2, %v1338_v30  ;;  %v2021_v11 = vmul.f32 -1.442695, %v1413_v28 }
 0x43a   : > { %v2177_v51 = vpop.eup %2176  ;;  %2180 = vpow2.f32 %v2021_v11  ;;  %v2022_v47 = vmul.f32 -1.442695, %v1414_v39 }
 0x43b   : > { %v2853_v12 = vadd.f32 1.0, %v2177_v51 }
 0x43c   : > { %v2179_v19 = vpop.eup %2178  ;;  %2182 = vpow2.f32 %v2022_v47 }
 0x43d   : > { %v2855_v32 = vadd.f32 1.0, %v2179_v19  ;;  %2184 = vrcp.f32 %v2853_v12  ;;  %vm1472_vm4 = vweird.f32 %v2853_v12  ;;  %v1478_v27 = vand.u32 2147483648, %v2853_v12 }
 0x43e   : > { %v1476_v8 = vand.u32 2147483647, %v2853_v12 }
 0x43f   : > { %2186 = vrcp.f32 %v2855_v32  ;;  %v1493_v35 = vand.u32 2147483648, %v2855_v32  ;;  %vm1487_vm9 = vweird.f32 %v2855_v32  ;;  %v1491_v13 = vand.u32 2147483647, %v2855_v32 }
 0x440   : > { %v2181_v15 = vpop.eup %2180  ;;  %v1479_v10 = vor.u32 1.1754944e-38, %v1478_v27 }
 0x441   : > { %v1421_v16 = vadd.f32 1.0, %v2181_v15  ;;  %v1494_v30 = vor.u32 1.1754944e-38, %v1493_v35 }
 0x442   : > { %v2183_v33 = vpop.eup %2182 }
 0x443   : > { %v1422_v22 = vadd.f32 1.0, %v2183_v33  ;;  %2188 = vrcp.f32 %v1421_v16  ;;  %v2859_v34 = vpop.eup %2184  ;;  %v1434_v50 = vand.u32 2147483648, %v1421_v16  ;;  %v1432_v53 = vand.u32 2147483647, %v1421_v16 }
 0x444   : > { %v1468_v6 = vmul.f32 %v2859_v34, %v2853_v12  ;;  %vm1428_vm13 = vweird.f32 %v1421_v16  ;;  %vm1473_vm7 = vweird.f32 %v2859_v34 }
 0x445   : > { %2190 = vrcp.f32 %v1422_v22  ;;  %v2861_v24 = vpop.eup %2186  ;;  %v1449_v55 = vand.u32 2147483648, %v1422_v22  ;;  %v1447_v57 = vand.u32 2147483647, %v1422_v22  ;;  %v1435_v60 = vor.u32 1.1754944e-38, %v1434_v50  ;;  %vm1474_vm10 = vmor %vm1472_vm4, %vm1473_vm7 }
 0x446   : > { %v1483_v38 = vmul.f32 %v2861_v24, %v2855_v32  ;;  %v1469_v48 = vsub.f32 1.0, %v1468_v6  ;;  %vm1433_vm0 = vcmp.eq.f32.partialorder %v1432_v53, 8.507059e+37  ;;  %vm1443_vm2 = vweird.f32 %v1422_v22 }
 0x447   : > { %v1450_v3 = vor.u32 1.1754944e-38, %v1449_v55  ;;  %vm1448_vm6 = vcmp.eq.f32.partialorder %v1447_v57, 8.507059e+37  ;;  %vm1488_vm8 = vweird.f32 %v2861_v24 }
 0x448   : > { %v1484_v49 = vsub.f32 1.0, %v1483_v38  ;;  %v1470_v58 = vmul.f32 %v2859_v34, %v1469_v48  ;;  %vm1489_vm11 = vmor %vm1487_vm9, %vm1488_vm8 }
 0x449   : > { %v2189_v37 = vpop.eup %2188 }
 0x44a   : > { %v1424_v41 = vmul.f32 %v2189_v37, %v1421_v16  ;;  %vm1429_vm12 = vweird.f32 %v2189_v37  ;;  %v1485_v59 = vmul.f32 %v2861_v24, %v1484_v49  ;;  %v1471_v0 = vadd.f32 %v2859_v34, %v1470_v58 }
 0x44b   : > { %v2191_v46 = vpop.eup %2190  ;;  %vm1430_vm15 = vmor %vm1428_vm13, %vm1429_vm12  ;;  %vm1477_vm12 = vcmp.eq.f32.partialorder %v1476_v8, 8.507059e+37  ;;  %vm1492_vm13 = vcmp.eq.f32.partialorder %v1491_v13, 8.507059e+37 }
 0x44c   : > { %v1425_v44 = vsub.f32 1.0, %v1424_v41  ;;  %v1439_v40 = vmul.f32 %v2191_v46, %v1422_v22  ;;  %vm1444_vm14 = vweird.f32 %v2191_v46  ;;  %v1486_v26 = vadd.f32 %v2861_v24, %v1485_v59 }
 0x44d   : > { %vm1445_vm5 = vmor %vm1443_vm2, %vm1444_vm14  ;;  %v1475_v9 = vsel %vm1474_vm10, %v2859_v34, %v1471_v0  ;;  %v1515_v34 = vld [vmem:[%s2404_s16 + $0x6] sm:$0x1] }
 0x44e   : > { %v1426_v52 = vmul.f32 %v2189_v37, %v1425_v44  ;;  %v1440_v43 = vsub.f32 1.0, %v1439_v40  ;;  %v1490_v29 = vsel %vm1489_vm11, %v2861_v24, %v1486_v26  ;;  %v1480_v18 = vsel %vm1477_vm12, %v1479_v10, %v1475_v9  ;;  %v1517_v24 = vld [vmem:[%s2406_s17 + $0x6] sm:$0x1] }
 0x44f   : > { %v1495_v2 = vsel %vm1492_vm13, %v1494_v30, %v1490_v29  ;;  %v1507_v39 = vsub.f32 1.0, %v1480_v18  ;;  %v1511_v32 = vmul.f32 %v1480_v18, %v2837_v25  ;;  %v1518_v25 = vld [vmem:[%s2406_s17 + $0xe] sm:$0x1] }
 0x450   : > { %v1427_v56 = vadd.f32 %v2189_v37, %v1426_v52  ;;  %v1441_v17 = vmul.f32 %v2191_v46, %v1440_v43  ;;  %v1508_v11 = vsub.f32 1.0, %v1495_v2  ;;  %v1512_v19 = vmul.f32 %v1495_v2, %v2835_v23  ;;  %v1516_v23 = vld [vmem:[%s2404_s16 + $0xe] sm:$0x1] }
 0x452   : > { %v1431_v62 = vsel %vm1430_vm15, %v2189_v37, %v1427_v56  ;;  %v1442_v45 = vadd.f32 %v2191_v46, %v1441_v17 }
 0x453   : > { %v1436_v1 = vsel %vm1433_vm0, %v1435_v60, %v1431_v62 }
 0x454   : > { %v1446_v5 = vsel %vm1445_vm5, %v2191_v46, %v1442_v45  ;;  %v1501_v20 = vmul.f32 %v1436_v1, %v1407_v54 }
 0x455   : > { %v1451_v61 = vsel %vm1448_vm6, %v1450_v3, %v1446_v5 }
 0x456   : > { %v1502_v36 = vmul.f32 %v1498_v63, %v1451_v61  ;;  %v1503_v7 = vadd.f32 %v1501_v20, %v1341_v4 }
 0x458   : > { %v1504_v14 = vadd.f32 %v1502_v36, %v1342_v21  ;;  %2192 = vtanh.f32 %v1503_v7 }
 0x45a   : > { %2194 = vtanh.f32 %v1504_v14 }
 0x45e   : > { %v2193_v28 = vpop.eup %2192 }
 0x45f   : > { %v1509_v47 = vmul.f32 %v2193_v28, %v1507_v39 }
 0x460   : > { %v2195_v51 = vpop.eup %2194 }
 0x461   : > { %v1510_v12 = vmul.f32 %v2195_v51, %v1508_v11  ;;  %v2890_v16 = vadd.f32 %v1511_v32, %v1509_v47  ;;  %v1519_v11 = vld [vmem:[%s2408_s18 + $0x6] sm:$0x1] }
 0x463   : > { %v2888_v15 = vadd.f32 %v1512_v19, %v1510_v12  ;;  %v1520_v19 = vld [vmem:[%s2408_s18 + $0xe] sm:$0x1] }
 0x465   : > { %v1523_v33 = vrot.slane %v2888_v15, 7 }
 0x467   : > { %v1524_v22 = vsel %vm633_vm3, %v1523_v33, %v2890_v16 }
 0x468   : > { %2025 = vmatmul.msk.f32.vlgmr.msra.gmra.mxu2 %vm448_vm1, %v1524_v22  ;;  %2026 = vmatmul.msk.f32.vlgmr.msra.gmra.mxu3 %vm448_vm1, %v1524_v22 }
 0x469   : > { %2027 = vmatmul.msk.f32.vlgmr.msrb.gmra.mxu0 %vm448_vm1, %v1524_v22 }
 0x4e6   : > { %v1584_v3 = vpop.f32.mrf.mxu0 }
 0x4e7   : > { %v1585_v35 = vadd.f32 %v2812_v31, %v1584_v3 }
 0x4e9   : > { %v1676_v2 = vrot.slane %v1585_v35, 1 }
 0x4eb   : > { %v1544_v37 = vpop.f32.mrf.mxu2  ;;  %v1564_v6 = vpop.f32.mrf.mxu3 }
 0x4ec   : > { %v1588_v38 = vrot.slane %v1544_v37, 1  ;;  %v1591_v41 = vadd.f32 %v1544_v37, %v1515_v34  ;;  %v1632_v46 = vrot.slane %v1564_v6, 1  ;;  %v1635_v42 = vadd.f32 %v1564_v6, %v1517_v24 }
 0x4ee   : > { %v1592_v44 = vadd.f32 %v1588_v38, %v1516_v23  ;;  %v2028_v40 = vmul.f32 -1.442695, %v1591_v41  ;;  %v1636_v48 = vadd.f32 %v1632_v46, %v1518_v25  ;;  %v2030_v49 = vmul.f32 -1.442695, %v1635_v42 }
 0x4f0   : > { %2196 = vpow2.f32 %v2028_v40  ;;  %v2029_v50 = vmul.f32 -1.442695, %v1592_v44  ;;  %v2031_v52 = vmul.f32 -1.442695, %v1636_v48 }
 0x4f1   : > { %2198 = vpow2.f32 %v2030_v49 }
 0x4f2   : > { %2200 = vpow2.f32 %v2029_v50 }
 0x4f3   : > { %2202 = vpow2.f32 %v2031_v52 }
 0x4f6   : > { %v2197_v53 = vpop.eup %2196 }
 0x4f7   : > { %v2199_v43 = vpop.eup %2198  ;;  %v1599_v54 = vadd.f32 1.0, %v2197_v53 }
 0x4f8   : > { %v2201_v55 = vpop.eup %2200  ;;  %v2902_v56 = vadd.f32 1.0, %v2199_v43 }
 0x4f9   : > { %v2203_v17 = vpop.eup %2202  ;;  %v1600_v57 = vadd.f32 1.0, %v2201_v55  ;;  %2204 = vrcp.f32 %v1599_v54  ;;  %v1612_v20 = vand.u32 2147483648, %v1599_v54  ;;  %v1610_v26 = vand.u32 2147483647, %v1599_v54 }
 0x4fa   : > { %v2904_v58 = vadd.f32 1.0, %v2203_v17  ;;  %2206 = vrcp.f32 %v2902_v56  ;;  %vm1606_vm15 = vweird.f32 %v1599_v54  ;;  %vm1650_vm7 = vweird.f32 %v2902_v56 }
 0x4fb   : > { %2208 = vrcp.f32 %v1600_v57  ;;  %v1627_v36 = vand.u32 2147483648, %v1600_v57  ;;  %v1625_v14 = vand.u32 2147483647, %v1600_v57  ;;  %v1613_v9 = vor.u32 1.1754944e-38, %v1612_v20 }
 0x4fc   : > { %2210 = vrcp.f32 %v2904_v58  ;;  %vm1611_vm4 = vcmp.eq.f32.partialorder %v1610_v26, 8.507059e+37  ;;  %vm1621_vm5 = vweird.f32 %v1600_v57  ;;  %v1656_v34 = vand.u32 2147483648, %v2902_v56 }
 0x4fd   : > { %v1628_v39 = vor.u32 1.1754944e-38, %v1627_v36  ;;  %vm1626_vm8 = vcmp.eq.f32.partialorder %v1625_v14, 8.507059e+37  ;;  %v1671_v24 = vand.u32 2147483648, %v2904_v58  ;;  %vm1665_vm11 = vweird.f32 %v2904_v58 }
 0x4fe   : > { %v1654_v37 = vand.u32 2147483647, %v2902_v56  ;;  %v1669_v25 = vand.u32 2147483647, %v2904_v58  ;;  %v1657_v46 = vor.u32 1.1754944e-38, %v1656_v34 }
 0x4ff   : > { %v2205_v59 = vpop.eup %2204  ;;  %v1672_v42 = vor.u32 1.1754944e-38, %v1671_v24 }
 0x500   : > { %v2908_v60 = vpop.eup %2206  ;;  %v1602_v62 = vmul.f32 %v2205_v59, %v1599_v54  ;;  %vm1607_vm14 = vweird.f32 %v2205_v59 }
 0x501   : > { %v2209_v45 = vpop.eup %2208  ;;  %v1646_v63 = vmul.f32 %v2908_v60, %v2902_v56  ;;  %vm1608_vm2 = vmor %vm1606_vm15, %vm1607_vm14  ;;  %vm1651_vm9 = vweird.f32 %v2908_v60  ;;  %vm1655_vm14 = vcmp.eq.f32.partialorder %v1654_v37, 8.507059e+37  ;;  %vm1670_vm15 = vcmp.eq.f32.partialorder %v1669_v25, 8.507059e+37 }
 0x502   : > { %v2912_v1 = vpop.eup %2210  ;;  %v1603_v4 = vsub.f32 1.0, %v1602_v62  ;;  %v1617_v5 = vmul.f32 %v2209_v45, %v1600_v57  ;;  %vm1622_vm0 = vweird.f32 %v2209_v45  ;;  %vm1652_vm12 = vmor %vm1650_vm7, %vm1651_vm9 }
 0x503   : > { %v1647_v61 = vsub.f32 1.0, %v1646_v63  ;;  %v1661_v21 = vmul.f32 %v2912_v1, %v2904_v58  ;;  %vm1623_vm6 = vmor %vm1621_vm5, %vm1622_vm0  ;;  %vm1666_vm10 = vweird.f32 %v2912_v1 }
 0x504   : > { %v1604_v0 = vmul.f32 %v2205_v59, %v1603_v4  ;;  %v1618_v27 = vsub.f32 1.0, %v1617_v5  ;;  %vm1667_vm13 = vmor %vm1665_vm11, %vm1666_vm10  ;;  %v1696_v4 = vld [vmem:[%s2406_s17 + $0xf] sm:$0x1] }
 0x505   : > { %v1662_v7 = vsub.f32 1.0, %v1661_v21  ;;  %v1648_v29 = vmul.f32 %v2908_v60, %v1647_v61 }
 0x506   : > { %v1605_v8 = vadd.f32 %v2205_v59, %v1604_v0  ;;  %v1619_v13 = vmul.f32 %v2209_v45, %v1618_v27 }
 0x507   : > { %v1663_v10 = vmul.f32 %v2912_v1, %v1662_v7  ;;  %v1649_v32 = vadd.f32 %v2908_v60, %v1648_v29 }
 0x508   : > { %v1609_v30 = vsel %vm1608_vm2, %v2205_v59, %v1605_v8  ;;  %v1620_v18 = vadd.f32 %v2209_v45, %v1619_v13  ;;  %v1694_v59 = vld [vmem:[%s2404_s16 + $0xf] sm:$0x1] }
 0x509   : > { %v1614_v28 = vsel %vm1611_vm4, %v1613_v9, %v1609_v30  ;;  %v1664_v33 = vadd.f32 %v2912_v1, %v1663_v10  ;;  %v1653_v38 = vsel %vm1652_vm12, %v2908_v60, %v1649_v32 }
 0x50a   : > { %v1624_v51 = vsel %vm1623_vm6, %v2209_v45, %v1620_v18  ;;  %v1679_v47 = vmul.f32 %v1614_v28, %v1585_v35  ;;  %v1658_v44 = vsel %vm1655_vm14, %v1657_v46, %v1653_v38 }
 0x50b   : > { %v1629_v12 = vsel %vm1626_vm8, %v1628_v39, %v1624_v51  ;;  %v1668_v41 = vsel %vm1667_vm13, %v2912_v1, %v1664_v33  ;;  %v1685_v49 = vsub.f32 1.0, %v1658_v44  ;;  %v1689_v55 = vmul.f32 %v1658_v44, %v2890_v16  ;;  %v1695_v1 = vld [vmem:[%s2406_s17 + $0x7] sm:$0x1] }
 0x50c   : > { %v1680_v22 = vmul.f32 %v1676_v2, %v1629_v12  ;;  %v1681_v23 = vadd.f32 %v1679_v47, %v1519_v11  ;;  %v1673_v40 = vsel %vm1670_vm15, %v1672_v42, %v1668_v41  ;;  %v1697_v42 = vld [vmem:[%s2408_s18 + $0x7] sm:$0x1] }
 0x50d   : > { %v1686_v50 = vsub.f32 1.0, %v1673_v40  ;;  %v1690_v54 = vmul.f32 %v1673_v40, %v2888_v15  ;;  %v1693_v15 = vld [vmem:[%s2404_s16 + $0x7] sm:$0x1]  ;;  %s2306_s16 = smov [#allocation6]  }
 0x50e   : > { %v1682_v6 = vadd.f32 %v1680_v22, %v1520_v19  ;;  %2212 = vtanh.f32 %v1681_v23  ;;  %s1885_s17 = sshll.u32 %s2306_s16, 4  ;;  %s1886_s17 = int_to_ptr.vmem [resolvable:$true] %s1885_s17 }
 0x510   : > { %2214 = vtanh.f32 %v1682_v6 }
 0x514   : > { %v2213_v48 = vpop.eup %2212 }
 0x515   : > { %v1687_v53 = vmul.f32 %v2213_v48, %v1685_v49 }
 0x516   : > { %v2215_v52 = vpop.eup %2214 }
 0x517   : > { %v1688_v43 = vmul.f32 %v2215_v52, %v1686_v50  ;;  %v2939_v17 = vadd.f32 %v1689_v55, %v1687_v53  ;;  %v1698_v53 = vld [vmem:[%s2408_s18 + $0xf] sm:$0x1] }
 0x519   : > { %v2937_v56 = vadd.f32 %v1690_v54, %v1688_v43 }
 0x51b   : > { %v1701_v57 = vrot.slane %v2937_v56, 7 }
 0x51d   : > { %v1702_v58 = vsel %vm633_vm3, %v1701_v57, %v2939_v17 }
 0x51e   : > { %2032 = vmatmul.msk.f32.vlgmr.msrb.gmra.mxu1 %vm448_vm1, %v1702_v58  ;;  %2033 = vmatmul.msk.f32.vlgmr.msrb.gmra.mxu2 %vm448_vm1, %v1702_v58 }
 0x51f   : > { %2034 = vmatmul.msk.f32.vlgmr.msrb.gmra.mxu3 %vm448_vm1, %v1702_v58 }
 0x59b   : > { %v1722_v60 = vpop.f32.mrf.mxu1 }
 0x59c   : > { %v1766_v16 = vrot.slane %v1722_v60, 1  ;;  %v1769_v62 = vadd.f32 %v1722_v60, %v1693_v15 }
 0x59e   : > { %v1770_v45 = vadd.f32 %v1766_v16, %v1694_v59  ;;  %v2035_v63 = vmul.f32 -1.442695, %v1769_v62 }
 0x5a0   : > { %2216 = vpow2.f32 %v2035_v63  ;;  %v2036_v3 = vmul.f32 -1.442695, %v1770_v45 }
 0x5a1   : > { %v1742_v5 = vpop.f32.mrf.mxu2 }
 0x5a2   : > { %2218 = vpow2.f32 %v2036_v3  ;;  %v1810_v20 = vrot.slane %v1742_v5, 1  ;;  %v1813_v61 = vadd.f32 %v1742_v5, %v1695_v1  ;;  %v1762_v10 = vpop.f32.mrf.mxu3 }
 0x5a3   : > { %v1763_v39 = vadd.f32 %v2812_v31, %v1762_v10 }
 0x5a4   : > { %v1814_v21 = vadd.f32 %v1810_v20, %v1696_v4  ;;  %v2037_v0 = vmul.f32 -1.442695, %v1813_v61 }
 0x5a5   : > { %v1854_v31 = vrot.slane %v1763_v39, 1 }
 0x5a6   : > { %v2217_v26 = vpop.eup %2216  ;;  %2220 = vpow2.f32 %v2037_v0  ;;  %v2038_v27 = vmul.f32 -1.442695, %v1814_v21 }
 0x5a7   : > { %v1777_v35 = vadd.f32 1.0, %v2217_v26 }
 0x5a8   : > { %v2219_v36 = vpop.eup %2218  ;;  %2222 = vpow2.f32 %v2038_v27 }
 0x5a9   : > { %v1778_v7 = vadd.f32 1.0, %v2219_v36  ;;  %2224 = vrcp.f32 %v1777_v35  ;;  %v1788_v11 = vand.u32 2147483647, %v1777_v35  ;;  %v1790_v51 = vand.u32 2147483648, %v1777_v35 }
 0x5aa   : > { %vm1784_vm0 = vweird.f32 %v1777_v35 }
 0x5ab   : > { %2226 = vrcp.f32 %v1778_v7  ;;  %v1803_v32 = vand.u32 2147483647, %v1778_v7  ;;  %v1805_v33 = vand.u32 2147483648, %v1778_v7  ;;  %vm1789_vm5 = vcmp.eq.f32.partialorder %v1788_v11, 8.507059e+37 }
 0x5ac   : > { %v2221_v8 = vpop.eup %2220  ;;  %v1791_v37 = vor.u32 1.1754944e-38, %v1790_v51  ;;  %vm1799_vm6 = vweird.f32 %v1778_v7 }
 0x5ad   : > { %v2951_v13 = vadd.f32 1.0, %v2221_v8  ;;  %vm1804_vm8 = vcmp.eq.f32.partialorder %v1803_v32, 8.507059e+37  ;;  %v1806_v40 = vor.u32 1.1754944e-38, %v1805_v33 }
 0x5ae   : > { %v2223_v14 = vpop.eup %2222 }
 0x5af   : > { %v2225_v9 = vpop.eup %2224  ;;  %v2953_v29 = vadd.f32 1.0, %v2223_v14  ;;  %2228 = vrcp.f32 %v2951_v13  ;;  %v1834_v46 = vand.u32 2147483648, %v2951_v13  ;;  %vm1828_vm11 = vweird.f32 %v2951_v13 }
 0x5b0   : > { %v1780_v30 = vmul.f32 %v2225_v9, %v1777_v35  ;;  %vm1785_vm1 = vweird.f32 %v2225_v9  ;;  %v1832_v59 = vand.u32 2147483647, %v2951_v13 }
 0x5b1   : > { %v2227_v18 = vpop.eup %2226  ;;  %2230 = vrcp.f32 %v2953_v29  ;;  %vm1786_vm4 = vmor %vm1784_vm0, %vm1785_vm1  ;;  %v1849_v54 = vand.u32 2147483648, %v2953_v29  ;;  %v1847_v60 = vand.u32 2147483647, %v2953_v29  ;;  %vm1843_vm12 = vweird.f32 %v2953_v29 }
 0x5b2   : > { %v1781_v2 = vsub.f32 1.0, %v1780_v30  ;;  %v1795_v28 = vmul.f32 %v2227_v18, %v1778_v7  ;;  %vm1800_vm2 = vweird.f32 %v2227_v18  ;;  %v1835_v63 = vor.u32 1.1754944e-38, %v1834_v46 }
 0x5b3   : > { %vm1801_vm7 = vmor %vm1799_vm6, %vm1800_vm2  ;;  %v1850_v3 = vor.u32 1.1754944e-38, %v1849_v54  ;;  %vm1833_vm15 = vcmp.eq.f32.partialorder %v1832_v59, 8.507059e+37  ;;  %vm1848_vm1 = vcmp.eq.f32.partialorder %v1847_v60, 8.507059e+37  ;;  %vm1876_vm0 = vcmask 254976  }
 0x5b4   : > { %v1782_v47 = vmul.f32 %v2225_v9, %v1781_v2  ;;  %v1796_v12 = vsub.f32 1.0, %v1795_v28 }
 0x5b5   : > { %v2229_v19 = vpop.eup %2228 }
 0x5b6   : > { %v1824_v22 = vmul.f32 %v2229_v19, %v2951_v13  ;;  %v1783_v34 = vadd.f32 %v2225_v9, %v1782_v47  ;;  %v1797_v24 = vmul.f32 %v2227_v18, %v1796_v12  ;;  %vm1829_vm9 = vweird.f32 %v2229_v19 }
 0x5b7   : > { %v2231_v23 = vpop.eup %2230  ;;  %vm1830_vm13 = vmor %vm1828_vm11, %vm1829_vm9 }
 0x5b8   : > { %v1825_v25 = vsub.f32 1.0, %v1824_v22  ;;  %v1839_v6 = vmul.f32 %v2231_v23, %v2953_v29  ;;  %v1787_v38 = vsel %vm1786_vm4, %v2225_v9, %v1783_v34  ;;  %v1798_v41 = vadd.f32 %v2227_v18, %v1797_v24 }
 0x5b9   : > { %v1792_v44 = vsel %vm1789_vm5, %v1791_v37, %v1787_v38  ;;  %vm1844_vm10 = vweird.f32 %v2231_v23 }
 0x5ba   : > { %v1826_v48 = vmul.f32 %v2229_v19, %v1825_v25  ;;  %v1840_v49 = vsub.f32 1.0, %v1839_v6  ;;  %v1802_v50 = vsel %vm1801_vm7, %v2227_v18, %v1798_v41  ;;  %v1857_v52 = vmul.f32 %v1792_v44, %v1763_v39  ;;  %vm1845_vm14 = vmor %vm1843_vm12, %vm1844_vm10 }
 0x5bb   : > { %v1807_v43 = vsel %vm1804_vm8, %v1806_v40, %v1802_v50 }
 0x5bc   : > { %v1841_v55 = vmul.f32 %v2231_v23, %v1840_v49  ;;  %v1858_v57 = vmul.f32 %v1854_v31, %v1807_v43  ;;  %v1859_v58 = vadd.f32 %v1857_v52, %v1697_v42  ;;  %v1827_v15 = vadd.f32 %v2229_v19, %v1826_v48 }
 0x5be   : > { %v1860_v16 = vadd.f32 %v1858_v57, %v1698_v53  ;;  %2232 = vtanh.f32 %v1859_v58  ;;  %v1842_v62 = vadd.f32 %v2231_v23, %v1841_v55  ;;  %v1831_v45 = vsel %vm1830_vm13, %v2229_v19, %v1827_v15 }
 0x5bf   : > { %v1836_v4 = vsel %vm1833_vm15, %v1835_v63, %v1831_v45 }
 0x5c0   : > { %2234 = vtanh.f32 %v1860_v16  ;;  %v1846_v1 = vsel %vm1845_vm14, %v2231_v23, %v1842_v62  ;;  %v1863_v61 = vsub.f32 1.0, %v1836_v4  ;;  %v1867_v36 = vmul.f32 %v1836_v4, %v2939_v17 }
 0x5c1   : > { %v1851_v5 = vsel %vm1848_vm1, %v1850_v3, %v1846_v1 }
 0x5c2   : > { %v1864_v21 = vsub.f32 1.0, %v1851_v5  ;;  %v1868_v35 = vmul.f32 %v1851_v5, %v2937_v56 }
 0x5c4   : > { %v2233_v20 = vpop.eup %2232 }
 0x5c5   : > { %v1865_v26 = vmul.f32 %v2233_v20, %v1863_v61 }
 0x5c6   : > { %v2235_v0 = vpop.eup %2234 }
 0x5c7   : > { %v1866_v27 = vmul.f32 %v2235_v0, %v1864_v21  ;;  %v1869_v8 = vadd.f32 %v1867_v36, %v1865_v26 }
 0x5c9   : > { %v1870_v7 = vadd.f32 %v1868_v35, %v1866_v27 }
 0x5cb   : > { %v1873_v13 = vrot.slane %v1870_v7, 7 }
 0x5cd   : > { %v1874_v14 = vsel %vm633_vm3, %v1873_v13, %v1869_v8 }
 0x5ce   : > { %1877 = vst.msk [vmem:[#allocation2] sm:$0x3] %vm1876_vm0, %v1874_v14 }
 0x5cf   : > { %1878 = vst.msk [vmem:[#allocation6] sm:$0x3] %vm1876_vm0, %v1874_v14 }
 0x5d0   : > { %2044 = dma.vmem_to_hbm [thread:$0]  (%p2047_p9), %s1886_s17, 32, %s1888_s10, [#allocation7]  }
 0x5d1   : > { %2290 = dma.done.wait (%p2047_p9), [#allocation7], 32  }
 0x5d2   : > { %2292 = vsyncadd (%p2047_p9), [#allocation7], 4294967264 }
 0x5d3 PF: > { %p15_p10 = scmp.ge.s32.totalorder %s2364_s28, 4   ;;  %s2998_s24 = smov %s2299_s25 }
 0x5d4   : > { %s2999_s25 = smov %s2373_s8  ;;  %s3000_s26 = smov %s2364_s28 }
 0x5d5   :  { %17 = sbr.rel (!%p15_p10) target bundleno = 2 (0x2), region = 214 }
 0x5da   :  { %1901 = vsyncpa [#allocation7], 1 }
 0x5db   :  { %1903 = vsyncpa [#allocation7 + $0x1], 1 }

</bundles_post_ra>
